<compile_context>
chip_gen: v5e
topology: v5e:2x2
jax: 0.10.0
libtpu: 0.0.40
codegen_flags: <defaults>
</compile_context>

<pallas_src>
import functools

import jax
import jax.numpy as jnp
from jax.experimental import pallas as pl
from jax.experimental.pallas import tpu as pltpu

BN_EPS = 1e-5

# Explicit scoped-VMEM limit.  At production ASPP sizes (Cin=2048, planes=256,
# tm=256, tk=512) the per-step footprint is ~10 MiB, so 48 MiB leaves headroom
# on every generation incl. v7x (64 MiB physical VMEM).
VMEM_LIMIT_BYTES = 48 * 1024 * 1024


# ----------------------------------------------------------------------------
# K-tiled fused matmul + bias (+ReLU) kernel
# ----------------------------------------------------------------------------
def _matmul_bias_act_kernel(x_ref, w_ref, b_ref, o_ref, acc_ref, *, apply_relu):
    """acc += x @ w over the K grid axis; epilogue adds bias (BN scale is
    pre-folded into w's columns) and optionally applies ReLU."""
    k = pl.program_id(1)

    @pl.when(k == 0)
    def _init():
        acc_ref[...] = jnp.zeros_like(acc_ref)

    acc_ref[...] += jnp.dot(
        x_ref[...], w_ref[...], preferred_element_type=jnp.float32
    )

    @pl.when(k == pl.num_programs(1) - 1)
    def _epilogue():
        y = acc_ref[...] + b_ref[...]
        if apply_relu:
            y = jnp.maximum(y, 0.0)
        o_ref[...] = y.astype(o_ref.dtype)


def matmul_bias_act(x, w, bias, *, relu, out_dtype=jnp.float32, tm=256, tk=512):
    """relu((x @ w) + bias) with bf16 MXU inputs and f32 accumulation.

    x: (M, K), w: (K, N) (BN scale already folded in), bias: (N,).
    tm: M tile (tune per gen: ~256 on v5e, 512-1024 on v6e/v7x).
    tk: K tile; must divide K (falls back to full-K otherwise).
    No M padding: the grid uses cdiv and rows are independent, so a ragged
    last M block is handled by Pallas boundary handling.
    """
    M, K = x.shape
    K2, N = w.shape
    assert K == K2
    x = x.astype(jnp.bfloat16)
    w = w.astype(jnp.bfloat16)
    bias = bias.astype(jnp.float32).reshape(1, N)
    tm = min(tm, M)
    if not (K >= tk and K % tk == 0):
        tk = K  # reduction axis must tile exactly
    grid = (pl.cdiv(M, tm), K // tk)
    kernel = functools.partial(_matmul_bias_act_kernel, apply_relu=relu)
    return pl.pallas_call(
        kernel,
        out_shape=jax.ShapeDtypeStruct((M, N), out_dtype),
        grid_spec=pltpu.PrefetchScalarGridSpec(
            num_scalar_prefetch=0,
            grid=grid,
            in_specs=[
                pl.BlockSpec((tm, tk), lambda i, k: (i, k)),
                pl.BlockSpec((tk, N), lambda i, k: (k, 0)),
                pl.BlockSpec((1, N), lambda i, k: (0, 0)),
            ],
            out_specs=pl.BlockSpec((tm, N), lambda i, k: (i, 0)),
            scratch_shapes=[pltpu.VMEM((tm, N), jnp.float32)],
        ),
        compiler_params=pltpu.CompilerParams(
            dimension_semantics=("parallel", "arbitrary"),
            vmem_limit_bytes=VMEM_LIMIT_BYTES,
        ),
    )(x, w, bias)


# ----------------------------------------------------------------------------
# Global average pool, tiled over (batch, channel chunks)
# ----------------------------------------------------------------------------
def _gap_kernel(x_ref, o_ref):
    # x_ref: (1, HW, tc) -> mean over the spatial axis with f32 accumulation.
    o_ref[...] = jnp.mean(x_ref[...].astype(jnp.float32), axis=1, keepdims=True)


def global_avg_pool(x_nsc, *, tc=512):
    """x: (N, HW, C) -> (N, C).  Tiled over (batch, C chunks) so the block stays
    small even at production sizes (e.g. 1 x 4225 x 512 bf16 ~ 4.3 MiB)."""
    N, HW, C = x_nsc.shape
    if not (C >= tc and C % tc == 0):
        tc = C
    out = pl.pallas_call(
        _gap_kernel,
        out_shape=jax.ShapeDtypeStruct((N, 1, C), jnp.float32),
        grid_spec=pltpu.PrefetchScalarGridSpec(
            num_scalar_prefetch=0,
            grid=(N, C // tc),
            in_specs=[pl.BlockSpec((1, HW, tc), lambda n, c: (n, 0, c))],
            out_specs=pl.BlockSpec((1, 1, tc), lambda n, c: (n, 0, c)),
        ),
        compiler_params=pltpu.CompilerParams(
            dimension_semantics=("parallel", "parallel"),
            vmem_limit_bytes=VMEM_LIMIT_BYTES,
        ),
    )(x_nsc)
    return out.reshape(N, C)


# ----------------------------------------------------------------------------
# Final 1x1 conv fused with the concat (no cat tensor, no broadcast x5)
# ----------------------------------------------------------------------------
def _concat_conv_kernel(x1_ref, x2_ref, x3_ref, x4_ref,
                        w1_ref, w2_ref, w3_ref, w4_ref, b_ref, o_ref):
    acc = jnp.dot(x1_ref[...], w1_ref[...], preferred_element_type=jnp.float32)
    acc += jnp.dot(x2_ref[...], w2_ref[...], preferred_element_type=jnp.float32)
    acc += jnp.dot(x3_ref[...], w3_ref[...], preferred_element_type=jnp.float32)
    acc += jnp.dot(x4_ref[...], w4_ref[...], preferred_element_type=jnp.float32)
    o_ref[...] = jnp.maximum(acc + b_ref[...], 0.0).astype(o_ref.dtype)


def concat_conv_bn_relu(xs, ws, b_rows, *, tm=512, out_dtype=jnp.float32):
    """Final 1x1 conv over the *virtual* concat [x1|x2|x3|x4|x5_broadcast].

    xs: 4 tensors (N, HW, P); ws: 4 weight blocks (P, P) with BN scale folded;
    b_rows: (N, P) per-batch bias = x5 @ wf5_scaled + bn_bias.  (x5 is constant
    over space — bilinear upsample from 1x1 with align_corners=True — so its
    contribution collapses to a per-batch bias row.)
    """
    N, HW, P = xs[0].shape
    tm = min(tm, HW)
    xs = [x.astype(jnp.bfloat16) for x in xs]
    ws = [w.astype(jnp.bfloat16) for w in ws]
    b = b_rows.astype(jnp.float32).reshape(N, 1, P)
    x_spec = pl.BlockSpec((None, tm, P), lambda n, i: (n, i, 0))
    w_spec = pl.BlockSpec((P, P), lambda n, i: (0, 0))
    b_spec = pl.BlockSpec((None, 1, P), lambda n, i: (n, 0, 0))
    return pl.pallas_call(
        _concat_conv_kernel,
        out_shape=jax.ShapeDtypeStruct((N, HW, P), out_dtype),
        grid_spec=pltpu.PrefetchScalarGridSpec(
            num_scalar_prefetch=0,
            grid=(N, pl.cdiv(HW, tm)),
            in_specs=[x_spec] * 4 + [w_spec] * 4 + [b_spec],
            out_specs=pl.BlockSpec((None, tm, P), lambda n, i: (n, i, 0)),
        ),
        compiler_params=pltpu.CompilerParams(
            dimension_semantics=("parallel", "parallel"),
            vmem_limit_bytes=VMEM_LIMIT_BYTES,
        ),
    )(*xs, *ws, b)


# ----------------------------------------------------------------------------
# ASPP forward (Pallas-backed)
# ----------------------------------------------------------------------------
def _bn_fold(gamma, beta, mean, var):
    scale = gamma / jnp.sqrt(var + BN_EPS)
    bias = beta - mean * scale
    return scale.astype(jnp.float32), bias.astype(jnp.float32)


def aspp_forward(x_nchw, params, dilations):
    x = jnp.transpose(x_nchw, (0, 2, 3, 1)).astype(jnp.float32)  # NHWC
    N, H, W, C = x.shape
    HW = H * W
    P = params["w1"].shape[0]  # planes

    x_bf = x.astype(jnp.bfloat16)
    x_flat = x_bf.reshape(N * HW, C)

    # ---- branch 1: 1x1 conv + BN + ReLU (scale folded into weight columns)
    s1, b1 = _bn_fold(*params["bn1"])
    w1m = params["w1"].reshape(P, C).T * s1[None, :]
    x1 = matmul_bias_act(x_flat, w1m, b1, relu=True, out_dtype=jnp.bfloat16)
    x1 = x1.reshape(N, HW, P)

    # ---- branches 2-4: dilated 3x3 conv, no im2col.
    # Compute all 9 taps with one x @ W_all matmul (C -> 9*P), then do the
    # spatial shift-add over the small planes-wide tap tensor in JAX, followed
    # by BN bias + ReLU.  Equivalent to the dilated conv with "same" padding.
    def branch_3x3(wkey, bnkey, d):
        w = params[wkey]                               # (P, C, 3, 3)
        s, b = _bn_fold(*params[bnkey])
        wt = jnp.transpose(w, (2, 3, 1, 0)) * s        # (3, 3, C, P), scale folded
        w_all = jnp.transpose(wt.reshape(9, C, P), (1, 0, 2)).reshape(C, 9 * P)
        taps = matmul_bias_act(
            x_flat, w_all, jnp.zeros((9 * P,), jnp.float32),
            relu=False, out_dtype=jnp.bfloat16,
        ).reshape(N, H, W, 9, P)
        tpad = jnp.pad(taps, ((0, 0), (d, d), (d, d), (0, 0), (0, 0)))
        acc = jnp.broadcast_to(b, (N, H, W, P))
        for t in range(9):
            kh, kw = divmod(t, 3)
            acc = acc + tpad[:, kh * d:kh * d + H,
                             kw * d:kw * d + W, t, :].astype(jnp.float32)
        y = jnp.maximum(acc, 0.0).astype(jnp.bfloat16)
        return y.reshape(N, HW, P)

    x2 = branch_3x3("w2", "bn2", dilations[1])
    x3 = branch_3x3("w3", "bn3", dilations[2])
    x4 = branch_3x3("w4", "bn4", dilations[3])

    # ---- branch 5: global-average-pool -> 1x1 conv -> BN -> ReLU
    pooled = global_avg_pool(x_bf.reshape(N, HW, C))       # (N, C) f32
    s5, b5 = _bn_fold(*params["bn5"])
    w5m = params["w5"].reshape(P, C).T * s5[None, :]
    x5 = matmul_bias_act(pooled, w5m, b5, relu=True, out_dtype=jnp.float32)  # (N, P)

    # ---- final 1x1 conv over the virtual concat, fused with BN + ReLU
    sf, bf = _bn_fold(*params["bnf"])
    wfm = params["wf"].reshape(P, 5 * P).T * sf[None, :]    # (5P, P), scale folded
    wf_blocks = [wfm[i * P:(i + 1) * P] for i in range(5)]
    # x5 broadcast (bilinear from 1x1, align_corners=True) == per-batch constant,
    # so fold its contribution into the per-batch bias row.
    b_total = jnp.dot(x5, wf_blocks[4],
                      precision=jax.lax.Precision.HIGHEST) + bf[None, :]
    out = concat_conv_bn_relu([x1, x2, x3, x4], wf_blocks[:4], b_total)  # (N,HW,P)
    out = out.reshape(N, H, W, P)
    # Dropout(0.5): identity at inference.  TODO(synk): training-mode dropout.
    return jnp.transpose(out, (0, 3, 1, 2))  # back to NCHW


# ----------------------------------------------------------------------------
# Pure-JAX reference (for correctness check)
# ----------------------------------------------------------------------------
def _ref_conv_bn_relu(x_nhwc, w, bn, d):
    kh = w.shape[2]
    pad = d * (kh - 1) // 2
    w_hwio = jnp.transpose(w, (2, 3, 1, 0))
    y = jax.lax.conv_general_dilated(
        x_nhwc,
        w_hwio,
        window_strides=(1, 1),
        padding=[(pad, pad), (pad, pad)],
        rhs_dilation=(d, d),
        dimension_numbers=("NHWC", "HWIO", "NHWC"),
        precision=jax.lax.Precision.HIGHEST,
    )
    gamma, beta, mean, var = bn
    y = (y - mean) / jnp.sqrt(var + BN_EPS) * gamma + beta
    return jnp.maximum(y, 0.0)


def aspp_reference(x_nchw, params, dilations):
    x = jnp.transpose(x_nchw, (0, 2, 3, 1)).astype(jnp.float32)
    N, H, W, C = x.shape
    x1 = _ref_conv_bn_relu(x, params["w1"], params["bn1"], 1)
    x2 = _ref_conv_bn_relu(x, params["w2"], params["bn2"], dilations[1])
    x3 = _ref_conv_bn_relu(x, params["w3"], params["bn3"], dilations[2])
    x4 = _ref_conv_bn_relu(x, params["w4"], params["bn4"], dilations[3])
    pooled = jnp.mean(x, axis=(1, 2), keepdims=True)  # (N,1,1,C)
    x5 = _ref_conv_bn_relu(pooled, params["w5"], params["bn5"], 1)
    x5 = jnp.broadcast_to(x5, (N, H, W, x5.shape[-1]))
    cat = jnp.concatenate([x1, x2, x3, x4, x5], axis=-1)
    out = _ref_conv_bn_relu(cat, params["wf"], params["bnf"], 1)
    return jnp.transpose(out, (0, 3, 1, 2))


# ----------------------------------------------------------------------------
# Deterministic parameter construction
# ----------------------------------------------------------------------------
def make_params(key, inplanes, planes):
    keys = jax.random.split(key, 6)

    def bn_params(c, salt):
        idx = jnp.arange(c, dtype=jnp.float32)
        gamma = 1.0 + 0.01 * jnp.cos(idx + salt)
        beta = 0.02 * jnp.sin(idx + salt)
        mean = 0.01 * jnp.sin(0.5 * idx + salt)
        var = 1.0 + 0.05 * jnp.cos(0.3 * idx + salt) ** 2
        return (gamma, beta, mean, var)

    p = {
        "w1": 0.05 * jax.random.normal(keys[0], (planes, inplanes, 1, 1), jnp.float32),
        "w2": 0.05 * jax.random.normal(keys[1], (planes, inplanes, 3, 3), jnp.float32),
        "w3": 0.05 * jax.random.normal(keys[2], (planes, inplanes, 3, 3), jnp.float32),
        "w4": 0.05 * jax.random.normal(keys[3], (planes, inplanes, 3, 3), jnp.float32),
        "w5": 0.05 * jax.random.normal(keys[4], (planes, inplanes, 1, 1), jnp.float32),
        "wf": 0.05
        * jax.random.normal(keys[5], (planes, 5 * planes, 1, 1), jnp.float32),
        "bn1": bn_params(planes, 1.0),
        "bn2": bn_params(planes, 2.0),
        "bn3": bn_params(planes, 3.0),
        "bn4": bn_params(planes, 4.0),
        "bn5": bn_params(planes, 5.0),
        "bnf": bn_params(planes, 6.0),
    }
    return p


# ----------------------------------------------------------------------------
if __name__ == "__main__":
    # Small shapes (scaled-down channel counts; module uses inplanes=2048, planes=256)
    batch, inplanes, planes, H, W = 2, 64, 32, 16, 16
    output_scale = 16
    dilations = (1, 6, 12, 18) if output_scale == 16 else (1, 12, 24, 36)

    key = jax.random.PRNGKey(0)
    kx, kp = jax.random.split(key)
    x = jax.random.normal(kx, (batch, inplanes, H, W), jnp.float32)  # NCHW input
    params = make_params(kp, inplanes, planes)

    fwd = jax.jit(functools.partial(aspp_forward, dilations=dilations))
    out = jax.block_until_ready(fwd(x, params))

    ref = aspp_reference(x, params, dilations)
    assert out.shape == (batch, planes, H, W), out.shape
    err = float(jnp.max(jnp.abs(out - ref)))
    ref_max = float(jnp.max(jnp.abs(ref)))
    # bf16 MXU inputs (per perf review) -> relative tolerance vs the f32 reference.
    assert err <= 5e-2 * (ref_max + 1e-6), (
        f"mismatch vs reference: max abs err {err}, max |ref| {ref_max}"
    )

    print("KERNEL_OK")
</pallas_src>

<mosaic_0001>
module attributes {stable_mosaic.version = 11 : i64} {
  func.func @_matmul_bias_act_kernel(%arg0: i32, %arg1: i32, %arg2: memref<256x64xbf16, #tpu.memory_space<vmem>>, %arg3: memref<64x288xbf16, #tpu.memory_space<vmem>>, %arg4: memref<1x288xf32, #tpu.memory_space<vmem>>, %arg5: memref<256x288xbf16, #tpu.memory_space<vmem>>, %arg6: memref<256x288xf32, #tpu.memory_space<vmem>>) attributes {dimension_semantics = [#tpu.dimension_semantics<parallel>, #tpu.dimension_semantics<arbitrary>], iteration_bounds = array<i64: 2, 1>, scalar_prefetch = 0 : i64, scratch_operands = 1 : i64, tpu.core_type = #tpu.core_type<tc>, window_params = [{transform_indices = @transform_0, window_bounds = array<i64: 256, 64>}, {transform_indices = @transform_1, window_bounds = array<i64: 64, 288>}, {pipeline_mode = #tpu.pipeline_mode<synchronous>, transform_indices = @transform_2, window_bounds = array<i64: 1, 288>}, {transform_indices = @transform_3, window_bounds = array<i64: 256, 288>}]} {
    %c0_i32 = arith.constant 0 : i32
    %0 = arith.cmpi eq, %arg1, %c0_i32 : i32
    %1 = arith.extui %0 : i1 to i32
    %c0_i32_0 = arith.constant 0 : i32
    %2 = arith.cmpi ne, %1, %c0_i32_0 : i32
    scf.if %2 {
      %cst_10 = arith.constant 0.000000e+00 : f32
      %12 = vector.broadcast %cst_10 : f32 to vector<256x288xf32>
      %c0_11 = arith.constant 0 : index
      %c0_12 = arith.constant 0 : index
      %13 = vector.load %arg6[%c0_11, %c0_12] : memref<256x288xf32, #tpu.memory_space<vmem>>, vector<256x288xf32>
      tpu.vector_store %arg6[%c0_11, %c0_12], %12 {strides = array<i32>} : memref<256x288xf32, #tpu.memory_space<vmem>>, vector<256x288xf32>,
    } else {
    }
    %c0 = arith.constant 0 : index
    %c0_1 = arith.constant 0 : index
    %3 = vector.load %arg6[%c0, %c0_1] : memref<256x288xf32, #tpu.memory_space<vmem>>, vector<256x288xf32>
    %c0_2 = arith.constant 0 : index
    %c0_3 = arith.constant 0 : index
    %4 = vector.load %arg2[%c0_2, %c0_3] : memref<256x64xbf16, #tpu.memory_space<vmem>>, vector<256x64xbf16>
    %c0_4 = arith.constant 0 : index
    %c0_5 = arith.constant 0 : index
    %5 = vector.load %arg3[%c0_4, %c0_5] : memref<64x288xbf16, #tpu.memory_space<vmem>>, vector<64x288xbf16>
    %cst = arith.constant dense<0.000000e+00> : vector<256x288xf32>
    %6 = tpu.matmul %4, %5, %cst {dimension_numbers = #tpu.dot_dimension_numbers<[1], [0], [0], [1], [0, 0, 1, 1], [], []>} : vector<256x64xbf16>, vector<64x288xbf16>, vector<256x288xf32> -> vector<256x288xf32>
    %7 = arith.addf %3, %6 : vector<256x288xf32>
    %c0_6 = arith.constant 0 : index
    %c0_7 = arith.constant 0 : index
    %8 = vector.load %arg6[%c0_6, %c0_7] : memref<256x288xf32, #tpu.memory_space<vmem>>, vector<256x288xf32>
    tpu.vector_store %arg6[%c0_6, %c0_7], %7 {strides = array<i32>} : memref<256x288xf32, #tpu.memory_space<vmem>>, vector<256x288xf32>,
    %c0_i32_8 = arith.constant 0 : i32
    %9 = arith.cmpi eq, %arg1, %c0_i32_8 : i32
    %10 = arith.extui %9 : i1 to i32
    %c0_i32_9 = arith.constant 0 : i32
    %11 = arith.cmpi ne, %10, %c0_i32_9 : i32
    scf.if %11 {
      %c0_10 = arith.constant 0 : index
      %c0_11 = arith.constant 0 : index
      %12 = vector.load %arg6[%c0_10, %c0_11] : memref<256x288xf32, #tpu.memory_space<vmem>>, vector<256x288xf32>
      %c0_12 = arith.constant 0 : index
      %c0_13 = arith.constant 0 : index
      %13 = vector.load %arg4[%c0_12, %c0_13] : memref<1x288xf32, #tpu.memory_space<vmem>>, vector<1x288xf32>
      %14 = vector.broadcast %13 : vector<1x288xf32> to vector<256x288xf32>
      %15 = arith.addf %12, %14 : vector<256x288xf32>
      %16 = arith.truncf %15 : vector<256x288xf32> to vector<256x288xbf16>
      %c0_14 = arith.constant 0 : index
      %c0_15 = arith.constant 0 : index
      %17 = vector.load %arg5[%c0_14, %c0_15] : memref<256x288xbf16, #tpu.memory_space<vmem>>, vector<256x288xbf16>
      tpu.vector_store %arg5[%c0_14, %c0_15], %16 {strides = array<i32>} : memref<256x288xbf16, #tpu.memory_space<vmem>>, vector<256x288xbf16>,
    } else {
    }
    return
  }
  func.func @transform_0(%arg0: i32, %arg1: i32) -> (i32, i32) {
    %c0_i32 = arith.constant 0 : i32
    return %arg0, %arg1 : i32, i32
  }
  func.func @transform_1(%arg0: i32, %arg1: i32) -> (i32, i32) {
    %c0_i32 = arith.constant 0 : i32
    %c0_i32_0 = arith.constant 0 : i32
    return %arg1, %c0_i32 : i32, i32
  }
  func.func @transform_2(%arg0: i32, %arg1: i32) -> (i32, i32) {
    %c0_i32 = arith.constant 0 : i32
    %c0_i32_0 = arith.constant 0 : i32
    %c0_i32_1 = arith.constant 0 : i32
    return %c0_i32, %c0_i32_0 : i32, i32
  }
  func.func @transform_3(%arg0: i32, %arg1: i32) -> (i32, i32) {
    %c0_i32 = arith.constant 0 : i32
    %c0_i32_0 = arith.constant 0 : i32
    return %arg0, %c0_i32 : i32, i32
  }
}

module attributes {stable_mosaic.version = 11 : i64} {
  func.func @_gap_kernel(%arg0: i32, %arg1: i32, %arg2: memref<1x256x64xbf16, #tpu.memory_space<vmem>>, %arg3: memref<1x1x64xf32, #tpu.memory_space<vmem>>) attributes {dimension_semantics = [#tpu.dimension_semantics<parallel>, #tpu.dimension_semantics<parallel>], iteration_bounds = array<i64: 2, 1>, scalar_prefetch = 0 : i64, scratch_operands = 0 : i64, tpu.core_type = #tpu.core_type<tc>, window_params = [{transform_indices = @transform_0, window_bounds = array<i64: 1, 256, 64>}, {transform_indices = @transform_1, window_bounds = array<i64: 1, 1, 64>}]} {
    %c0 = arith.constant 0 : index
    %c0_0 = arith.constant 0 : index
    %c0_1 = arith.constant 0 : index
    %0 = vector.load %arg2[%c0, %c0_0, %c0_1] : memref<1x256x64xbf16, #tpu.memory_space<vmem>>, vector<1x256x64xbf16>
    %1 = arith.extf %0 : vector<1x256x64xbf16> to vector<1x256x64xf32>
    %cst = arith.constant dense<0.000000e+00> : vector<1x64xf32>
    %2 = vector.multi_reduction <add>, %1, %cst [1] : vector<1x256x64xf32> to vector<1x64xf32>
    %3 = vector.shape_cast %2 : vector<1x64xf32> to vector<1x1x64xf32>
    %cst_2 = arith.constant 2.560000e+02 : f32
    %4 = vector.broadcast %cst_2 : f32 to vector<1x1x64xf32>
    %5 = arith.divf %3, %4 : vector<1x1x64xf32>
    %c0_3 = arith.constant 0 : index
    %c0_4 = arith.constant 0 : index
    %c0_5 = arith.constant 0 : index
    %6 = vector.load %arg3[%c0_3, %c0_4, %c0_5] : memref<1x1x64xf32, #tpu.memory_space<vmem>>, vector<1x1x64xf32>
    tpu.vector_store %arg3[%c0_3, %c0_4, %c0_5], %5 {strides = array<i32>} : memref<1x1x64xf32, #tpu.memory_space<vmem>>, vector<1x1x64xf32>,
    return
  }
  func.func @transform_0(%arg0: i32, %arg1: i32) -> (i32, i32, i32) {
    %c0_i32 = arith.constant 0 : i32
    %c0_i32_0 = arith.constant 0 : i32
    return %arg0, %c0_i32, %arg1 : i32, i32, i32
  }
  func.func @transform_1(%arg0: i32, %arg1: i32) -> (i32, i32, i32) {
    %c0_i32 = arith.constant 0 : i32
    %c0_i32_0 = arith.constant 0 : i32
    return %arg0, %c0_i32, %arg1 : i32, i32, i32
  }
}

module attributes {stable_mosaic.version = 11 : i64} {
  func.func @_matmul_bias_act_kernel(%arg0: i32, %arg1: i32, %arg2: memref<2x64xbf16, #tpu.memory_space<vmem>>, %arg3: memref<64x32xbf16, #tpu.memory_space<vmem>>, %arg4: memref<1x32xf32, #tpu.memory_space<vmem>>, %arg5: memref<2x32xf32, #tpu.memory_space<vmem>>, %arg6: memref<2x32xf32, #tpu.memory_space<vmem>>) attributes {dimension_semantics = [#tpu.dimension_semantics<parallel>, #tpu.dimension_semantics<arbitrary>], iteration_bounds = array<i64: 1, 1>, scalar_prefetch = 0 : i64, scratch_operands = 1 : i64, tpu.core_type = #tpu.core_type<tc>, window_params = [{transform_indices = @transform_0, window_bounds = array<i64: 2, 64>}, {transform_indices = @transform_1, window_bounds = array<i64: 64, 32>}, {pipeline_mode = #tpu.pipeline_mode<synchronous>, transform_indices = @transform_2, window_bounds = array<i64: 1, 32>}, {transform_indices = @transform_3, window_bounds = array<i64: 2, 32>}]} {
    %c0_i32 = arith.constant 0 : i32
    %0 = arith.cmpi eq, %arg1, %c0_i32 : i32
    %1 = arith.extui %0 : i1 to i32
    %c0_i32_0 = arith.constant 0 : i32
    %2 = arith.cmpi ne, %1, %c0_i32_0 : i32
    scf.if %2 {
      %cst_10 = arith.constant 0.000000e+00 : f32
      %12 = vector.broadcast %cst_10 : f32 to vector<2x32xf32>
      %c0_11 = arith.constant 0 : index
      %c0_12 = arith.constant 0 : index
      %13 = vector.load %arg6[%c0_11, %c0_12] : memref<2x32xf32, #tpu.memory_space<vmem>>, vector<2x32xf32>
      tpu.vector_store %arg6[%c0_11, %c0_12], %12 {strides = array<i32>} : memref<2x32xf32, #tpu.memory_space<vmem>>, vector<2x32xf32>,
    } else {
    }
    %c0 = arith.constant 0 : index
    %c0_1 = arith.constant 0 : index
    %3 = vector.load %arg6[%c0, %c0_1] : memref<2x32xf32, #tpu.memory_space<vmem>>, vector<2x32xf32>
    %c0_2 = arith.constant 0 : index
    %c0_3 = arith.constant 0 : index
    %4 = vector.load %arg2[%c0_2, %c0_3] : memref<2x64xbf16, #tpu.memory_space<vmem>>, vector<2x64xbf16>
    %c0_4 = arith.constant 0 : index
    %c0_5 = arith.constant 0 : index
    %5 = vector.load %arg3[%c0_4, %c0_5] : memref<64x32xbf16, #tpu.memory_space<vmem>>, vector<64x32xbf16>
    %cst = arith.constant dense<0.000000e+00> : vector<2x32xf32>
    %6 = tpu.matmul %4, %5, %cst {dimension_numbers = #tpu.dot_dimension_numbers<[1], [0], [0], [1], [0, 0, 1, 1], [], []>} : vector<2x64xbf16>, vector<64x32xbf16>, vector<2x32xf32> -> vector<2x32xf32>
    %7 = arith.addf %3, %6 : vector<2x32xf32>
    %c0_6 = arith.constant 0 : index
    %c0_7 = arith.constant 0 : index
    %8 = vector.load %arg6[%c0_6, %c0_7] : memref<2x32xf32, #tpu.memory_space<vmem>>, vector<2x32xf32>
    tpu.vector_store %arg6[%c0_6, %c0_7], %7 {strides = array<i32>} : memref<2x32xf32, #tpu.memory_space<vmem>>, vector<2x32xf32>,
    %c0_i32_8 = arith.constant 0 : i32
    %9 = arith.cmpi eq, %arg1, %c0_i32_8 : i32
    %10 = arith.extui %9 : i1 to i32
    %c0_i32_9 = arith.constant 0 : i32
    %11 = arith.cmpi ne, %10, %c0_i32_9 : i32
    scf.if %11 {
      %c0_10 = arith.constant 0 : index
      %c0_11 = arith.constant 0 : index
      %12 = vector.load %arg6[%c0_10, %c0_11] : memref<2x32xf32, #tpu.memory_space<vmem>>, vector<2x32xf32>
      %c0_12 = arith.constant 0 : index
      %c0_13 = arith.constant 0 : index
      %13 = vector.load %arg4[%c0_12, %c0_13] : memref<1x32xf32, #tpu.memory_space<vmem>>, vector<1x32xf32>
      %14 = vector.broadcast %13 : vector<1x32xf32> to vector<2x32xf32>
      %15 = arith.addf %12, %14 : vector<2x32xf32>
      %cst_14 = arith.constant 0.000000e+00 : f32
      %16 = vector.broadcast %cst_14 : f32 to vector<2x32xf32>
      %17 = arith.maximumf %15, %16 : vector<2x32xf32>
      %c0_15 = arith.constant 0 : index
      %c0_16 = arith.constant 0 : index
      %18 = vector.load %arg5[%c0_15, %c0_16] : memref<2x32xf32, #tpu.memory_space<vmem>>, vector<2x32xf32>
      tpu.vector_store %arg5[%c0_15, %c0_16], %17 {strides = array<i32>} : memref<2x32xf32, #tpu.memory_space<vmem>>, vector<2x32xf32>,
    } else {
    }
    return
  }
  func.func @transform_0(%arg0: i32, %arg1: i32) -> (i32, i32) {
    %c0_i32 = arith.constant 0 : i32
    return %arg0, %arg1 : i32, i32
  }
  func.func @transform_1(%arg0: i32, %arg1: i32) -> (i32, i32) {
    %c0_i32 = arith.constant 0 : i32
    %c0_i32_0 = arith.constant 0 : i32
    return %arg1, %c0_i32 : i32, i32
  }
  func.func @transform_2(%arg0: i32, %arg1: i32) -> (i32, i32) {
    %c0_i32 = arith.constant 0 : i32
    %c0_i32_0 = arith.constant 0 : i32
    %c0_i32_1 = arith.constant 0 : i32
    return %c0_i32, %c0_i32_0 : i32, i32
  }
  func.func @transform_3(%arg0: i32, %arg1: i32) -> (i32, i32) {
    %c0_i32 = arith.constant 0 : i32
    %c0_i32_0 = arith.constant 0 : i32
    return %arg0, %c0_i32 : i32, i32
  }
}

module attributes {stable_mosaic.version = 11 : i64} {
  func.func @_matmul_bias_act_kernel(%arg0: i32, %arg1: i32, %arg2: memref<256x64xbf16, #tpu.memory_space<vmem>>, %arg3: memref<64x32xbf16, #tpu.memory_space<vmem>>, %arg4: memref<1x32xf32, #tpu.memory_space<vmem>>, %arg5: memref<256x32xbf16, #tpu.memory_space<vmem>>, %arg6: memref<256x32xf32, #tpu.memory_space<vmem>>) attributes {dimension_semantics = [#tpu.dimension_semantics<parallel>, #tpu.dimension_semantics<arbitrary>], iteration_bounds = array<i64: 2, 1>, scalar_prefetch = 0 : i64, scratch_operands = 1 : i64, tpu.core_type = #tpu.core_type<tc>, window_params = [{transform_indices = @transform_0, window_bounds = array<i64: 256, 64>}, {transform_indices = @transform_1, window_bounds = array<i64: 64, 32>}, {pipeline_mode = #tpu.pipeline_mode<synchronous>, transform_indices = @transform_2, window_bounds = array<i64: 1, 32>}, {transform_indices = @transform_3, window_bounds = array<i64: 256, 32>}]} {
    %c0_i32 = arith.constant 0 : i32
    %0 = arith.cmpi eq, %arg1, %c0_i32 : i32
    %1 = arith.extui %0 : i1 to i32
    %c0_i32_0 = arith.constant 0 : i32
    %2 = arith.cmpi ne, %1, %c0_i32_0 : i32
    scf.if %2 {
      %cst_10 = arith.constant 0.000000e+00 : f32
      %12 = vector.broadcast %cst_10 : f32 to vector<256x32xf32>
      %c0_11 = arith.constant 0 : index
      %c0_12 = arith.constant 0 : index
      %13 = vector.load %arg6[%c0_11, %c0_12] : memref<256x32xf32, #tpu.memory_space<vmem>>, vector<256x32xf32>
      tpu.vector_store %arg6[%c0_11, %c0_12], %12 {strides = array<i32>} : memref<256x32xf32, #tpu.memory_space<vmem>>, vector<256x32xf32>,
    } else {
    }
    %c0 = arith.constant 0 : index
    %c0_1 = arith.constant 0 : index
    %3 = vector.load %arg6[%c0, %c0_1] : memref<256x32xf32, #tpu.memory_space<vmem>>, vector<256x32xf32>
    %c0_2 = arith.constant 0 : index
    %c0_3 = arith.constant 0 : index
    %4 = vector.load %arg2[%c0_2, %c0_3] : memref<256x64xbf16, #tpu.memory_space<vmem>>, vector<256x64xbf16>
    %c0_4 = arith.constant 0 : index
    %c0_5 = arith.constant 0 : index
    %5 = vector.load %arg3[%c0_4, %c0_5] : memref<64x32xbf16, #tpu.memory_space<vmem>>, vector<64x32xbf16>
    %cst = arith.constant dense<0.000000e+00> : vector<256x32xf32>
    %6 = tpu.matmul %4, %5, %cst {dimension_numbers = #tpu.dot_dimension_numbers<[1], [0], [0], [1], [0, 0, 1, 1], [], []>} : vector<256x64xbf16>, vector<64x32xbf16>, vector<256x32xf32> -> vector<256x32xf32>
    %7 = arith.addf %3, %6 : vector<256x32xf32>
    %c0_6 = arith.constant 0 : index
    %c0_7 = arith.constant 0 : index
    %8 = vector.load %arg6[%c0_6, %c0_7] : memref<256x32xf32, #tpu.memory_space<vmem>>, vector<256x32xf32>
    tpu.vector_store %arg6[%c0_6, %c0_7], %7 {strides = array<i32>} : memref<256x32xf32, #tpu.memory_space<vmem>>, vector<256x32xf32>,
    %c0_i32_8 = arith.constant 0 : i32
    %9 = arith.cmpi eq, %arg1, %c0_i32_8 : i32
    %10 = arith.extui %9 : i1 to i32
    %c0_i32_9 = arith.constant 0 : i32
    %11 = arith.cmpi ne, %10, %c0_i32_9 : i32
    scf.if %11 {
      %c0_10 = arith.constant 0 : index
      %c0_11 = arith.constant 0 : index
      %12 = vector.load %arg6[%c0_10, %c0_11] : memref<256x32xf32, #tpu.memory_space<vmem>>, vector<256x32xf32>
      %c0_12 = arith.constant 0 : index
      %c0_13 = arith.constant 0 : index
      %13 = vector.load %arg4[%c0_12, %c0_13] : memref<1x32xf32, #tpu.memory_space<vmem>>, vector<1x32xf32>
      %14 = vector.broadcast %13 : vector<1x32xf32> to vector<256x32xf32>
      %15 = arith.addf %12, %14 : vector<256x32xf32>
      %cst_14 = arith.constant 0.000000e+00 : f32
      %16 = vector.broadcast %cst_14 : f32 to vector<256x32xf32>
      %17 = arith.maximumf %15, %16 : vector<256x32xf32>
      %18 = arith.truncf %17 : vector<256x32xf32> to vector<256x32xbf16>
      %c0_15 = arith.constant 0 : index
      %c0_16 = arith.constant 0 : index
      %19 = vector.load %arg5[%c0_15, %c0_16] : memref<256x32xbf16, #tpu.memory_space<vmem>>, vector<256x32xbf16>
      tpu.vector_store %arg5[%c0_15, %c0_16], %18 {strides = array<i32>} : memref<256x32xbf16, #tpu.memory_space<vmem>>, vector<256x32xbf16>,
    } else {
    }
    return
  }
  func.func @transform_0(%arg0: i32, %arg1: i32) -> (i32, i32) {
    %c0_i32 = arith.constant 0 : i32
    return %arg0, %arg1 : i32, i32
  }
  func.func @transform_1(%arg0: i32, %arg1: i32) -> (i32, i32) {
    %c0_i32 = arith.constant 0 : i32
    %c0_i32_0 = arith.constant 0 : i32
    return %arg1, %c0_i32 : i32, i32
  }
  func.func @transform_2(%arg0: i32, %arg1: i32) -> (i32, i32) {
    %c0_i32 = arith.constant 0 : i32
    %c0_i32_0 = arith.constant 0 : i32
    %c0_i32_1 = arith.constant 0 : i32
    return %c0_i32, %c0_i32_0 : i32, i32
  }
  func.func @transform_3(%arg0: i32, %arg1: i32) -> (i32, i32) {
    %c0_i32 = arith.constant 0 : i32
    %c0_i32_0 = arith.constant 0 : i32
    return %arg0, %c0_i32 : i32, i32
  }
}

module attributes {stable_mosaic.version = 11 : i64} {
  func.func @_concat_conv_kernel(%arg0: i32, %arg1: i32, %arg2: memref<1x256x32xbf16, #tpu.memory_space<vmem>>, %arg3: memref<1x256x32xbf16, #tpu.memory_space<vmem>>, %arg4: memref<1x256x32xbf16, #tpu.memory_space<vmem>>, %arg5: memref<1x256x32xbf16, #tpu.memory_space<vmem>>, %arg6: memref<32x32xbf16, #tpu.memory_space<vmem>>, %arg7: memref<32x32xbf16, #tpu.memory_space<vmem>>, %arg8: memref<32x32xbf16, #tpu.memory_space<vmem>>, %arg9: memref<32x32xbf16, #tpu.memory_space<vmem>>, %arg10: memref<1x1x32xf32, #tpu.memory_space<vmem>>, %arg11: memref<1x256x32xf32, #tpu.memory_space<vmem>>) attributes {dimension_semantics = [#tpu.dimension_semantics<parallel>, #tpu.dimension_semantics<parallel>], iteration_bounds = array<i64: 2, 1>, scalar_prefetch = 0 : i64, scratch_operands = 0 : i64, tpu.core_type = #tpu.core_type<tc>, window_params = [{transform_indices = @transform_0, window_bounds = array<i64: 1, 256, 32>}, {transform_indices = @transform_1, window_bounds = array<i64: 1, 256, 32>}, {transform_indices = @transform_2, window_bounds = array<i64: 1, 256, 32>}, {transform_indices = @transform_3, window_bounds = array<i64: 1, 256, 32>}, {pipeline_mode = #tpu.pipeline_mode<synchronous>, transform_indices = @transform_4, window_bounds = array<i64: 32, 32>}, {pipeline_mode = #tpu.pipeline_mode<synchronous>, transform_indices = @transform_5, window_bounds = array<i64: 32, 32>}, {pipeline_mode = #tpu.pipeline_mode<synchronous>, transform_indices = @transform_6, window_bounds = array<i64: 32, 32>}, {pipeline_mode = #tpu.pipeline_mode<synchronous>, transform_indices = @transform_7, window_bounds = array<i64: 32, 32>}, {transform_indices = @transform_8, window_bounds = array<i64: 1, 1, 32>}, {transform_indices = @transform_9, window_bounds = array<i64: 1, 256, 32>}]} {
    %c0 = arith.constant 0 : index
    %c0_0 = arith.constant 0 : index
    %c0_1 = arith.constant 0 : index
    %0 = vector.load %arg2[%c0, %c0_0, %c0_1] : memref<1x256x32xbf16, #tpu.memory_space<vmem>>, vector<1x256x32xbf16>
    %1 = vector.shape_cast %0 : vector<1x256x32xbf16> to vector<256x32xbf16>
    %c0_2 = arith.constant 0 : index
    %c0_3 = arith.constant 0 : index
    %2 = vector.load %arg6[%c0_2, %c0_3] : memref<32x32xbf16, #tpu.memory_space<vmem>>, vector<32x32xbf16>
    %cst = arith.constant dense<0.000000e+00> : vector<256x32xf32>
    %3 = tpu.matmul %1, %2, %cst {dimension_numbers = #tpu.dot_dimension_numbers<[1], [0], [0], [1], [0, 0, 1, 1], [], []>} : vector<256x32xbf16>, vector<32x32xbf16>, vector<256x32xf32> -> vector<256x32xf32>
    %c0_4 = arith.constant 0 : index
    %c0_5 = arith.constant 0 : index
    %c0_6 = arith.constant 0 : index
    %4 = vector.load %arg3[%c0_4, %c0_5, %c0_6] : memref<1x256x32xbf16, #tpu.memory_space<vmem>>, vector<1x256x32xbf16>
    %5 = vector.shape_cast %4 : vector<1x256x32xbf16> to vector<256x32xbf16>
    %c0_7 = arith.constant 0 : index
    %c0_8 = arith.constant 0 : index
    %6 = vector.load %arg7[%c0_7, %c0_8] : memref<32x32xbf16, #tpu.memory_space<vmem>>, vector<32x32xbf16>
    %cst_9 = arith.constant dense<0.000000e+00> : vector<256x32xf32>
    %7 = tpu.matmul %5, %6, %cst_9 {dimension_numbers = #tpu.dot_dimension_numbers<[1], [0], [0], [1], [0, 0, 1, 1], [], []>} : vector<256x32xbf16>, vector<32x32xbf16>, vector<256x32xf32> -> vector<256x32xf32>
    %8 = arith.addf %3, %7 : vector<256x32xf32>
    %c0_10 = arith.constant 0 : index
    %c0_11 = arith.constant 0 : index
    %c0_12 = arith.constant 0 : index
    %9 = vector.load %arg4[%c0_10, %c0_11, %c0_12] : memref<1x256x32xbf16, #tpu.memory_space<vmem>>, vector<1x256x32xbf16>
    %10 = vector.shape_cast %9 : vector<1x256x32xbf16> to vector<256x32xbf16>
    %c0_13 = arith.constant 0 : index
    %c0_14 = arith.constant 0 : index
    %11 = vector.load %arg8[%c0_13, %c0_14] : memref<32x32xbf16, #tpu.memory_space<vmem>>, vector<32x32xbf16>
    %cst_15 = arith.constant dense<0.000000e+00> : vector<256x32xf32>
    %12 = tpu.matmul %10, %11, %cst_15 {dimension_numbers = #tpu.dot_dimension_numbers<[1], [0], [0], [1], [0, 0, 1, 1], [], []>} : vector<256x32xbf16>, vector<32x32xbf16>, vector<256x32xf32> -> vector<256x32xf32>
    %13 = arith.addf %8, %12 : vector<256x32xf32>
    %c0_16 = arith.constant 0 : index
    %c0_17 = arith.constant 0 : index
    %c0_18 = arith.constant 0 : index
    %14 = vector.load %arg5[%c0_16, %c0_17, %c0_18] : memref<1x256x32xbf16, #tpu.memory_space<vmem>>, vector<1x256x32xbf16>
    %15 = vector.shape_cast %14 : vector<1x256x32xbf16> to vector<256x32xbf16>
    %c0_19 = arith.constant 0 : index
    %c0_20 = arith.constant 0 : index
    %16 = vector.load %arg9[%c0_19, %c0_20] : memref<32x32xbf16, #tpu.memory_space<vmem>>, vector<32x32xbf16>
    %cst_21 = arith.constant dense<0.000000e+00> : vector<256x32xf32>
    %17 = tpu.matmul %15, %16, %cst_21 {dimension_numbers = #tpu.dot_dimension_numbers<[1], [0], [0], [1], [0, 0, 1, 1], [], []>} : vector<256x32xbf16>, vector<32x32xbf16>, vector<256x32xf32> -> vector<256x32xf32>
    %18 = arith.addf %13, %17 : vector<256x32xf32>
    %c0_22 = arith.constant 0 : index
    %c0_23 = arith.constant 0 : index
    %c0_24 = arith.constant 0 : index
    %19 = vector.load %arg10[%c0_22, %c0_23, %c0_24] : memref<1x1x32xf32, #tpu.memory_space<vmem>>, vector<1x1x32xf32>
    %20 = vector.shape_cast %19 : vector<1x1x32xf32> to vector<1x32xf32>
    %21 = vector.broadcast %20 : vector<1x32xf32> to vector<256x32xf32>
    %22 = arith.addf %18, %21 : vector<256x32xf32>
    %cst_25 = arith.constant 0.000000e+00 : f32
    %23 = vector.broadcast %cst_25 : f32 to vector<256x32xf32>
    %24 = arith.maximumf %22, %23 : vector<256x32xf32>
    %c0_26 = arith.constant 0 : index
    %c0_27 = arith.constant 0 : index
    %c0_28 = arith.constant 0 : index
    %25 = vector.load %arg11[%c0_26, %c0_27, %c0_28] : memref<1x256x32xf32, #tpu.memory_space<vmem>>, vector<1x256x32xf32>
    %26 = vector.shape_cast %25 : vector<1x256x32xf32> to vector<256x32xf32>
    %27 = vector.shape_cast %24 : vector<256x32xf32> to vector<1x256x32xf32>
    tpu.vector_store %arg11[%c0_26, %c0_27, %c0_28], %27 {strides = array<i32>} : memref<1x256x32xf32, #tpu.memory_space<vmem>>, vector<1x256x32xf32>,
    return
  }
  func.func @transform_0(%arg0: i32, %arg1: i32) -> (i32, i32, i32) {
    %c0_i32 = arith.constant 0 : i32
    %c0_i32_0 = arith.constant 0 : i32
    return %arg0, %arg1, %c0_i32 : i32, i32, i32
  }
  func.func @transform_1(%arg0: i32, %arg1: i32) -> (i32, i32, i32) {
    %c0_i32 = arith.constant 0 : i32
    %c0_i32_0 = arith.constant 0 : i32
    return %arg0, %arg1, %c0_i32 : i32, i32, i32
  }
  func.func @transform_2(%arg0: i32, %arg1: i32) -> (i32, i32, i32) {
    %c0_i32 = arith.constant 0 : i32
    %c0_i32_0 = arith.constant 0 : i32
    return %arg0, %arg1, %c0_i32 : i32, i32, i32
  }
  func.func @transform_3(%arg0: i32, %arg1: i32) -> (i32, i32, i32) {
    %c0_i32 = arith.constant 0 : i32
    %c0_i32_0 = arith.constant 0 : i32
    return %arg0, %arg1, %c0_i32 : i32, i32, i32
  }
  func.func @transform_4(%arg0: i32, %arg1: i32) -> (i32, i32) {
    %c0_i32 = arith.constant 0 : i32
    %c0_i32_0 = arith.constant 0 : i32
    %c0_i32_1 = arith.constant 0 : i32
    return %c0_i32, %c0_i32_0 : i32, i32
  }
  func.func @transform_5(%arg0: i32, %arg1: i32) -> (i32, i32) {
    %c0_i32 = arith.constant 0 : i32
    %c0_i32_0 = arith.constant 0 : i32
    %c0_i32_1 = arith.constant 0 : i32
    return %c0_i32, %c0_i32_0 : i32, i32
  }
  func.func @transform_6(%arg0: i32, %arg1: i32) -> (i32, i32) {
    %c0_i32 = arith.constant 0 : i32
    %c0_i32_0 = arith.constant 0 : i32
    %c0_i32_1 = arith.constant 0 : i32
    return %c0_i32, %c0_i32_0 : i32, i32
  }
  func.func @transform_7(%arg0: i32, %arg1: i32) -> (i32, i32) {
    %c0_i32 = arith.constant 0 : i32
    %c0_i32_0 = arith.constant 0 : i32
    %c0_i32_1 = arith.constant 0 : i32
    return %c0_i32, %c0_i32_0 : i32, i32
  }
  func.func @transform_8(%arg0: i32, %arg1: i32) -> (i32, i32, i32) {
    %c0_i32 = arith.constant 0 : i32
    %c0_i32_0 = arith.constant 0 : i32
    %c0_i32_1 = arith.constant 0 : i32
    return %arg0, %c0_i32, %c0_i32_0 : i32, i32, i32
  }
  func.func @transform_9(%arg0: i32, %arg1: i32) -> (i32, i32, i32) {
    %c0_i32 = arith.constant 0 : i32
    %c0_i32_0 = arith.constant 0 : i32
    return %arg0, %arg1, %c0_i32 : i32, i32, i32
  }
}

</mosaic_0001>

<bundles_post_ra>
// kernel: aspp_forward.9
= control target key start
LH: loop header
LB: loop body
LE: loop exit
PB: predicated region body
PF: predicated region fallthrough
CT: control target
= control target key end

     0   :  { %s1823_s12 = smov 0   ;;  %s1825_s13 = smov 0   ;;  %s2312_s0 = inlined_call_operand.vmem [shape: bf16[512,64], index: 0, kind: input, shape index: {}]   ;;  %s2313_s1 = inlined_call_operand.vmem [shape: bf16[64,288], index: 1, kind: input, shape index: {}]   ;;  %s2314_s2 = inlined_call_operand.vmem [shape: f32[1,288], index: 2, kind: input, shape index: {}]   ;;  %s2315_s3 = inlined_call_operand.vmem [shape: bf16[512,288], index: 3, kind: output, shape index: {}]  }
   0x1   :  { %s1827_s14 = smov 0  }
   0x2 LB: > { %s25_s15 = sadd.s32 1, %s1796_s13  ;;  %p1545_p0 = scmp.ge.s32.totalorder %s1800_s14, 1  ;;  %s1800_s14 = sphi %s1827_s14, %s13_s14   ;;  %s1796_s13 = sphi %s1825_s13, %s2317_s13   ;;  %s1792_s12 = sphi %s1823_s12, %s2316_s12  }
   0x3   : > { %p27_p1 = scmp.ge.s32.totalorder %s25_s15, 2  ;;  %p167_p2 = scmp.lt.s32.totalorder %s1800_s14, 3 }
   0x5   : > { %s2319_s15 = smov (%p27_p1, %s25_s15), 0  ;;  %p168_p3 = pnand %p1545_p0, %p167_p2 }
   0x6   : > { %s1546_s10 = sshll.u32 (!%p168_p3), %s1792_s12, 5 }
   0x7   : > { %171 = sbr.rel (%p168_p3) target bundleno = 363 (0x16b), region = 32  ;;  %p202_p4 = scmp.lt.s32.totalorder (!%p168_p3), %s1546_s10, 63 }
   0xc   : > { %v1652_v0 = vld [vmem:[%s2313_s1 + $0x48] sm:$0xf]  ;;  %v1738_v1 = vld [vmem:[%s2313_s1 + $0x50] sm:$0xf0]  ;;  %v1737_v2 = vld [vmem:[%s2313_s1 + $0x4c] sm:$0xf] }
   0xd   : > { %v1653_v3 = vor.u32 %v1738_v1, %v1652_v0  ;;  %v1654_v4 = vld [vmem:[%s2313_s1 + $0x54] sm:$0xf0]  ;;  %v1660_v5 = vld [vmem:[%s2313_s1 + $0x50] sm:$0xf]  ;;  %v1739_v6 = vld [vmem:[%s2313_s1 + $0x58] sm:$0xf0] }
   0xe   : > { %v1657_v7 = vor.u32 %v1737_v2, %v1654_v4  ;;  %v1661_v8 = vor.u32 %v1739_v6, %v1660_v5  ;;  %v1640_v9 = vld [vmem:[%s2313_s1 + $0x30] sm:$0xf]  ;;  %v1735_v10 = vld [vmem:[%s2313_s1 + $0x38] sm:$0xf0]  ;;  %v1734_v11 = vld [vmem:[%s2313_s1 + $0x34] sm:$0xf] }
   0xf   : > { %667 = vmatpush.bf16.msra.mxu0 %v1653_v3  ;;  %1740 = vmatpush.bf16.msra.mxu3 %v1653_v3  ;;  %v1641_v12 = vor.u32 %v1735_v10, %v1640_v9  ;;  %v1642_v13 = vld [vmem:[%s2313_s1 + $0x3c] sm:$0xf0]  ;;  %v1648_v14 = vld [vmem:[%s2313_s1 + $0x38] sm:$0xf]  ;;  %v1736_v15 = vld [vmem:[%s2313_s1 + $0x40] sm:$0xf0] }
  0x10   : > { %756 = vmatpush.bf16.msra.mxu1 %v1657_v7  ;;  %845 = vmatpush.bf16.msra.mxu2 %v1661_v8  ;;  %v1645_v16 = vor.u32 %v1734_v11, %v1642_v13  ;;  %v1649_v17 = vor.u32 %v1736_v15, %v1648_v14  ;;  %v1628_v18 = vld [vmem:[%s2313_s1 + $0x18] sm:$0xf]  ;;  %v1732_v19 = vld [vmem:[%s2313_s1 + $0x20] sm:$0xf0]  ;;  %v1731_v20 = vld [vmem:[%s2313_s1 + $0x1c] sm:$0xf] }
  0x11   : > { %v1630_v21 = vld [vmem:[%s2313_s1 + $0x24] sm:$0xf0]  ;;  %v1636_v22 = vld [vmem:[%s2313_s1 + $0x20] sm:$0xf]  ;;  %v1733_v23 = vld [vmem:[%s2313_s1 + $0x28] sm:$0xf0]  ;;  %v1629_v24 = vor.u32 %v1732_v19, %v1628_v18 }
  0x12   : > { %v1616_v25 = vld [vmem:[%s2313_s1] sm:$0xf]  ;;  %v1729_v26 = vld [vmem:[%s2313_s1 + $0x8] sm:$0xf0]  ;;  %v1633_v27 = vor.u32 %v1731_v20, %v1630_v21  ;;  %v1637_v28 = vor.u32 %v1733_v23, %v1636_v22  ;;  %v1728_v29 = vld [vmem:[%s2313_s1 + $0x4] sm:$0xf] }
  0x13   : > { %668 = vmatpush.bf16.msra.mxu0 %v1641_v12  ;;  %1741 = vmatpush.bf16.msra.mxu3 %v1641_v12  ;;  %v1618_v30 = vld [vmem:[%s2313_s1 + $0xc] sm:$0xf0]  ;;  %v1624_v31 = vld [vmem:[%s2313_s1 + $0x8] sm:$0xf]  ;;  %v1730_v32 = vld [vmem:[%s2313_s1 + $0x10] sm:$0xf0]  ;;  %v1617_v33 = vor.u32 %v1729_v26, %v1616_v25 }
  0x14   : > { %757 = vmatpush.bf16.msra.mxu1 %v1645_v16  ;;  %846 = vmatpush.bf16.msra.mxu2 %v1649_v17  ;;  %s2321_s10 = smov (!%p202_p4, %s1546_s10), 63  ;;  %v1621_v34 = vor.u32 %v1728_v29, %v1618_v30  ;;  %v1625_v35 = vor.u32 %v1730_v32, %v1624_v31  ;;  %vm614_vm0 = vcmask 523264   ;;  %vm231_vm1 = vcmask 261120   ;;  %v1222_v49 = vld [vmem:[%s2314_s2] sm:$0x7] }
  0x15   : > { %s1547_s12 = sshll.u32 %s2321_s10, 2  ;;  %v1802_v47 = vmov 0.0   ;;  %v2019_v51 = vperm.slane %v1222_v49, 1  ;;  %s1752_s24 = smul.u32 12, %s2321_s10  ;;  %v2023_v53 = vperm.slane %v1222_v49, 0  ;;  %v2043_v3 = vperm.slane %v1222_v49, 2 }
  0x16   : > { %s1922_s21 = scalar_lea.vmem %s2312_s0, %s1547_s12  ;;  %232 = vst.msk [vmem:[#allocation2 + $0x10] sm:$0xff] %vm231_vm1, %v1802_v47  ;;  %vm1391_vm2 = vcmask 257024  }
  0x17   : > { %669 = vmatpush.bf16.msra.mxu0 %v1629_v24  ;;  %1742 = vmatpush.bf16.msra.mxu3 %v1629_v24  ;;  %v1712_v36 = vld [vmem:[%s1922_s21] sm:$0xff]  ;;  %v1934_v38 = vld [vmem:[%s1922_s21 + $0x68] sm:$0xff]  ;;  %v1943_v40 = vld [vmem:[%s1922_s21 + $0x70] sm:$0xff]  ;;  %235 = vst.msk [vmem:[#allocation2 + $0x28] sm:$0xff] %vm231_vm1, %v1802_v47  ;;  %s2035_s27 = scalar_lea.vmem %s2315_s3, %s1752_s24 }
  0x18   : > { %758 = vmatpush.bf16.msra.mxu1 %v1633_v27  ;;  %847 = vmatpush.bf16.msra.mxu2 %v1637_v28  ;;  %v1926_v37 = vld [vmem:[%s1922_s21 + $0x60] sm:$0xff]  ;;  %v1713_v39 = vld [vmem:[%s1922_s21 + $0x8] sm:$0xff]  ;;  %v1714_v41 = vld [vmem:[%s1922_s21 + $0x10] sm:$0xff]  ;;  %238 = vst.msk [vmem:[#allocation2 + $0x40] sm:$0xff] %vm231_vm1, %v1802_v47 }
  0x19   : > { %v1952_v42 = vld [vmem:[%s1922_s21 + $0x78] sm:$0xff]  ;;  %v1716_v44 = vld [vmem:[%s1922_s21 + $0x20] sm:$0xff]  ;;  %v1717_v45 = vld [vmem:[%s1922_s21 + $0x28] sm:$0xff]  ;;  %241 = vst.msk [vmem:[#allocation2 + $0x58] sm:$0xff] %vm231_vm1, %v1802_v47 }
  0x1a   : > { %v1715_v43 = vld [vmem:[%s1922_s21 + $0x18] sm:$0xff]  ;;  %v1718_v46 = vld [vmem:[%s1922_s21 + $0x30] sm:$0xff]  ;;  %244 = vst.msk [vmem:[#allocation2 + $0x70] sm:$0xff] %vm231_vm1, %v1802_v47  ;;  %v1720_v52 = vld [vmem:[%s1922_s21 + $0x40] sm:$0xff] }
  0x1b   : > { %670 = vmatpush.bf16.msra.mxu0 %v1617_v33  ;;  %1743 = vmatpush.bf16.msra.mxu3 %v1617_v33  ;;  %247 = vst.msk [vmem:[#allocation2 + $0x88] sm:$0xff] %vm231_vm1, %v1802_v47  ;;  %v1719_v48 = vld [vmem:[%s1922_s21 + $0x38] sm:$0xff]  ;;  %v1721_v9 = vld [vmem:[%s1922_s21 + $0x48] sm:$0xff] }
  0x1c   : > { %759 = vmatpush.bf16.msra.mxu1 %v1621_v34  ;;  %848 = vmatpush.bf16.msra.mxu2 %v1625_v35  ;;  %250 = vst.msk [vmem:[#allocation2 + $0xa0] sm:$0xff] %vm231_vm1, %v1802_v47 }
  0x1d   : > { %253 = vst.msk [vmem:[#allocation2 + $0xb8] sm:$0xff] %vm231_vm1, %v1802_v47  ;;  %v328_v57 = vld [vmem:[#allocation2 + $0x10] sm:$0xff] }
  0x1e   : > { %1662 = vmatmul.msk.bf16.vlgmr.msra.gmra.mxu0 %vm614_vm0, %v1712_v36  ;;  %1674 = vmatmul.msk.bf16.vlgmr.msra.gmra.mxu3 %vm614_vm0, %v1926_v37  ;;  %256 = vst.msk [vmem:[#allocation2 + $0xd0] sm:$0xff] %vm231_vm1, %v1802_v47  ;;  %v331_v2 = vld [vmem:[#allocation2 + $0x28] sm:$0xff] }
  0x1f   : > { %1744 = vmatpush.bf16.msrb.mxu3 %v1657_v7  ;;  %1678 = vmatmul.msk.bf16.vlgmr.msra.gmra.mxu1 %vm614_vm0, %v1712_v36  ;;  %259 = vst.msk [vmem:[#allocation2 + $0xe8] sm:$0xff] %vm231_vm1, %v1802_v47 }
  0x20   : > { %1694 = vmatmul.msk.bf16.vlgmr.msra.gmra.mxu2 %vm614_vm0, %v1712_v36  ;;  %262 = vst.msk [vmem:[#allocation2 + $0x100] sm:$0xff] %vm231_vm1, %v1802_v47 }
  0x21   : > { %265 = vst.msk [vmem:[#allocation2 + $0x118] sm:$0xff] %vm231_vm1, %v1802_v47 }
  0x22   : > { %268 = vst.msk [vmem:[#allocation2 + $0x130] sm:$0xff] %vm231_vm1, %v1802_v47 }
  0x23   : > { %1745 = vmatpush.bf16.msrb.mxu3 %v1645_v16  ;;  %271 = vst.msk [vmem:[#allocation2 + $0x148] sm:$0xff] %vm231_vm1, %v1802_v47  ;;  %v334_v16 = vld [vmem:[#allocation2 + $0x40] sm:$0xff] }
  0x24   : > { %274 = vst.msk [vmem:[#allocation2 + $0x160] sm:$0xff] %vm231_vm1, %v1802_v47 }
  0x25   : > { %277 = vst.msk [vmem:[#allocation2 + $0x178] sm:$0xff] %vm231_vm1, %v1802_v47 }
  0x26   : > { %280 = vst.msk [vmem:[#allocation2 + $0x190] sm:$0xff] %vm231_vm1, %v1802_v47 }
  0x27   : > { %1746 = vmatpush.bf16.msrb.mxu3 %v1633_v27  ;;  %283 = vst.msk [vmem:[#allocation2 + $0x1a8] sm:$0xff] %vm231_vm1, %v1802_v47 }
  0x28   : > { %286 = vst.msk [vmem:[#allocation2 + $0x1c0] sm:$0xff] %vm231_vm1, %v1802_v47 }
  0x29   : > { %289 = vst.msk [vmem:[#allocation2 + $0x1d8] sm:$0xff] %vm231_vm1, %v1802_v47 }
  0x2a   : > { %292 = vst.msk [vmem:[#allocation2 + $0x1f0] sm:$0xff] %vm231_vm1, %v1802_v47 }
  0x2b   : > { %1747 = vmatpush.bf16.msrb.mxu3 %v1621_v34  ;;  %295 = vst.msk [vmem:[#allocation2 + $0x208] sm:$0xff] %vm231_vm1, %v1802_v47  ;;  %v1722_v34 = vld [vmem:[%s1922_s21 + $0x50] sm:$0xff] }
  0x2c   : > { %298 = vst.msk [vmem:[#allocation2 + $0x220] sm:$0xff] %vm231_vm1, %v1802_v47 }
  0x2d   : > { %301 = vst.msk [vmem:[#allocation2 + $0x238] sm:$0xff] %vm231_vm1, %v1802_v47 }
  0x2e   : > { %1663 = vmatmul.msk.bf16.gmra.mxu0 %vm614_vm0, %v1713_v39  ;;  %1675 = vmatmul.msk.bf16.gmra.mxu3 %vm614_vm0, %v1934_v38  ;;  %304 = vst.msk [vmem:[#allocation2 + $0x250] sm:$0xff] %vm231_vm1, %v1802_v47 }
  0x2f   : > { %1748 = vmatpush.bf16.msra.mxu3 %v1661_v8  ;;  %1679 = vmatmul.msk.bf16.gmra.mxu1 %vm614_vm0, %v1713_v39  ;;  %307 = vst.msk [vmem:[#allocation2 + $0x268] sm:$0xff] %vm231_vm1, %v1802_v47 }
  0x30   : > { %1695 = vmatmul.msk.bf16.gmra.mxu2 %vm614_vm0, %v1713_v39  ;;  %310 = vst.msk [vmem:[#allocation2 + $0x280] sm:$0xff] %vm231_vm1, %v1802_v47 }
  0x31   : > { %313 = vst.msk [vmem:[#allocation2 + $0x298] sm:$0xff] %vm231_vm1, %v1802_v47 }
  0x32   : > { %316 = vst.msk [vmem:[#allocation2 + $0x2b0] sm:$0xff] %vm231_vm1, %v1802_v47 }
  0x33   : > { %1749 = vmatpush.bf16.msra.mxu3 %v1649_v17  ;;  %319 = vst.msk [vmem:[#allocation2 + $0x2c8] sm:$0xff] %vm231_vm1, %v1802_v47 }
  0x34   : > { %322 = vst.msk [vmem:[#allocation2 + $0x2e0] sm:$0xff] %vm231_vm1, %v1802_v47 }
  0x35   : > { %325 = vst.msk [vmem:[#allocation2 + $0x2f8] sm:$0xff] %vm231_vm1, %v1802_v47 }
  0x37   : > { %1750 = vmatpush.bf16.msra.mxu3 %v1637_v28  ;;  %v337_v28 = vld [vmem:[#allocation2 + $0x58] sm:$0xff] }
  0x3b   : > { %1751 = vmatpush.bf16.msra.mxu3 %v1625_v35 }
  0x3e   : > { %1664 = vmatmul.msk.bf16.gmra.mxu0 %vm614_vm0, %v1714_v41  ;;  %1676 = vmatmul.msk.bf16.gmra.mxu3 %vm614_vm0, %v1943_v40 }
  0x3f   : > { %1680 = vmatmul.msk.bf16.gmra.mxu1 %vm614_vm0, %v1714_v41 }
  0x40   : > { %1696 = vmatmul.msk.bf16.gmra.mxu2 %vm614_vm0, %v1714_v41 }
  0x4e   : > { %1665 = vmatmul.msk.bf16.gmra.mxu0 %vm614_vm0, %v1715_v43  ;;  %1677 = vmatmul.msk.bf16.gmra.mxu3 %vm614_vm0, %v1952_v42 }
  0x4f   : > { %1681 = vmatmul.msk.bf16.gmra.mxu1 %vm614_vm0, %v1715_v43 }
  0x50   : > { %1697 = vmatmul.msk.bf16.gmra.mxu2 %vm614_vm0, %v1715_v43  ;;  %v340_v43 = vld [vmem:[#allocation2 + $0x70] sm:$0xff] }
  0x5e   : > { %1666 = vmatmul.msk.bf16.gmra.mxu0 %vm614_vm0, %v1716_v44  ;;  %1690 = vmatmul.msk.bf16.vlgmr.msrb.gmra.mxu3 %vm614_vm0, %v1926_v37 }
  0x5f   : > { %1682 = vmatmul.msk.bf16.gmra.mxu1 %vm614_vm0, %v1716_v44 }
  0x60   : > { %1698 = vmatmul.msk.bf16.gmra.mxu2 %vm614_vm0, %v1716_v44 }
  0x6e   : > { %1667 = vmatmul.msk.bf16.gmra.mxu0 %vm614_vm0, %v1717_v45  ;;  %1691 = vmatmul.msk.bf16.gmra.mxu3 %vm614_vm0, %v1934_v38 }
  0x6f   : > { %1683 = vmatmul.msk.bf16.gmra.mxu1 %vm614_vm0, %v1717_v45 }
  0x70   : > { %1699 = vmatmul.msk.bf16.gmra.mxu2 %vm614_vm0, %v1717_v45 }
  0x7e   : > { %1668 = vmatmul.msk.bf16.gmra.mxu0 %vm614_vm0, %v1718_v46  ;;  %1692 = vmatmul.msk.bf16.gmra.mxu3 %vm614_vm0, %v1943_v40 }
  0x7f   : > { %1684 = vmatmul.msk.bf16.gmra.mxu1 %vm614_vm0, %v1718_v46 }
  0x80   : > { %1700 = vmatmul.msk.bf16.gmra.mxu2 %vm614_vm0, %v1718_v46 }
  0x8e   : > { %1669 = vmatmul.msk.bf16.gmra.mxu0 %vm614_vm0, %v1719_v48  ;;  %1693 = vmatmul.msk.bf16.gmra.mxu3 %vm614_vm0, %v1952_v42 }
  0x8f   : > { %1685 = vmatmul.msk.bf16.gmra.mxu1 %vm614_vm0, %v1719_v48 }
  0x90   : > { %1701 = vmatmul.msk.bf16.gmra.mxu2 %vm614_vm0, %v1719_v48 }
  0x9b   : > { %v672_v50 = vpop.f32.mrf.mxu0 }
  0x9c   : > { %v761_v54 = vpop.f32.mrf.mxu1  ;;  %v1230_v55 = vadd.f32 %v2023_v53, %v672_v50 }
  0x9d   : > { %v1231_v56 = vadd.f32 %v2019_v51, %v761_v54 }
  0x9e   : > { %1670 = vmatmul.msk.bf16.gmra.mxu0 %vm614_vm0, %v1720_v52  ;;  %1706 = vmatmul.msk.bf16.vlgmr.msra.gmra.mxu3 %vm614_vm0, %v1926_v37 }
  0x9f   : > { %1686 = vmatmul.msk.bf16.gmra.mxu1 %vm614_vm0, %v1720_v52  ;;  %v1326_v58 = vpack.c.bf16 %v1231_v56, %v1230_v55  ;;  %v343_v56 = vld [vmem:[#allocation2 + $0x88] sm:$0xff] }
  0xa0   : > { %1702 = vmatmul.msk.bf16.gmra.mxu2 %vm614_vm0, %v1720_v52 }
  0xa1   : > { %v2037_v59 = vpop.f32.mrf.mxu3  ;;  %1390 = vst [vmem:[%s2035_s27] sm:$0xff] %v1326_v58 }
  0xa3   : > { %v850_v60 = vpop.f32.mrf.mxu2  ;;  %v674_v62 = vpop.f32.mrf.mxu0 }
  0xa4   : > { %v932_v61 = vadd.f32 %v850_v60, %v328_v57  ;;  %v763_v63 = vpop.f32.mrf.mxu1  ;;  %v1233_v0 = vadd.f32 %v2023_v53, %v674_v62 }
  0xa5   : > { %v1234_v1 = vadd.f32 %v2019_v51, %v763_v63  ;;  %v1723_v63 = vld [vmem:[%s1922_s21 + $0x58] sm:$0xff] }
  0xa6   : > { %1029 = vst.msk [vmem:[#allocation2 + $0x10] sm:$0xff] %vm231_vm1, %v932_v61 }
  0xa7   : > { %v1328_v4 = vpack.c.bf16 %v1234_v1, %v1233_v0 }
  0xa9   : > { %v2045_v5 = vpop.f32.mrf.mxu3  ;;  %1393 = vst [vmem:[%s2035_s27 + $0xc] sm:$0xff] %v1328_v4 }
  0xab   : > { %v852_v6 = vpop.f32.mrf.mxu2  ;;  %v677_v8 = vpop.f32.mrf.mxu0 }
  0xac   : > { %v935_v7 = vadd.f32 %v852_v6, %v331_v2  ;;  %v766_v11 = vpop.f32.mrf.mxu1  ;;  %v1236_v13 = vadd.f32 %v2023_v53, %v677_v8  ;;  %v346_v8 = vld [vmem:[#allocation2 + $0xa0] sm:$0xff] }
  0xad   : > { %v1128_v10 = vld [vmem:[#allocation2 + $0x10] sm:$0xff]  ;;  %v1237_v15 = vadd.f32 %v2019_v51, %v766_v11 }
  0xae   : > { %v1232_v12 = vadd.f32 %v2043_v3, %v1128_v10  ;;  %1032 = vst.msk [vmem:[#allocation2 + $0x28] sm:$0xff] %vm231_vm1, %v935_v7  ;;  %1671 = vmatmul.msk.bf16.gmra.mxu0 %vm614_vm0, %v1721_v9  ;;  %1707 = vmatmul.msk.bf16.gmra.mxu3 %vm614_vm0, %v1934_v38 }
  0xaf   : > { %1687 = vmatmul.msk.bf16.gmra.mxu1 %vm614_vm0, %v1721_v9  ;;  %v1330_v17 = vpack.c.bf16 %v1237_v15, %v1236_v13 }
  0xb0   : > { %v1327_v14 = vpack.c.bf16 %v1232_v12, %v1232_v12  ;;  %1703 = vmatmul.msk.bf16.gmra.mxu2 %vm614_vm0, %v1721_v9 }
  0xb1   : > { %v2060_v18 = vpop.f32.mrf.mxu3  ;;  %1395 = vst [vmem:[%s2035_s27 + $0x18] sm:$0xff] %v1330_v17 }
  0xb2   : > { %1392 = vst.msk [vmem:[%s2035_s27 + $0x8] sm:$0xf] %vm1391_vm2, %v1327_v14 }
  0xb3   : > { %v855_v19 = vpop.f32.mrf.mxu2  ;;  %v679_v21 = vpop.f32.mrf.mxu0 }
  0xb4   : > { %v938_v20 = vadd.f32 %v855_v19, %v334_v16  ;;  %v768_v23 = vpop.f32.mrf.mxu1  ;;  %v1239_v25 = vadd.f32 %v2023_v53, %v679_v21 }
  0xb5   : > { %v1131_v22 = vld [vmem:[#allocation2 + $0x28] sm:$0xff]  ;;  %v1240_v27 = vadd.f32 %v2019_v51, %v768_v23 }
  0xb6   : > { %v1235_v24 = vadd.f32 %v2043_v3, %v1131_v22  ;;  %1035 = vst.msk [vmem:[#allocation2 + $0x40] sm:$0xff] %vm231_vm1, %v938_v20  ;;  %v349_v20 = vld [vmem:[#allocation2 + $0xb8] sm:$0xff] }
  0xb7   : > { %v1332_v29 = vpack.c.bf16 %v1240_v27, %v1239_v25 }
  0xb8   : > { %v1329_v26 = vpack.c.bf16 %v1235_v24, %v1235_v24 }
  0xb9   : > { %v2069_v30 = vpop.f32.mrf.mxu3  ;;  %1397 = vst [vmem:[%s2035_s27 + $0x24] sm:$0xff] %v1332_v29 }
  0xba   : > { %1394 = vst.msk [vmem:[%s2035_s27 + $0x14] sm:$0xf] %vm1391_vm2, %v1329_v26 }
  0xbb   : > { %v857_v31 = vpop.f32.mrf.mxu2  ;;  %v682_v33 = vpop.f32.mrf.mxu0 }
  0xbc   : > { %v941_v32 = vadd.f32 %v857_v31, %v337_v28  ;;  %v771_v36 = vpop.f32.mrf.mxu1  ;;  %v1242_v38 = vadd.f32 %v2023_v53, %v682_v33  ;;  %v352_v33 = vld [vmem:[#allocation2 + $0xd0] sm:$0xff] }
  0xbd   : > { %v1134_v35 = vld [vmem:[#allocation2 + $0x40] sm:$0xff]  ;;  %v1243_v41 = vadd.f32 %v2019_v51, %v771_v36 }
  0xbe   : > { %v1238_v37 = vadd.f32 %v2043_v3, %v1134_v35  ;;  %1038 = vst.msk [vmem:[#allocation2 + $0x58] sm:$0xff] %vm231_vm1, %v941_v32  ;;  %1672 = vmatmul.msk.bf16.gmra.mxu0 %vm614_vm0, %v1722_v34  ;;  %1708 = vmatmul.msk.bf16.gmra.mxu3 %vm614_vm0, %v1943_v40 }
  0xbf   : > { %1688 = vmatmul.msk.bf16.gmra.mxu1 %vm614_vm0, %v1722_v34  ;;  %v1334_v44 = vpack.c.bf16 %v1243_v41, %v1242_v38 }
  0xc0   : > { %v1331_v39 = vpack.c.bf16 %v1238_v37, %v1238_v37  ;;  %1704 = vmatmul.msk.bf16.gmra.mxu2 %vm614_vm0, %v1722_v34 }
  0xc1   : > { %v2084_v45 = vpop.f32.mrf.mxu3  ;;  %1399 = vst [vmem:[%s2035_s27 + $0x30] sm:$0xff] %v1334_v44 }
  0xc2   : > { %1396 = vst.msk [vmem:[%s2035_s27 + $0x20] sm:$0xf] %vm1391_vm2, %v1331_v39  ;;  %v1302_v39 = vadd.f32 %v2023_v53, %v2037_v59 }
  0xc3   : > { %v860_v46 = vpop.f32.mrf.mxu2  ;;  %v684_v48 = vpop.f32.mrf.mxu0 }
  0xc4   : > { %v944_v47 = vadd.f32 %v860_v46, %v340_v43  ;;  %v773_v49 = vpop.f32.mrf.mxu1  ;;  %v1245_v52 = vadd.f32 %v2023_v53, %v684_v48 }
  0xc5   : > { %v1137_v40 = vld [vmem:[#allocation2 + $0x58] sm:$0xff]  ;;  %v1246_v55 = vadd.f32 %v2019_v51, %v773_v49 }
  0xc6   : > { %v1241_v50 = vadd.f32 %v2043_v3, %v1137_v40  ;;  %1041 = vst.msk [vmem:[#allocation2 + $0x70] sm:$0xff] %vm231_vm1, %v944_v47 }
  0xc7   : > { %v1336_v57 = vpack.c.bf16 %v1246_v55, %v1245_v52 }
  0xc8   : > { %v1333_v54 = vpack.c.bf16 %v1241_v50, %v1241_v50  ;;  %v355_v50 = vld [vmem:[#allocation2 + $0xe8] sm:$0xff] }
  0xc9   : > { %v2093_v58 = vpop.f32.mrf.mxu3  ;;  %1401 = vst [vmem:[%s2035_s27 + $0x3c] sm:$0xff] %v1336_v57  ;;  %v1305_v57 = vadd.f32 %v2023_v53, %v2045_v5 }
  0xca   : > { %1398 = vst.msk [vmem:[%s2035_s27 + $0x2c] sm:$0xf] %vm1391_vm2, %v1333_v54 }
  0xcb   : > { %v862_v60 = vpop.f32.mrf.mxu2  ;;  %v687_v62 = vpop.f32.mrf.mxu0 }
  0xcc   : > { %v947_v61 = vadd.f32 %v862_v60, %v343_v56  ;;  %v776_v1 = vpop.f32.mrf.mxu1  ;;  %v1248_v4 = vadd.f32 %v2023_v53, %v687_v62 }
  0xcd   : > { %v1140_v0 = vld [vmem:[#allocation2 + $0x70] sm:$0xff]  ;;  %v1249_v7 = vadd.f32 %v2019_v51, %v776_v1 }
  0xce   : > { %v1244_v2 = vadd.f32 %v2043_v3, %v1140_v0  ;;  %1044 = vst.msk [vmem:[#allocation2 + $0x88] sm:$0xff] %vm231_vm1, %v947_v61  ;;  %1673 = vmatmul.msk.bf16.gmra.mxu0 %vm614_vm0, %v1723_v63  ;;  %1709 = vmatmul.msk.bf16.gmra.mxu3 %vm614_vm0, %v1952_v42 }
  0xcf   : > { %1689 = vmatmul.msk.bf16.gmra.mxu1 %vm614_vm0, %v1723_v63  ;;  %v1338_v9 = vpack.c.bf16 %v1249_v7, %v1248_v4 }
  0xd0   : > { %v1335_v6 = vpack.c.bf16 %v1244_v2, %v1244_v2  ;;  %1705 = vmatmul.msk.bf16.gmra.mxu2 %vm614_vm0, %v1723_v63 }
  0xd1   : > { %v2108_v10 = vpop.f32.mrf.mxu3  ;;  %1403 = vst [vmem:[%s2035_s27 + $0x48] sm:$0xff] %v1338_v9 }
  0xd2   : > { %1400 = vst.msk [vmem:[%s2035_s27 + $0x38] sm:$0xf] %vm1391_vm2, %v1335_v6  ;;  %v358_v6 = vld [vmem:[#allocation2 + $0x100] sm:$0xff] }
  0xd3   : > { %v865_v11 = vpop.f32.mrf.mxu2  ;;  %v689_v13 = vpop.f32.mrf.mxu0 }
  0xd4   : > { %v950_v12 = vadd.f32 %v865_v11, %v346_v8  ;;  %v778_v14 = vpop.f32.mrf.mxu1  ;;  %v1251_v16 = vadd.f32 %v2023_v53, %v689_v13 }
  0xd5   : > { %v1143_v42 = vld [vmem:[#allocation2 + $0x88] sm:$0xff]  ;;  %v1252_v19 = vadd.f32 %v2019_v51, %v778_v14 }
  0xd6   : > { %v1247_v15 = vadd.f32 %v2043_v3, %v1143_v42  ;;  %1047 = vst.msk [vmem:[#allocation2 + $0xa0] sm:$0xff] %vm231_vm1, %v950_v12  ;;  %v1308_v12 = vadd.f32 %v2023_v53, %v2060_v18 }
  0xd7   : > { %v1340_v21 = vpack.c.bf16 %v1252_v19, %v1251_v16 }
  0xd8   : > { %v1337_v17 = vpack.c.bf16 %v1247_v15, %v1247_v15 }
  0xd9   : > { %v2117_v22 = vpop.f32.mrf.mxu3  ;;  %1405 = vst [vmem:[%s2035_s27 + $0x54] sm:$0xff] %v1340_v21  ;;  %v361_v21 = vld [vmem:[#allocation2 + $0x118] sm:$0xff] }
  0xda   : > { %1402 = vst.msk [vmem:[%s2035_s27 + $0x44] sm:$0xf] %vm1391_vm2, %v1337_v17 }
  0xdb   : > { %v867_v23 = vpop.f32.mrf.mxu2  ;;  %v692_v25 = vpop.f32.mrf.mxu0 }
  0xdc   : > { %v953_v24 = vadd.f32 %v867_v23, %v349_v20  ;;  %v781_v27 = vpop.f32.mrf.mxu1  ;;  %v1254_v29 = vadd.f32 %v2023_v53, %v692_v25 }
  0xdd   : > { %v1146_v26 = vld [vmem:[#allocation2 + $0xa0] sm:$0xff]  ;;  %v1255_v32 = vadd.f32 %v2019_v51, %v781_v27  ;;  %v1311_v27 = vadd.f32 %v2023_v53, %v2069_v30 }
  0xde   : > { %v1250_v28 = vadd.f32 %v2043_v3, %v1146_v26  ;;  %1050 = vst.msk [vmem:[#allocation2 + $0xb8] sm:$0xff] %vm231_vm1, %v953_v24 }
  0xdf   : > { %v1342_v34 = vpack.c.bf16 %v1255_v32, %v1254_v29 }
  0xe0   : > { %v1339_v31 = vpack.c.bf16 %v1250_v28, %v1250_v28 }
  0xe1   : > { %v821_v35 = vpop.f32.mrf.mxu3  ;;  %1407 = vst [vmem:[%s2035_s27 + $0x60] sm:$0xff] %v1342_v34 }
  0xe2   : > { %1404 = vst.msk [vmem:[%s2035_s27 + $0x50] sm:$0xf] %vm1391_vm2, %v1339_v31  ;;  %v1303_v43 = vadd.f32 %v2019_v51, %v821_v35 }
  0xe3   : > { %v870_v36 = vpop.f32.mrf.mxu2  ;;  %v694_v38 = vpop.f32.mrf.mxu0 }
  0xe4   : > { %v956_v37 = vadd.f32 %v870_v36, %v352_v33  ;;  %v783_v44 = vpop.f32.mrf.mxu1  ;;  %v1374_v47 = vpack.c.bf16 %v1303_v43, %v1302_v39  ;;  %v1257_v48 = vadd.f32 %v2023_v53, %v694_v38 }
  0xe5   : > { %v1149_v41 = vld [vmem:[#allocation2 + $0xb8] sm:$0xff]  ;;  %v1258_v49 = vadd.f32 %v2019_v51, %v783_v44  ;;  %v1314_v44 = vadd.f32 %v2023_v53, %v2084_v45 }
  0xe6   : > { %v1253_v46 = vadd.f32 %v2043_v3, %v1149_v41  ;;  %1053 = vst.msk [vmem:[#allocation2 + $0xd0] sm:$0xff] %vm231_vm1, %v956_v37  ;;  %v364_v37 = vld [vmem:[#allocation2 + $0x130] sm:$0xff] }
  0xe7   : > { %1439 = vst [vmem:[%s2035_s27 + $0x120] sm:$0xff] %v1374_v47  ;;  %v1344_v59 = vpack.c.bf16 %v1258_v49, %v1257_v48 }
  0xe8   : > { %v1341_v40 = vpack.c.bf16 %v1253_v46, %v1253_v46 }
  0xe9   : > { %v823_v52 = vpop.f32.mrf.mxu3  ;;  %1409 = vst [vmem:[%s2035_s27 + $0x6c] sm:$0xff] %v1344_v59 }
  0xea   : > { %1406 = vst.msk [vmem:[%s2035_s27 + $0x5c] sm:$0xf] %vm1391_vm2, %v1341_v40  ;;  %v1306_v61 = vadd.f32 %v2019_v51, %v823_v52 }
  0xeb   : > { %v872_v54 = vpop.f32.mrf.mxu2  ;;  %v697_v56 = vpop.f32.mrf.mxu0 }
  0xec   : > { %v959_v55 = vadd.f32 %v872_v54, %v355_v50  ;;  %v786_v62 = vpop.f32.mrf.mxu1  ;;  %v1376_v0 = vpack.c.bf16 %v1306_v61, %v1305_v57  ;;  %v1260_v1 = vadd.f32 %v2023_v53, %v697_v56  ;;  %v367_v54 = vld [vmem:[#allocation2 + $0x148] sm:$0xff]  ;;  %v1317_v61 = vadd.f32 %v2023_v53, %v2093_v58 }
  0xed   : > { %v1152_v60 = vld [vmem:[#allocation2 + $0xd0] sm:$0xff]  ;;  %v1261_v4 = vadd.f32 %v2019_v51, %v786_v62 }
  0xee   : > { %v1256_v63 = vadd.f32 %v2043_v3, %v1152_v60  ;;  %1056 = vst.msk [vmem:[#allocation2 + $0xe8] sm:$0xff] %vm231_vm1, %v959_v55 }
  0xef   : > { %1441 = vst [vmem:[%s2035_s27 + $0x12c] sm:$0xff] %v1376_v0  ;;  %v1346_v5 = vpack.c.bf16 %v1261_v4, %v1260_v1 }
  0xf0   : > { %v1343_v2 = vpack.c.bf16 %v1256_v63, %v1256_v63 }
  0xf1   : > { %v826_v7 = vpop.f32.mrf.mxu3  ;;  %1411 = vst [vmem:[%s2035_s27 + $0x78] sm:$0xff] %v1346_v5 }
  0xf2   : > { %1408 = vst.msk [vmem:[%s2035_s27 + $0x68] sm:$0xf] %vm1391_vm2, %v1343_v2  ;;  %v1309_v42 = vadd.f32 %v2019_v51, %v826_v7  ;;  %v370_v7 = vld [vmem:[#allocation2 + $0x160] sm:$0xff] }
  0xf3   : > { %v875_v8 = vpop.f32.mrf.mxu2  ;;  %v699_v11 = vpop.f32.mrf.mxu0 }
  0xf4   : > { %v962_v9 = vadd.f32 %v875_v8, %v358_v6  ;;  %v788_v14 = vpop.f32.mrf.mxu1  ;;  %v1378_v16 = vpack.c.bf16 %v1309_v42, %v1308_v12  ;;  %v1263_v17 = vadd.f32 %v2023_v53, %v699_v11 }
  0xf5   : > { %v1155_v13 = vld [vmem:[#allocation2 + $0xe8] sm:$0xff]  ;;  %v1264_v20 = vadd.f32 %v2019_v51, %v788_v14 }
  0xf6   : > { %v1259_v15 = vadd.f32 %v2043_v3, %v1155_v13  ;;  %1059 = vst.msk [vmem:[#allocation2 + $0x100] sm:$0xff] %vm231_vm1, %v962_v9  ;;  %v1320_v13 = vadd.f32 %v2023_v53, %v2108_v10 }
  0xf7   : > { %1443 = vst [vmem:[%s2035_s27 + $0x138] sm:$0xff] %v1378_v16  ;;  %v1348_v18 = vpack.c.bf16 %v1264_v20, %v1263_v17 }
  0xf8   : > { %v1345_v19 = vpack.c.bf16 %v1259_v15, %v1259_v15 }
  0xf9   : > { %v828_v23 = vpop.f32.mrf.mxu3  ;;  %1413 = vst [vmem:[%s2035_s27 + $0x84] sm:$0xff] %v1348_v18  ;;  %v373_v18 = vld [vmem:[#allocation2 + $0x178] sm:$0xff] }
  0xfa   : > { %1410 = vst.msk [vmem:[%s2035_s27 + $0x74] sm:$0xf] %vm1391_vm2, %v1345_v19  ;;  %v1312_v29 = vadd.f32 %v2019_v51, %v828_v23 }
  0xfb   : > { %v877_v24 = vpop.f32.mrf.mxu2  ;;  %v702_v26 = vpop.f32.mrf.mxu0 }
  0xfc   : > { %v965_v25 = vadd.f32 %v877_v24, %v361_v21  ;;  %v791_v31 = vpop.f32.mrf.mxu1  ;;  %v1380_v33 = vpack.c.bf16 %v1312_v29, %v1311_v27  ;;  %v1266_v34 = vadd.f32 %v2023_v53, %v702_v26  ;;  %v1323_v27 = vadd.f32 %v2023_v53, %v2117_v22 }
  0xfd   : > { %v1158_v28 = vld [vmem:[#allocation2 + $0x100] sm:$0xff]  ;;  %v1267_v36 = vadd.f32 %v2019_v51, %v791_v31 }
  0xfe   : > { %v1262_v32 = vadd.f32 %v2043_v3, %v1158_v28  ;;  %1062 = vst.msk [vmem:[#allocation2 + $0x118] sm:$0xff] %vm231_vm1, %v965_v25 }
  0xff   : > { %1445 = vst [vmem:[%s2035_s27 + $0x144] sm:$0xff] %v1380_v33  ;;  %v1350_v30 = vpack.c.bf16 %v1267_v36, %v1266_v34 }
 0x100   : > { %v1347_v35 = vpack.c.bf16 %v1262_v32, %v1262_v32 }
 0x101   : > { %v831_v38 = vpop.f32.mrf.mxu3  ;;  %1415 = vst [vmem:[%s2035_s27 + $0x90] sm:$0xff] %v1350_v30  ;;  %v376_v30 = vld [vmem:[#allocation2 + $0x190] sm:$0xff] }
 0x102   : > { %1412 = vst.msk [vmem:[%s2035_s27 + $0x80] sm:$0xf] %vm1391_vm2, %v1347_v35  ;;  %v1315_v47 = vadd.f32 %v2019_v51, %v831_v38 }
 0x103   : > { %v880_v39 = vpop.f32.mrf.mxu2  ;;  %v704_v43 = vpop.f32.mrf.mxu0 }
 0x104   : > { %v968_v41 = vadd.f32 %v880_v39, %v364_v37  ;;  %v793_v48 = vpop.f32.mrf.mxu1  ;;  %v1382_v49 = vpack.c.bf16 %v1315_v47, %v1314_v44  ;;  %v1269_v50 = vadd.f32 %v2023_v53, %v704_v43  ;;  %v400_v37 = vld [vmem:[#allocation2 + $0x250] sm:$0xff] }
 0x105   : > { %v1161_v46 = vld [vmem:[#allocation2 + $0x118] sm:$0xff]  ;;  %v1270_v52 = vadd.f32 %v2019_v51, %v793_v48 }
 0x106   : > { %v1265_v40 = vadd.f32 %v2043_v3, %v1161_v46  ;;  %1065 = vst.msk [vmem:[#allocation2 + $0x130] sm:$0xff] %vm231_vm1, %v968_v41 }
 0x107   : > { %1447 = vst [vmem:[%s2035_s27 + $0x150] sm:$0xff] %v1382_v49  ;;  %v1352_v45 = vpack.c.bf16 %v1270_v52, %v1269_v50  ;;  %v379_v52 = vld [vmem:[#allocation2 + $0x1a8] sm:$0xff] }
 0x108   : > { %v1349_v59 = vpack.c.bf16 %v1265_v40, %v1265_v40 }
 0x109   : > { %v833_v55 = vpop.f32.mrf.mxu3  ;;  %1417 = vst [vmem:[%s2035_s27 + $0x9c] sm:$0xff] %v1352_v45 }
 0x10a   : > { %1414 = vst.msk [vmem:[%s2035_s27 + $0x8c] sm:$0xf] %vm1391_vm2, %v1349_v59  ;;  %v1318_v63 = vadd.f32 %v2019_v51, %v833_v55  ;;  %v403_v59 = vld [vmem:[#allocation2 + $0x268] sm:$0xff] }
 0x10b   : > { %v882_v56 = vpop.f32.mrf.mxu2  ;;  %v707_v60 = vpop.f32.mrf.mxu0 }
 0x10c   : > { %v971_v57 = vadd.f32 %v882_v56, %v367_v54  ;;  %v796_v0 = vpop.f32.mrf.mxu1  ;;  %v1384_v2 = vpack.c.bf16 %v1318_v63, %v1317_v61  ;;  %v1272_v4 = vadd.f32 %v2023_v53, %v707_v60 }
 0x10d   : > { %v1164_v62 = vld [vmem:[#allocation2 + $0x130] sm:$0xff]  ;;  %v1273_v5 = vadd.f32 %v2019_v51, %v796_v0 }
 0x10e   : > { %v1268_v1 = vadd.f32 %v2043_v3, %v1164_v62  ;;  %1068 = vst.msk [vmem:[#allocation2 + $0x148] sm:$0xff] %vm231_vm1, %v971_v57 }
 0x10f   : > { %1449 = vst [vmem:[%s2035_s27 + $0x15c] sm:$0xff] %v1384_v2  ;;  %v1354_v58 = vpack.c.bf16 %v1273_v5, %v1272_v4 }
 0x110   : > { %v1351_v6 = vpack.c.bf16 %v1268_v1, %v1268_v1 }
 0x111   : > { %v836_v8 = vpop.f32.mrf.mxu3  ;;  %1419 = vst [vmem:[%s2035_s27 + $0xa8] sm:$0xff] %v1354_v58  ;;  %v382_v58 = vld [vmem:[#allocation2 + $0x1c0] sm:$0xff] }
 0x112   : > { %1416 = vst.msk [vmem:[%s2035_s27 + $0x98] sm:$0xf] %vm1391_vm2, %v1351_v6  ;;  %v1321_v14 = vadd.f32 %v2019_v51, %v836_v8 }
 0x113   : > { %v885_v9 = vpop.f32.mrf.mxu2  ;;  %v709_v12 = vpop.f32.mrf.mxu0 }
 0x114   : > { %v974_v11 = vadd.f32 %v885_v9, %v370_v7  ;;  %v798_v15 = vpop.f32.mrf.mxu1  ;;  %v1386_v17 = vpack.c.bf16 %v1321_v14, %v1320_v13  ;;  %v1275_v19 = vadd.f32 %v2023_v53, %v709_v12  ;;  %v406_v7 = vld [vmem:[#allocation2 + $0x280] sm:$0xff] }
 0x115   : > { %v1167_v42 = vld [vmem:[#allocation2 + $0x148] sm:$0xff]  ;;  %v1276_v21 = vadd.f32 %v2019_v51, %v798_v15 }
 0x116   : > { %v1271_v16 = vadd.f32 %v2043_v3, %v1167_v42  ;;  %1071 = vst.msk [vmem:[#allocation2 + $0x160] sm:$0xff] %vm231_vm1, %v974_v11 }
 0x117   : > { %1451 = vst [vmem:[%s2035_s27 + $0x168] sm:$0xff] %v1386_v17  ;;  %v1356_v10 = vpack.c.bf16 %v1276_v21, %v1275_v19 }
 0x118   : > { %v1353_v20 = vpack.c.bf16 %v1271_v16, %v1271_v16 }
 0x119   : > { %v838_v23 = vpop.f32.mrf.mxu3  ;;  %1421 = vst [vmem:[%s2035_s27 + $0xb4] sm:$0xff] %v1356_v10 }
 0x11a   : > { %1418 = vst.msk [vmem:[%s2035_s27 + $0xa4] sm:$0xf] %vm1391_vm2, %v1353_v20  ;;  %v1324_v29 = vadd.f32 %v2019_v51, %v838_v23  ;;  %v409_v23 = vld [vmem:[#allocation2 + $0x298] sm:$0xff] }
 0x11b   : > { %v887_v24 = vpop.f32.mrf.mxu2  ;;  %v712_v26 = vpop.f32.mrf.mxu0 }
 0x11c   : > { %v977_v25 = vadd.f32 %v887_v24, %v373_v18  ;;  %v801_v31 = vpop.f32.mrf.mxu1  ;;  %v1388_v33 = vpack.c.bf16 %v1324_v29, %v1323_v27  ;;  %v1278_v34 = vadd.f32 %v2023_v53, %v712_v26  ;;  %v385_v24 = vld [vmem:[#allocation2 + $0x1d8] sm:$0xff] }
 0x11d   : > { %v1170_v28 = vld [vmem:[#allocation2 + $0x160] sm:$0xff]  ;;  %v1279_v36 = vadd.f32 %v2019_v51, %v801_v31 }
 0x11e   : > { %v1274_v32 = vadd.f32 %v2043_v3, %v1170_v28  ;;  %1074 = vst.msk [vmem:[#allocation2 + $0x178] sm:$0xff] %vm231_vm1, %v977_v25 }
 0x11f   : > { %1453 = vst [vmem:[%s2035_s27 + $0x174] sm:$0xff] %v1388_v33  ;;  %v1358_v22 = vpack.c.bf16 %v1279_v36, %v1278_v34 }
 0x120   : > { %v1355_v35 = vpack.c.bf16 %v1274_v32, %v1274_v32 }
 0x121   : > { %v910_v38 = vpop.f32.mrf.mxu3  ;;  %1423 = vst [vmem:[%s2035_s27 + $0xc0] sm:$0xff] %v1358_v22 }
 0x122   : > { %1420 = vst.msk [vmem:[%s2035_s27 + $0xb0] sm:$0xf] %vm1391_vm2, %v1355_v35  ;;  %v1004_v41 = vadd.f32 %v910_v38, %v400_v37 }
 0x123   : > { %v890_v39 = vpop.f32.mrf.mxu2  ;;  %v714_v44 = vpop.f32.mrf.mxu0 }
 0x124   : > { %v980_v43 = vadd.f32 %v890_v39, %v376_v30  ;;  %1101 = vst.msk [vmem:[#allocation2 + $0x250] sm:$0xff] %vm231_vm1, %v1004_v41  ;;  %v803_v47 = vpop.f32.mrf.mxu1  ;;  %v1281_v40 = vadd.f32 %v2023_v53, %v714_v44  ;;  %v412_v39 = vld [vmem:[#allocation2 + $0x2b0] sm:$0xff] }
 0x125   : > { %v1173_v46 = vld [vmem:[#allocation2 + $0x178] sm:$0xff]  ;;  %v1282_v50 = vadd.f32 %v2019_v51, %v803_v47  ;;  %v388_v41 = vld [vmem:[#allocation2 + $0x1f0] sm:$0xff] }
 0x126   : > { %v1277_v48 = vadd.f32 %v2043_v3, %v1173_v46  ;;  %1077 = vst.msk [vmem:[#allocation2 + $0x190] sm:$0xff] %vm231_vm1, %v980_v43 }
 0x127   : > { %v1360_v54 = vpack.c.bf16 %v1282_v50, %v1281_v40 }
 0x128   : > { %v1357_v49 = vpack.c.bf16 %v1277_v48, %v1277_v48 }
 0x129   : > { %v912_v45 = vpop.f32.mrf.mxu3  ;;  %1425 = vst [vmem:[%s2035_s27 + $0xcc] sm:$0xff] %v1360_v54 }
 0x12a   : > { %1422 = vst.msk [vmem:[%s2035_s27 + $0xbc] sm:$0xf] %vm1391_vm2, %v1357_v49  ;;  %v1007_v56 = vadd.f32 %v912_v45, %v403_v59 }
 0x12b   : > { %v892_v55 = vpop.f32.mrf.mxu2  ;;  %v1200_v57 = vld [vmem:[#allocation2 + $0x250] sm:$0xff]  ;;  %v717_v61 = vpop.f32.mrf.mxu0 }
 0x12c   : > { %v983_v60 = vadd.f32 %v892_v55, %v379_v52  ;;  %v1304_v63 = vadd.f32 %v2043_v3, %v1200_v57  ;;  %1104 = vst.msk [vmem:[#allocation2 + $0x268] sm:$0xff] %vm231_vm1, %v1007_v56  ;;  %v806_v0 = vpop.f32.mrf.mxu1  ;;  %v1284_v4 = vadd.f32 %v2023_v53, %v717_v61  ;;  %v391_v61 = vld [vmem:[#allocation2 + $0x208] sm:$0xff] }
 0x12d   : > { %v1176_v62 = vld [vmem:[#allocation2 + $0x190] sm:$0xff]  ;;  %v1285_v5 = vadd.f32 %v2019_v51, %v806_v0 }
 0x12e   : > { %v1280_v1 = vadd.f32 %v2043_v3, %v1176_v62  ;;  %1080 = vst.msk [vmem:[#allocation2 + $0x1a8] sm:$0xff] %vm231_vm1, %v983_v60  ;;  %v1375_v2 = vpack.c.bf16 %v1304_v63, %v1304_v63  ;;  %v415_v60 = vld [vmem:[#allocation2 + $0x2c8] sm:$0xff] }
 0x12f   : > { %v1362_v8 = vpack.c.bf16 %v1285_v5, %v1284_v4 }
 0x130   : > { %v1359_v6 = vpack.c.bf16 %v1280_v1, %v1280_v1  ;;  %1440 = vst.msk [vmem:[%s2035_s27 + $0x128] sm:$0xf] %vm1391_vm2, %v1375_v2 }
 0x131   : > { %v915_v9 = vpop.f32.mrf.mxu3  ;;  %1427 = vst [vmem:[%s2035_s27 + $0xd8] sm:$0xff] %v1362_v8 }
 0x132   : > { %1424 = vst.msk [vmem:[%s2035_s27 + $0xc8] sm:$0xf] %vm1391_vm2, %v1359_v6  ;;  %v1010_v12 = vadd.f32 %v915_v9, %v406_v7 }
 0x133   : > { %v895_v11 = vpop.f32.mrf.mxu2  ;;  %v1203_v13 = vld [vmem:[#allocation2 + $0x268] sm:$0xff]  ;;  %v719_v14 = vpop.f32.mrf.mxu0 }
 0x134   : > { %v986_v42 = vadd.f32 %v895_v11, %v382_v58  ;;  %v1307_v16 = vadd.f32 %v2043_v3, %v1203_v13  ;;  %1107 = vst.msk [vmem:[#allocation2 + $0x280] sm:$0xff] %vm231_vm1, %v1010_v12  ;;  %v808_v17 = vpop.f32.mrf.mxu1  ;;  %v1287_v21 = vadd.f32 %v2023_v53, %v719_v14  ;;  %v394_v14 = vld [vmem:[#allocation2 + $0x220] sm:$0xff] }
 0x135   : > { %v1179_v15 = vld [vmem:[#allocation2 + $0x1a8] sm:$0xff]  ;;  %v1288_v10 = vadd.f32 %v2019_v51, %v808_v17 }
 0x136   : > { %v1283_v19 = vadd.f32 %v2043_v3, %v1179_v15  ;;  %1083 = vst.msk [vmem:[#allocation2 + $0x1c0] sm:$0xff] %vm231_vm1, %v986_v42  ;;  %v1377_v20 = vpack.c.bf16 %v1307_v16, %v1307_v16  ;;  %v418_v42 = vld [vmem:[#allocation2 + $0x2e0] sm:$0xff] }
 0x137   : > { %v1364_v25 = vpack.c.bf16 %v1288_v10, %v1287_v21 }
 0x138   : > { %v1361_v18 = vpack.c.bf16 %v1283_v19, %v1283_v19  ;;  %1442 = vst.msk [vmem:[%s2035_s27 + $0x134] sm:$0xf] %vm1391_vm2, %v1377_v20 }
 0x139   : > { %v917_v26 = vpop.f32.mrf.mxu3  ;;  %1429 = vst [vmem:[%s2035_s27 + $0xe4] sm:$0xff] %v1364_v25 }
 0x13a   : > { %1426 = vst.msk [vmem:[%s2035_s27 + $0xd4] sm:$0xf] %vm1391_vm2, %v1361_v18  ;;  %v1013_v28 = vadd.f32 %v917_v26, %v409_v23 }
 0x13b   : > { %v897_v27 = vpop.f32.mrf.mxu2  ;;  %v1206_v29 = vld [vmem:[#allocation2 + $0x280] sm:$0xff]  ;;  %v722_v32 = vpop.f32.mrf.mxu0 }
 0x13c   : > { %v989_v31 = vadd.f32 %v897_v27, %v385_v24  ;;  %v1310_v34 = vadd.f32 %v2043_v3, %v1206_v29  ;;  %1110 = vst.msk [vmem:[#allocation2 + $0x298] sm:$0xff] %vm231_vm1, %v1013_v28  ;;  %v811_v35 = vpop.f32.mrf.mxu1  ;;  %v1290_v30 = vadd.f32 %v2023_v53, %v722_v32  ;;  %v397_v32 = vld [vmem:[#allocation2 + $0x238] sm:$0xff] }
 0x13d   : > { %v1182_v33 = vld [vmem:[#allocation2 + $0x1c0] sm:$0xff]  ;;  %v1291_v38 = vadd.f32 %v2019_v51, %v811_v35 }
 0x13e   : > { %v1286_v36 = vadd.f32 %v2043_v3, %v1182_v33  ;;  %1086 = vst.msk [vmem:[#allocation2 + $0x1d8] sm:$0xff] %vm231_vm1, %v989_v31  ;;  %v1379_v37 = vpack.c.bf16 %v1310_v34, %v1310_v34  ;;  %v421_v31 = vld [vmem:[#allocation2 + $0x2f8] sm:$0xff] }
 0x13f   : > { %v1366_v43 = vpack.c.bf16 %v1291_v38, %v1290_v30 }
 0x140   : > { %v1363_v22 = vpack.c.bf16 %v1286_v36, %v1286_v36  ;;  %1444 = vst.msk [vmem:[%s2035_s27 + $0x140] sm:$0xf] %vm1391_vm2, %v1379_v37 }
 0x141   : > { %v920_v44 = vpop.f32.mrf.mxu3  ;;  %1431 = vst [vmem:[%s2035_s27 + $0xf0] sm:$0xff] %v1366_v43 }
 0x142   : > { %1428 = vst.msk [vmem:[%s2035_s27 + $0xe0] sm:$0xf] %vm1391_vm2, %v1363_v22  ;;  %v1016_v47 = vadd.f32 %v920_v44, %v412_v39 }
 0x143   : > { %v900_v46 = vpop.f32.mrf.mxu2  ;;  %v1209_v48 = vld [vmem:[#allocation2 + $0x298] sm:$0xff]  ;;  %v724_v49 = vpop.f32.mrf.mxu0 }
 0x144   : > { %v992_v40 = vadd.f32 %v900_v46, %v388_v41  ;;  %v1313_v59 = vadd.f32 %v2043_v3, %v1209_v48  ;;  %1113 = vst.msk [vmem:[#allocation2 + $0x2b0] sm:$0xff] %vm231_vm1, %v1016_v47  ;;  %v813_v52 = vpop.f32.mrf.mxu1  ;;  %v1293_v55 = vadd.f32 %v2023_v53, %v724_v49 }
 0x145   : > { %v1185_v50 = vld [vmem:[#allocation2 + $0x1d8] sm:$0xff]  ;;  %v1294_v57 = vadd.f32 %v2019_v51, %v813_v52 }
 0x146   : > { %v1289_v54 = vadd.f32 %v2043_v3, %v1185_v50  ;;  %1089 = vst.msk [vmem:[#allocation2 + $0x1f0] sm:$0xff] %vm231_vm1, %v992_v40  ;;  %v1381_v45 = vpack.c.bf16 %v1313_v59, %v1313_v59 }
 0x147   : > { %v1368_v62 = vpack.c.bf16 %v1294_v57, %v1293_v55 }
 0x148   : > { %v1365_v56 = vpack.c.bf16 %v1289_v54, %v1289_v54  ;;  %1446 = vst.msk [vmem:[%s2035_s27 + $0x14c] sm:$0xf] %vm1391_vm2, %v1381_v45 }
 0x149   : > { %v922_v63 = vpop.f32.mrf.mxu3  ;;  %1433 = vst [vmem:[%s2035_s27 + $0xfc] sm:$0xff] %v1368_v62 }
 0x14a   : > { %1430 = vst.msk [vmem:[%s2035_s27 + $0xec] sm:$0xf] %vm1391_vm2, %v1365_v56  ;;  %v1019_v1 = vadd.f32 %v922_v63, %v415_v60 }
 0x14b   : > { %v902_v0 = vpop.f32.mrf.mxu2  ;;  %v1212_v2 = vld [vmem:[#allocation2 + $0x2b0] sm:$0xff]  ;;  %v727_v6 = vpop.f32.mrf.mxu0 }
 0x14c   : > { %v995_v4 = vadd.f32 %v902_v0, %v391_v61  ;;  %v1316_v7 = vadd.f32 %v2043_v3, %v1212_v2  ;;  %1116 = vst.msk [vmem:[#allocation2 + $0x2c8] sm:$0xff] %vm231_vm1, %v1019_v1  ;;  %v816_v58 = vpop.f32.mrf.mxu1  ;;  %v1296_v11 = vadd.f32 %v2023_v53, %v727_v6 }
 0x14d   : > { %v1188_v5 = vld [vmem:[#allocation2 + $0x1f0] sm:$0xff]  ;;  %v1297_v13 = vadd.f32 %v2019_v51, %v816_v58 }
 0x14e   : > { %v1292_v8 = vadd.f32 %v2043_v3, %v1188_v5  ;;  %1092 = vst.msk [vmem:[#allocation2 + $0x208] sm:$0xff] %vm231_vm1, %v995_v4  ;;  %v1383_v9 = vpack.c.bf16 %v1316_v7, %v1316_v7 }
 0x14f   : > { %v1370_v15 = vpack.c.bf16 %v1297_v13, %v1296_v11 }
 0x150   : > { %v1367_v12 = vpack.c.bf16 %v1292_v8, %v1292_v8  ;;  %1448 = vst.msk [vmem:[%s2035_s27 + $0x158] sm:$0xf] %vm1391_vm2, %v1383_v9 }
 0x151   : > { %v925_v16 = vpop.f32.mrf.mxu3  ;;  %1435 = vst [vmem:[%s2035_s27 + $0x108] sm:$0xff] %v1370_v15 }
 0x152   : > { %1432 = vst.msk [vmem:[%s2035_s27 + $0xf8] sm:$0xf] %vm1391_vm2, %v1367_v12  ;;  %v1022_v19 = vadd.f32 %v925_v16, %v418_v42 }
 0x153   : > { %v905_v17 = vpop.f32.mrf.mxu2  ;;  %v1215_v20 = vld [vmem:[#allocation2 + $0x2c8] sm:$0xff]  ;;  %v729_v18 = vpop.f32.mrf.mxu0 }
 0x154   : > { %v998_v21 = vadd.f32 %v905_v17, %v394_v14  ;;  %v1319_v23 = vadd.f32 %v2043_v3, %v1215_v20  ;;  %1119 = vst.msk [vmem:[#allocation2 + $0x2e0] sm:$0xff] %vm231_vm1, %v1022_v19  ;;  %v818_v24 = vpop.f32.mrf.mxu1  ;;  %v1299_v27 = vadd.f32 %v2023_v53, %v729_v18 }
 0x155   : > { %v1191_v10 = vld [vmem:[#allocation2 + $0x208] sm:$0xff]  ;;  %v1300_v29 = vadd.f32 %v2019_v51, %v818_v24 }
 0x156   : > { %v1295_v25 = vadd.f32 %v2043_v3, %v1191_v10  ;;  %1095 = vst.msk [vmem:[#allocation2 + $0x220] sm:$0xff] %vm231_vm1, %v998_v21  ;;  %v1385_v26 = vpack.c.bf16 %v1319_v23, %v1319_v23 }
 0x157   : > { %v1372_v33 = vpack.c.bf16 %v1300_v29, %v1299_v27 }
 0x158   : > { %v1369_v28 = vpack.c.bf16 %v1295_v25, %v1295_v25  ;;  %1450 = vst.msk [vmem:[%s2035_s27 + $0x164] sm:$0xf] %vm1391_vm2, %v1385_v26 }
 0x159   : > { %v927_v34 = vpop.f32.mrf.mxu3  ;;  %1437 = vst [vmem:[%s2035_s27 + $0x114] sm:$0xff] %v1372_v33 }
 0x15a   : > { %1434 = vst.msk [vmem:[%s2035_s27 + $0x104] sm:$0xf] %vm1391_vm2, %v1369_v28  ;;  %v1025_v36 = vadd.f32 %v927_v34, %v421_v31 }
 0x15b   : > { %v907_v35 = vpop.f32.mrf.mxu2  ;;  %v1218_v37 = vld [vmem:[#allocation2 + $0x2e0] sm:$0xff] }
 0x15c   : > { %v1001_v30 = vadd.f32 %v907_v35, %v397_v32  ;;  %v1322_v51 = vadd.f32 %v2043_v3, %v1218_v37  ;;  %1122 = vst.msk [vmem:[#allocation2 + $0x2f8] sm:$0xff] %vm231_vm1, %v1025_v36 }
 0x15d   : > { %v1194_v53 = vld [vmem:[#allocation2 + $0x220] sm:$0xff] }
 0x15e   : > { %v1298_v22 = vadd.f32 %v2043_v3, %v1194_v53  ;;  %1098 = vst.msk [vmem:[#allocation2 + $0x238] sm:$0xff] %vm231_vm1, %v1001_v30  ;;  %v1387_v38 = vpack.c.bf16 %v1322_v51, %v1322_v51 }
 0x160   : > { %v1371_v39 = vpack.c.bf16 %v1298_v22, %v1298_v22  ;;  %1452 = vst.msk [vmem:[%s2035_s27 + $0x170] sm:$0xf] %vm1391_vm2, %v1387_v38 }
 0x162   : > { %1436 = vst.msk [vmem:[%s2035_s27 + $0x110] sm:$0xf] %vm1391_vm2, %v1371_v39 }
 0x163   : > { %v1221_v41 = vld [vmem:[#allocation2 + $0x2f8] sm:$0xff] }
 0x164   : > { %v1325_v44 = vadd.f32 %v2043_v3, %v1221_v41 }
 0x165   : > { %v1197_v43 = vld [vmem:[#allocation2 + $0x238] sm:$0xff] }
 0x166   : > { %v1301_v46 = vadd.f32 %v2043_v3, %v1197_v43  ;;  %v1389_v47 = vpack.c.bf16 %v1325_v44, %v1325_v44 }
 0x168   : > { %v1373_v48 = vpack.c.bf16 %v1301_v46, %v1301_v46  ;;  %1454 = vst.msk [vmem:[%s2035_s27 + $0x17c] sm:$0xf] %vm1391_vm2, %v1389_v47 }
 0x16a   : > { %1438 = vst.msk [vmem:[%s2035_s27 + $0x11c] sm:$0xf] %vm1391_vm2, %v1373_v48 }
 0x16b PF: > { %s13_s14 = sadd.s32 1, %s1800_s14   ;;  %s2316_s12 = smov %s1796_s13 }
 0x16c   : > { %p10_p5 = scmp.ge.s32.totalorder %s13_s14, 4   ;;  %s2317_s13 = smov %s2319_s15 }
 0x16e   :  { %12 = sbr.rel (!%p10_p5) target bundleno = 2 (0x2), region = 73 }

// kernel: aspp_forward.11
= control target key start
LH: loop header
LB: loop body
LE: loop exit
PB: predicated region body
PF: predicated region fallthrough
CT: control target
= control target key end

     0   :  { %s510_s6 = smov 0   ;;  %s512_s7 = smov 0   ;;  %s597_s0 = inlined_call_operand.vmem [shape: bf16[2,256,64], index: 0, kind: input, shape index: {}]   ;;  %s598_s1 = inlined_call_operand.vmem [shape: f32[2,1,64], index: 1, kind: output, shape index: {}]  }
   0x1   :  { %s514_s8 = smov 0  }
   0x2 LB: > { %s23_s9 = sadd.s32 1, %s493_s7  ;;  %p363_p0 = scmp.ge.s32.totalorder %s497_s8, 1  ;;  %s497_s8 = sphi %s514_s8, %s11_s8   ;;  %s493_s7 = sphi %s512_s7, %s600_s7   ;;  %s489_s6 = sphi %s510_s6, %s599_s6  }
   0x3   : > { %p25_p1 = scmp.ge.s32.totalorder %s23_s9, 2  ;;  %p106_p2 = scmp.lt.s32.totalorder %s497_s8, 3 }
   0x5   : > { %s602_s9 = smov (%p25_p1, %s23_s9), 0  ;;  %p107_p3 = pnand %p363_p0, %p106_p2 }
   0x6   : > { %p130_p4 = scmp.lt.s32.totalorder (!%p107_p3), %s489_s6, 1 }
   0x7   : > { %110 = sbr.rel (%p107_p3) target bundleno = 96 (0x60), region = 24 }
   0xc   : > { %s604_s6 = smov (!%p130_p4, %s489_s6), 1  ;;  %vm208_vm0 = vcmask 523264   ;;  %vm286_vm2 = vcmask 516096  }
   0xd   : > { %s368_s10 = sshll.u32 %s604_s6, 7  ;;  %s143_s16 = scalar_lea.vmem %s598_s1, %s604_s6 }
   0xe   : > { %s534_s13 = scalar_lea.vmem %s597_s0, %s368_s10 }
   0xf   : > { %v370_v0 = vld [vmem:[%s534_s13] sm:$0xff]   ;;  %v433_v1 = vld [vmem:[%s534_s13 + $0x8] sm:$0xff]   ;;  %v434_v5 = vld [vmem:[%s534_s13 + $0x10] sm:$0xff]  }
  0x10   : > { %v371_v2 = vunpack.c.l.bf16 %v370_v0  ;;  %v372_v3 = vunpack.c.h.bf16 %v370_v0  ;;  %v375_v4 = vunpack.c.l.bf16 %v433_v1  ;;  %v376_v6 = vunpack.c.h.bf16 %v433_v1  ;;  %v435_v11 = vld [vmem:[%s534_s13 + $0x18] sm:$0xff]   ;;  %v436_v18 = vld [vmem:[%s534_s13 + $0x20] sm:$0xff]   ;;  %v437_v25 = vld [vmem:[%s534_s13 + $0x28] sm:$0xff]  }
  0x11   : > { %v379_v7 = vunpack.c.l.bf16 %v434_v5  ;;  %v380_v13 = vunpack.c.h.bf16 %v434_v5  ;;  %v383_v16 = vunpack.c.l.bf16 %v435_v11  ;;  %v384_v20 = vunpack.c.h.bf16 %v435_v11  ;;  %v438_v32 = vld [vmem:[%s534_s13 + $0x30] sm:$0xff]   ;;  %v439_v39 = vld [vmem:[%s534_s13 + $0x38] sm:$0xff]   ;;  %v440_v46 = vld [vmem:[%s534_s13 + $0x40] sm:$0xff]  }
  0x12   : > { %v209_v8 = vsel %vm208_vm0, %v371_v2, 0.0  ;;  %v210_v9 = vsel %vm208_vm0, %v372_v3, 0.0  ;;  %v212_v10 = vsel %vm208_vm0, %v375_v4, 0.0  ;;  %v214_v14 = vsel %vm208_vm0, %v376_v6, 0.0  ;;  %v441_v53 = vld [vmem:[%s534_s13 + $0x48] sm:$0xff]   ;;  %v442_v60 = vld [vmem:[%s534_s13 + $0x50] sm:$0xff]  }
  0x13   : > { %v211_v12 = vadd.f32 %v210_v9, %v209_v8  ;;  %v216_v17 = vsel %vm208_vm0, %v379_v7, 0.0  ;;  %v218_v21 = vsel %vm208_vm0, %v380_v13, 0.0  ;;  %v387_v23 = vunpack.c.l.bf16 %v436_v18  ;;  %v443_v3 = vld [vmem:[%s534_s13 + $0x58] sm:$0xff]  }
  0x14   : > { %v220_v24 = vsel %vm208_vm0, %v383_v16, 0.0  ;;  %v388_v27 = vunpack.c.h.bf16 %v436_v18  ;;  %v222_v28 = vsel %vm208_vm0, %v384_v20, 0.0  ;;  %v391_v30 = vunpack.c.l.bf16 %v437_v25 }
  0x15   : > { %v213_v15 = vadd.f32 %v212_v10, %v211_v12  ;;  %v224_v31 = vsel %vm208_vm0, %v387_v23, 0.0  ;;  %v392_v34 = vunpack.c.h.bf16 %v437_v25  ;;  %v395_v37 = vunpack.c.l.bf16 %v438_v32  ;;  %v444_v10 = vld [vmem:[%s534_s13 + $0x60] sm:$0xff]  }
  0x16   : > { %v226_v35 = vsel %vm208_vm0, %v388_v27, 0.0  ;;  %v228_v38 = vsel %vm208_vm0, %v391_v30, 0.0  ;;  %v396_v41 = vunpack.c.h.bf16 %v438_v32  ;;  %v399_v44 = vunpack.c.l.bf16 %v439_v39  ;;  %v447_v32 = vld [vmem:[%s534_s13 + $0x78] sm:$0xff]  }
  0x17   : > { %v215_v19 = vadd.f32 %v214_v14, %v213_v15  ;;  %v230_v42 = vsel %vm208_vm0, %v392_v34, 0.0  ;;  %v232_v45 = vsel %vm208_vm0, %v395_v37, 0.0  ;;  %v400_v48 = vunpack.c.h.bf16 %v439_v39 }
  0x18   : > { %v234_v49 = vsel %vm208_vm0, %v396_v41, 0.0  ;;  %v403_v51 = vunpack.c.l.bf16 %v440_v46  ;;  %v236_v52 = vsel %vm208_vm0, %v399_v44, 0.0  ;;  %v404_v55 = vunpack.c.h.bf16 %v440_v46 }
  0x19   : > { %v217_v22 = vadd.f32 %v216_v17, %v215_v19  ;;  %v238_v56 = vsel %vm208_vm0, %v400_v48, 0.0  ;;  %v407_v58 = vunpack.c.l.bf16 %v441_v53  ;;  %v408_v62 = vunpack.c.h.bf16 %v441_v53  ;;  %v445_v17 = vld [vmem:[%s534_s13 + $0x68] sm:$0xff]  }
  0x1a   : > { %v240_v59 = vsel %vm208_vm0, %v403_v51, 0.0  ;;  %v242_v63 = vsel %vm208_vm0, %v404_v55, 0.0  ;;  %v411_v1 = vunpack.c.l.bf16 %v442_v60  ;;  %v412_v5 = vunpack.c.h.bf16 %v442_v60 }
  0x1b   : > { %v219_v26 = vadd.f32 %v218_v21, %v217_v22  ;;  %v244_v2 = vsel %vm208_vm0, %v407_v58, 0.0  ;;  %v246_v6 = vsel %vm208_vm0, %v408_v62, 0.0  ;;  %v415_v8 = vunpack.c.l.bf16 %v443_v3 }
  0x1c   : > { %v248_v9 = vsel %vm208_vm0, %v411_v1, 0.0  ;;  %v416_v12 = vunpack.c.h.bf16 %v443_v3  ;;  %v250_v13 = vsel %vm208_vm0, %v412_v5, 0.0  ;;  %v419_v15 = vunpack.c.l.bf16 %v444_v10 }
  0x1d   : > { %v221_v29 = vadd.f32 %v220_v24, %v219_v26  ;;  %v252_v16 = vsel %vm208_vm0, %v415_v8, 0.0  ;;  %v420_v19 = vunpack.c.h.bf16 %v444_v10  ;;  %v423_v22 = vunpack.c.l.bf16 %v445_v17  ;;  %v446_v24 = vld [vmem:[%s534_s13 + $0x70] sm:$0xff]  }
  0x1e   : > { %v254_v20 = vsel %vm208_vm0, %v416_v12, 0.0  ;;  %v256_v23 = vsel %vm208_vm0, %v419_v15, 0.0  ;;  %v424_v26 = vunpack.c.h.bf16 %v445_v17  ;;  %v427_v30 = vunpack.c.l.bf16 %v446_v24 }
  0x1f   : > { %v223_v33 = vadd.f32 %v222_v28, %v221_v29  ;;  %v258_v27 = vsel %vm208_vm0, %v420_v19, 0.0  ;;  %v499_v29 = vmov 256.0   ;;  %v428_v34 = vunpack.c.h.bf16 %v446_v24 }
  0x20   : > { %473 = vrcp.f32 %v499_v29  ;;  %v431_v37 = vunpack.c.l.bf16 %v447_v32  ;;  %v432_v41 = vunpack.c.h.bf16 %v447_v32 }
  0x21   : > { %v225_v36 = vadd.f32 %v224_v31, %v223_v33  ;;  %v260_v31 = vsel %vm208_vm0, %v423_v22, 0.0 }
  0x22   : > { %v268_v44 = vsel %vm208_vm0, %v431_v37, 0.0 }
  0x23   : > { %v227_v40 = vadd.f32 %v226_v35, %v225_v36  ;;  %v262_v35 = vsel %vm208_vm0, %v424_v26, 0.0 }
  0x25   : > { %v229_v43 = vadd.f32 %v228_v38, %v227_v40  ;;  %v264_v38 = vsel %vm208_vm0, %v427_v30, 0.0 }
  0x26   : > { %v474_v39 = vpop.eup %473 }
  0x27   : > { %v231_v47 = vadd.f32 %v230_v42, %v229_v43  ;;  %v266_v42 = vsel %vm208_vm0, %v428_v34, 0.0  ;;  %vm283_vm1 = vweird.f32 %v474_v39 }
  0x29   : > { %v233_v50 = vadd.f32 %v232_v45, %v231_v47  ;;  %v279_v45 = vmul.f32 256.0, %v474_v39  ;;  %v270_v47 = vsel %vm208_vm0, %v432_v41, 0.0 }
  0x2b   : > { %v235_v54 = vadd.f32 %v234_v49, %v233_v50  ;;  %v280_v49 = vsub.f32 1.0, %v279_v45 }
  0x2d   : > { %v237_v57 = vadd.f32 %v236_v52, %v235_v54  ;;  %v281_v52 = vmul.f32 %v474_v39, %v280_v49 }
  0x2f   : > { %v239_v61 = vadd.f32 %v238_v56, %v237_v57  ;;  %v282_v55 = vadd.f32 %v474_v39, %v281_v52 }
  0x31   : > { %v241_v0 = vadd.f32 %v240_v59, %v239_v61  ;;  %v284_v58 = vsel %vm283_vm1, %v474_v39, %v282_v55 }
  0x33   : > { %v243_v4 = vadd.f32 %v242_v63, %v241_v0 }
  0x35   : > { %v245_v7 = vadd.f32 %v244_v2, %v243_v4 }
  0x37   : > { %v247_v11 = vadd.f32 %v246_v6, %v245_v7 }
  0x39   : > { %v249_v14 = vadd.f32 %v248_v9, %v247_v11 }
  0x3b   : > { %v251_v18 = vadd.f32 %v250_v13, %v249_v14 }
  0x3d   : > { %v253_v21 = vadd.f32 %v252_v16, %v251_v18 }
  0x3f   : > { %v255_v25 = vadd.f32 %v254_v20, %v253_v21 }
  0x41   : > { %v257_v28 = vadd.f32 %v256_v23, %v255_v25 }
  0x43   : > { %v259_v33 = vadd.f32 %v258_v27, %v257_v28 }
  0x45   : > { %v261_v36 = vadd.f32 %v260_v31, %v259_v33 }
  0x47   : > { %v263_v40 = vadd.f32 %v262_v35, %v261_v36 }
  0x49   : > { %v265_v43 = vadd.f32 %v264_v38, %v263_v40 }
  0x4b   : > { %v267_v46 = vadd.f32 %v266_v42, %v265_v43 }
  0x4d   : > { %v269_v48 = vadd.f32 %v268_v44, %v267_v46 }
  0x4f   : > { %v271_v50 = vadd.f32 %v270_v47, %v269_v48 }
  0x51   : > { %v272_v51 = vrot.slane %v271_v50, 4 }
  0x53   : > { %v273_v53 = vadd.f32 %v272_v51, %v271_v50 }
  0x55   : > { %v274_v54 = vrot.slane %v273_v53, 2 }
  0x57   : > { %v275_v56 = vadd.f32 %v274_v54, %v273_v53 }
  0x59   : > { %v276_v57 = vrot.slane %v275_v56, 1 }
  0x5b   : > { %v277_v59 = vadd.f32 %v276_v57, %v275_v56 }
  0x5d   : > { %v285_v60 = vmul.f32 %v284_v58, %v277_v59 }
  0x5f   : > { %287 = vst.msk [vmem:[%s143_s16] sm:$0x1] %vm286_vm2, %v285_v60 }
  0x60 PF: > { %s11_s8 = sadd.s32 1, %s497_s8   ;;  %s599_s6 = smov %s493_s7 }
  0x61   : > { %p8_p5 = scmp.ge.s32.totalorder %s11_s8, 4   ;;  %s600_s7 = smov %s602_s9 }
  0x63   :  { %10 = sbr.rel (!%p8_p5) target bundleno = 2 (0x2), region = 54 }

// kernel: aspp_forward.12
= control target key start
LH: loop header
LB: loop body
LE: loop exit
PB: predicated region body
PF: predicated region fallthrough
CT: control target
= control target key end

     0   :  { %vm19_vm0 = vcmask 254976   ;;  %v113_v1 = vmov 0.0   ;;  %vm55_vm1 = vcmask 523264   ;;  %s158_s1 = inlined_call_operand.vmem [shape: bf16[64,32], index: 1, kind: input, shape index: {}]   ;;  %s159_s2 = inlined_call_operand.vmem [shape: f32[1,32], index: 2, kind: input, shape index: {}]   ;;  %s160_s0 = inlined_call_operand.vmem [shape: bf16[2,64], index: 0, kind: input, shape index: {}]   ;;  %s161_s3 = inlined_call_operand.vmem [shape: f32[2,32], index: 3, kind: output, shape index: {}]  }
   0x1   :  { %v110_v0 = vld [vmem:[%s158_s1 + $0x18] sm:$0xff]  ;;  %20 = vst.msk [vmem:[#allocation2] sm:$0x3] %vm19_vm0, %v113_v1  ;;  %v109_v2 = vld [vmem:[%s158_s1 + $0x10] sm:$0xff]  ;;  %v108_v3 = vld [vmem:[%s158_s1 + $0x8] sm:$0xff] }
   0x2   :  { %63 = vmatpush.bf16.msra.mxu0 %v110_v0  ;;  %v107_v4 = vld [vmem:[%s158_s1] sm:$0xff] }
   0x3   :  { %v22_v5 = vld [vmem:[%s160_s0] sm:$0x1] }
   0x4   :  { %v112_v9 = vld [vmem:[%s159_s2] ss:$0 sm:$0xff] }
   0x6   :  { %64 = vmatpush.bf16.msra.mxu0 %v109_v2 }
   0x8   :  { %v21_v6 = vld [vmem:[#allocation2] sm:$0x3] }
   0xa   :  { %65 = vmatpush.bf16.msra.mxu0 %v108_v3 }
   0xe   :  { %66 = vmatpush.bf16.msra.mxu0 %v107_v4 }
  0x11   :  { %106 = vmatmul.msk.bf16.vlgmr.msra.gmra.mxu0 %vm55_vm1, %v22_v5 }
  0x8e   :  { %v68_v7 = vpop.f32.mrf.mxu0 }
  0x8f   :  { %v72_v8 = vadd.f32 %v68_v7, %v21_v6 }
  0x91   :  { %74 = vst.msk [vmem:[#allocation2] sm:$0x3] %vm19_vm0, %v72_v8 }
  0x96   :  { %v70_v10 = vpop.f32.mrf.mxu0 }
  0x98   :  { %v78_v11 = vld [vmem:[#allocation2] sm:$0x3] }
  0x99   :  { %v83_v12 = vadd.f32 %v112_v9, %v78_v11 }
  0x9b   :  { %v84_v13 = vmax.f32 %v83_v12, 0.0 }
  0x9d   :  { %85 = vst.msk [vmem:[%s161_s3] sm:$0x3] %vm19_vm0, %v84_v13 }

// kernel: aspp_forward.7
= control target key start
LH: loop header
LB: loop body
LE: loop exit
PB: predicated region body
PF: predicated region fallthrough
CT: control target
= control target key end

     0   :  { %s1098_s12 = smov 0   ;;  %s1100_s13 = smov 0   ;;  %s1351_s0 = inlined_call_operand.vmem [shape: bf16[512,64], index: 0, kind: input, shape index: {}]   ;;  %s1352_s1 = inlined_call_operand.vmem [shape: bf16[64,32], index: 1, kind: input, shape index: {}]   ;;  %s1353_s2 = inlined_call_operand.vmem [shape: f32[1,32], index: 2, kind: input, shape index: {}]   ;;  %s1354_s3 = inlined_call_operand.vmem [shape: bf16[512,32], index: 3, kind: output, shape index: {}]  }
   0x1   :  { %s1102_s14 = smov 0  }
   0x2 LB: > { %s25_s15 = sadd.s32 1, %s1071_s13  ;;  %p892_p0 = scmp.ge.s32.totalorder %s1075_s14, 1  ;;  %s1075_s14 = sphi %s1102_s14, %s13_s14   ;;  %s1071_s13 = sphi %s1100_s13, %s1356_s13   ;;  %s1067_s12 = sphi %s1098_s12, %s1355_s12  }
   0x3   : > { %p27_p1 = scmp.ge.s32.totalorder %s25_s15, 2  ;;  %p166_p2 = scmp.lt.s32.totalorder %s1075_s14, 3 }
   0x5   : > { %s1358_s15 = smov (%p27_p1, %s25_s15), 0  ;;  %p167_p3 = pnand %p892_p0, %p166_p2 }
   0x6   : > { %s893_s18 = sshll.u32 (!%p167_p3), %s1067_s12, 5 }
   0x7   : > { %170 = sbr.rel (%p167_p3) target bundleno = 236 (0xec), region = 32  ;;  %p199_p4 = scmp.lt.s32.totalorder (!%p167_p3), %s893_s18, 63 }
   0xc   : > { %v1014_v0 = vld [vmem:[%s1352_s1 + $0x18] sm:$0xff]  ;;  %v1013_v1 = vld [vmem:[%s1352_s1 + $0x10] sm:$0xff]  ;;  %s1360_s18 = smov (!%p199_p4, %s893_s18), 63  ;;  %v1012_v2 = vld [vmem:[%s1352_s1 + $0x8] sm:$0xff]  ;;  %vm433_vm0 = vcmask 523264   ;;  %vm224_vm1 = vcmask 261120  }
   0xd   : > { %486 = vmatpush.bf16.msra.mxu0 %v1014_v0  ;;  %1015 = vmatpush.bf16.msra.mxu1 %v1014_v0  ;;  %s894_s23 = sshll.u32 %s1360_s18, 2  ;;  %v1011_v3 = vld [vmem:[%s1352_s1] sm:$0xff]  ;;  %v1077_v12 = vmov 0.0   ;;  %vm771_vm2 = vcmask 257024  }
   0xe   : > { %1016 = vmatpush.bf16.msra.mxu2 %v1014_v0  ;;  %1017 = vmatpush.bf16.msra.mxu3 %v1014_v0  ;;  %s1136_s28 = scalar_lea.vmem %s1351_s0, %s894_s23  ;;  %225 = vst.msk [vmem:[#allocation2] sm:$0xff] %vm224_vm1, %v1077_v12  ;;  %v1207_v31 = vld [vmem:[%s1353_s2] ss:$0 sm:$0xff]  ;;  %s1220_s6 = scalar_lea.vmem %s1354_s3, %s894_s23 }
   0xf   : > { %v995_v4 = vld [vmem:[%s1136_s28] sm:$0xff]  ;;  %v996_v8 = vld [vmem:[%s1136_s28 + $0x8] sm:$0xff]  ;;  %226 = vst.msk [vmem:[#allocation2 + $0x8] sm:$0xff] %vm224_vm1, %v1077_v12  ;;  %v997_v13 = vld [vmem:[%s1136_s28 + $0x10] sm:$0xff] }
  0x10   : > { %v999_v5 = vld [vmem:[%s1136_s28 + $0x20] sm:$0xff]  ;;  %v1000_v9 = vld [vmem:[%s1136_s28 + $0x28] sm:$0xff]  ;;  %227 = vst.msk [vmem:[#allocation2 + $0x10] sm:$0xff] %vm224_vm1, %v1077_v12  ;;  %v1001_v14 = vld [vmem:[%s1136_s28 + $0x30] sm:$0xff] }
  0x11   : > { %487 = vmatpush.bf16.msra.mxu0 %v1013_v1  ;;  %1018 = vmatpush.bf16.msra.mxu1 %v1013_v1  ;;  %v1003_v6 = vld [vmem:[%s1136_s28 + $0x40] sm:$0xff]  ;;  %v1004_v10 = vld [vmem:[%s1136_s28 + $0x48] sm:$0xff]  ;;  %228 = vst.msk [vmem:[#allocation2 + $0x18] sm:$0xff] %vm224_vm1, %v1077_v12  ;;  %v1005_v15 = vld [vmem:[%s1136_s28 + $0x50] sm:$0xff] }
  0x12   : > { %1019 = vmatpush.bf16.msra.mxu2 %v1013_v1  ;;  %1020 = vmatpush.bf16.msra.mxu3 %v1013_v1  ;;  %v1007_v7 = vld [vmem:[%s1136_s28 + $0x60] sm:$0xff]  ;;  %v1008_v11 = vld [vmem:[%s1136_s28 + $0x68] sm:$0xff]  ;;  %229 = vst.msk [vmem:[#allocation2 + $0x20] sm:$0xff] %vm224_vm1, %v1077_v12  ;;  %v1009_v16 = vld [vmem:[%s1136_s28 + $0x70] sm:$0xff] }
  0x13   : > { %230 = vst.msk [vmem:[#allocation2 + $0x28] sm:$0xff] %vm224_vm1, %v1077_v12  ;;  %v998_v17 = vld [vmem:[%s1136_s28 + $0x18] sm:$0xff] }
  0x14   : > { %231 = vst.msk [vmem:[#allocation2 + $0x30] sm:$0xff] %vm224_vm1, %v1077_v12  ;;  %v1002_v18 = vld [vmem:[%s1136_s28 + $0x38] sm:$0xff] }
  0x15   : > { %488 = vmatpush.bf16.msra.mxu0 %v1012_v2  ;;  %1021 = vmatpush.bf16.msra.mxu1 %v1012_v2  ;;  %232 = vst.msk [vmem:[#allocation2 + $0x38] sm:$0xff] %vm224_vm1, %v1077_v12  ;;  %v1006_v19 = vld [vmem:[%s1136_s28 + $0x58] sm:$0xff]  ;;  %v257_v21 = vld [vmem:[#allocation2] sm:$0xff] }
  0x16   : > { %1022 = vmatpush.bf16.msra.mxu2 %v1012_v2  ;;  %1023 = vmatpush.bf16.msra.mxu3 %v1012_v2  ;;  %233 = vst.msk [vmem:[#allocation2 + $0x40] sm:$0xff] %vm224_vm1, %v1077_v12  ;;  %v1010_v20 = vld [vmem:[%s1136_s28 + $0x78] sm:$0xff]  ;;  %v258_v29 = vld [vmem:[#allocation2 + $0x8] sm:$0xff] }
  0x17   : > { %234 = vst.msk [vmem:[#allocation2 + $0x48] sm:$0xff] %vm224_vm1, %v1077_v12  ;;  %v259_v48 = vld [vmem:[#allocation2 + $0x10] sm:$0xff] }
  0x18   : > { %235 = vst.msk [vmem:[#allocation2 + $0x50] sm:$0xff] %vm224_vm1, %v1077_v12 }
  0x19   : > { %489 = vmatpush.bf16.msra.mxu0 %v1011_v3  ;;  %1024 = vmatpush.bf16.msra.mxu1 %v1011_v3  ;;  %236 = vst.msk [vmem:[#allocation2 + $0x58] sm:$0xff] %vm224_vm1, %v1077_v12 }
  0x1a   : > { %1025 = vmatpush.bf16.msra.mxu2 %v1011_v3  ;;  %1026 = vmatpush.bf16.msra.mxu3 %v1011_v3  ;;  %237 = vst.msk [vmem:[#allocation2 + $0x60] sm:$0xff] %vm224_vm1, %v1077_v12 }
  0x1b   : > { %238 = vst.msk [vmem:[#allocation2 + $0x68] sm:$0xff] %vm224_vm1, %v1077_v12 }
  0x1c   : > { %977 = vmatmul.msk.bf16.vlgmr.msra.gmra.mxu0 %vm433_vm0, %v995_v4  ;;  %981 = vmatmul.msk.bf16.vlgmr.msra.gmra.mxu1 %vm433_vm0, %v999_v5  ;;  %239 = vst.msk [vmem:[#allocation2 + $0x70] sm:$0xff] %vm224_vm1, %v1077_v12 }
  0x1d   : > { %985 = vmatmul.msk.bf16.vlgmr.msra.gmra.mxu2 %vm433_vm0, %v1003_v6  ;;  %989 = vmatmul.msk.bf16.vlgmr.msra.gmra.mxu3 %vm433_vm0, %v1007_v7  ;;  %240 = vst.msk [vmem:[#allocation2 + $0x78] sm:$0xff] %vm224_vm1, %v1077_v12  ;;  %v265_v22 = vld [vmem:[#allocation2 + $0x40] sm:$0xff] }
  0x1e   : > { %241 = vst.msk [vmem:[#allocation2 + $0x80] sm:$0xff] %vm224_vm1, %v1077_v12  ;;  %v266_v30 = vld [vmem:[#allocation2 + $0x48] sm:$0xff] }
  0x1f   : > { %242 = vst.msk [vmem:[#allocation2 + $0x88] sm:$0xff] %vm224_vm1, %v1077_v12  ;;  %v267_v52 = vld [vmem:[#allocation2 + $0x50] sm:$0xff] }
  0x20   : > { %243 = vst.msk [vmem:[#allocation2 + $0x90] sm:$0xff] %vm224_vm1, %v1077_v12 }
  0x21   : > { %244 = vst.msk [vmem:[#allocation2 + $0x98] sm:$0xff] %vm224_vm1, %v1077_v12 }
  0x22   : > { %245 = vst.msk [vmem:[#allocation2 + $0xa0] sm:$0xff] %vm224_vm1, %v1077_v12 }
  0x23   : > { %246 = vst.msk [vmem:[#allocation2 + $0xa8] sm:$0xff] %vm224_vm1, %v1077_v12 }
  0x24   : > { %247 = vst.msk [vmem:[#allocation2 + $0xb0] sm:$0xff] %vm224_vm1, %v1077_v12 }
  0x25   : > { %248 = vst.msk [vmem:[#allocation2 + $0xb8] sm:$0xff] %vm224_vm1, %v1077_v12  ;;  %v273_v27 = vld [vmem:[#allocation2 + $0x80] sm:$0xff] }
  0x26   : > { %249 = vst.msk [vmem:[#allocation2 + $0xc0] sm:$0xff] %vm224_vm1, %v1077_v12  ;;  %v274_v45 = vld [vmem:[#allocation2 + $0x88] sm:$0xff] }
  0x27   : > { %250 = vst.msk [vmem:[#allocation2 + $0xc8] sm:$0xff] %vm224_vm1, %v1077_v12  ;;  %v275_v6 = vld [vmem:[#allocation2 + $0x90] sm:$0xff] }
  0x28   : > { %251 = vst.msk [vmem:[#allocation2 + $0xd0] sm:$0xff] %vm224_vm1, %v1077_v12 }
  0x29   : > { %252 = vst.msk [vmem:[#allocation2 + $0xd8] sm:$0xff] %vm224_vm1, %v1077_v12 }
  0x2a   : > { %253 = vst.msk [vmem:[#allocation2 + $0xe0] sm:$0xff] %vm224_vm1, %v1077_v12 }
  0x2b   : > { %254 = vst.msk [vmem:[#allocation2 + $0xe8] sm:$0xff] %vm224_vm1, %v1077_v12 }
  0x2c   : > { %978 = vmatmul.msk.bf16.gmra.mxu0 %vm433_vm0, %v996_v8  ;;  %982 = vmatmul.msk.bf16.gmra.mxu1 %vm433_vm0, %v1000_v9  ;;  %255 = vst.msk [vmem:[#allocation2 + $0xf0] sm:$0xff] %vm224_vm1, %v1077_v12 }
  0x2d   : > { %986 = vmatmul.msk.bf16.gmra.mxu2 %vm433_vm0, %v1004_v10  ;;  %990 = vmatmul.msk.bf16.gmra.mxu3 %vm433_vm0, %v1008_v11  ;;  %256 = vst.msk [vmem:[#allocation2 + $0xf8] sm:$0xff] %vm224_vm1, %v1077_v12  ;;  %v281_v28 = vld [vmem:[#allocation2 + $0xc0] sm:$0xff] }
  0x2e   : > { %v282_v46 = vld [vmem:[#allocation2 + $0xc8] sm:$0xff] }
  0x2f   : > { %v283_v9 = vld [vmem:[#allocation2 + $0xd0] sm:$0xff] }
  0x3c   : > { %979 = vmatmul.msk.bf16.gmra.mxu0 %vm433_vm0, %v997_v13  ;;  %983 = vmatmul.msk.bf16.gmra.mxu1 %vm433_vm0, %v1001_v14  ;;  %v260_v14 = vld [vmem:[#allocation2 + $0x18] sm:$0xff] }
  0x3d   : > { %987 = vmatmul.msk.bf16.gmra.mxu2 %vm433_vm0, %v1005_v15  ;;  %991 = vmatmul.msk.bf16.gmra.mxu3 %vm433_vm0, %v1009_v16 }
  0x4c   : > { %980 = vmatmul.msk.bf16.gmra.mxu0 %vm433_vm0, %v998_v17  ;;  %984 = vmatmul.msk.bf16.gmra.mxu1 %vm433_vm0, %v1002_v18  ;;  %v268_v18 = vld [vmem:[#allocation2 + $0x58] sm:$0xff] }
  0x4d   : > { %988 = vmatmul.msk.bf16.gmra.mxu2 %vm433_vm0, %v1006_v19  ;;  %992 = vmatmul.msk.bf16.gmra.mxu3 %vm433_vm0, %v1010_v20 }
  0x99   : > { %v491_v23 = vpop.f32.mrf.mxu0  ;;  %v511_v24 = vpop.f32.mrf.mxu1 }
  0x9a   : > { %v571_v25 = vadd.f32 %v491_v23, %v257_v21  ;;  %v579_v26 = vadd.f32 %v511_v24, %v265_v22 }
  0x9c   : > { %604 = vst.msk [vmem:[#allocation2] sm:$0xff] %vm224_vm1, %v571_v25 }
  0x9d   : > { %612 = vst.msk [vmem:[#allocation2 + $0x40] sm:$0xff] %vm224_vm1, %v579_v26 }
  0xa0   : > { %v531_v32 = vpop.f32.mrf.mxu2  ;;  %v551_v33 = vpop.f32.mrf.mxu3 }
  0xa1   : > { %v587_v34 = vadd.f32 %v531_v32, %v273_v27  ;;  %v595_v35 = vadd.f32 %v551_v33, %v281_v28  ;;  %v493_v36 = vpop.f32.mrf.mxu0  ;;  %v513_v37 = vpop.f32.mrf.mxu1 }
  0xa2   : > { %v572_v38 = vadd.f32 %v493_v36, %v258_v29  ;;  %v580_v39 = vadd.f32 %v513_v37, %v266_v30 }
  0xa3   : > { %v639_v40 = vld [vmem:[#allocation2] sm:$0xff]  ;;  %620 = vst.msk [vmem:[#allocation2 + $0x80] sm:$0xff] %vm224_vm1, %v587_v34 }
  0xa4   : > { %v675_v41 = vadd.f32 %v1207_v31, %v639_v40  ;;  %v647_v42 = vld [vmem:[#allocation2 + $0x40] sm:$0xff]  ;;  %628 = vst.msk [vmem:[#allocation2 + $0xc0] sm:$0xff] %vm224_vm1, %v595_v35  ;;  %v276_v35 = vld [vmem:[#allocation2 + $0x98] sm:$0xff] }
  0xa5   : > { %v683_v43 = vadd.f32 %v1207_v31, %v647_v42  ;;  %605 = vst.msk [vmem:[#allocation2 + $0x8] sm:$0xff] %vm224_vm1, %v572_v38 }
  0xa6   : > { %v707_v44 = vmax.f32 %v675_v41, 0.0  ;;  %613 = vst.msk [vmem:[#allocation2 + $0x48] sm:$0xff] %vm224_vm1, %v580_v39  ;;  %v284_v39 = vld [vmem:[#allocation2 + $0xd8] sm:$0xff] }
  0xa7   : > { %v715_v47 = vmax.f32 %v683_v43, 0.0  ;;  %v261_v43 = vld [vmem:[#allocation2 + $0x20] sm:$0xff] }
  0xa8   : > { %v739_v49 = vpack.c.bf16 %v707_v44, %v707_v44  ;;  %v533_v50 = vpop.f32.mrf.mxu2  ;;  %v553_v51 = vpop.f32.mrf.mxu3 }
  0xa9   : > { %v747_v53 = vpack.c.bf16 %v715_v47, %v715_v47  ;;  %v588_v54 = vadd.f32 %v533_v50, %v274_v45  ;;  %v596_v55 = vadd.f32 %v553_v51, %v282_v46  ;;  %v496_v56 = vpop.f32.mrf.mxu0  ;;  %v516_v57 = vpop.f32.mrf.mxu1 }
  0xaa   : > { %772 = vst.msk [vmem:[%s1220_s6] sm:$0xf] %vm771_vm2, %v739_v49  ;;  %v655_v58 = vld [vmem:[#allocation2 + $0x80] sm:$0xff]  ;;  %v573_v59 = vadd.f32 %v496_v56, %v259_v48  ;;  %v581_v62 = vadd.f32 %v516_v57, %v267_v52 }
  0xab   : > { %780 = vst.msk [vmem:[%s1220_s6 + $0x20] sm:$0xf] %vm771_vm2, %v747_v53  ;;  %v691_v60 = vadd.f32 %v1207_v31, %v655_v58  ;;  %v663_v61 = vld [vmem:[#allocation2 + $0xc0] sm:$0xff] }
  0xac   : > { %v699_v63 = vadd.f32 %v1207_v31, %v663_v61  ;;  %v640_v0 = vld [vmem:[#allocation2 + $0x8] sm:$0xff]  ;;  %621 = vst.msk [vmem:[#allocation2 + $0x88] sm:$0xff] %vm224_vm1, %v588_v54  ;;  %v269_v48 = vld [vmem:[#allocation2 + $0x60] sm:$0xff] }
  0xad   : > { %v723_v1 = vmax.f32 %v691_v60, 0.0  ;;  %v676_v2 = vadd.f32 %v1207_v31, %v640_v0  ;;  %v648_v3 = vld [vmem:[#allocation2 + $0x48] sm:$0xff]  ;;  %629 = vst.msk [vmem:[#allocation2 + $0xc8] sm:$0xff] %vm224_vm1, %v596_v55 }
  0xae   : > { %v731_v4 = vmax.f32 %v699_v63, 0.0  ;;  %v684_v5 = vadd.f32 %v1207_v31, %v648_v3  ;;  %606 = vst.msk [vmem:[#allocation2 + $0x10] sm:$0xff] %vm224_vm1, %v573_v59  ;;  %v277_v63 = vld [vmem:[#allocation2 + $0xa0] sm:$0xff] }
  0xaf   : > { %v755_v7 = vpack.c.bf16 %v723_v1, %v723_v1  ;;  %v708_v8 = vmax.f32 %v676_v2, 0.0  ;;  %614 = vst.msk [vmem:[#allocation2 + $0x50] sm:$0xff] %vm224_vm1, %v581_v62 }
  0xb0   : > { %v763_v10 = vpack.c.bf16 %v731_v4, %v731_v4  ;;  %v716_v11 = vmax.f32 %v684_v5, 0.0  ;;  %v536_v12 = vpop.f32.mrf.mxu2  ;;  %v556_v13 = vpop.f32.mrf.mxu3  ;;  %v285_v4 = vld [vmem:[#allocation2 + $0xe0] sm:$0xff] }
  0xb1   : > { %788 = vst.msk [vmem:[%s1220_s6 + $0x40] sm:$0xf] %vm771_vm2, %v755_v7  ;;  %v740_v15 = vpack.c.bf16 %v708_v8, %v708_v8  ;;  %v589_v16 = vadd.f32 %v536_v12, %v275_v6  ;;  %v498_v17 = vpop.f32.mrf.mxu0  ;;  %v518_v19 = vpop.f32.mrf.mxu1  ;;  %v597_v21 = vadd.f32 %v556_v13, %v283_v9  ;;  %v262_v9 = vld [vmem:[#allocation2 + $0x28] sm:$0xff] }
  0xb2   : > { %796 = vst.msk [vmem:[%s1220_s6 + $0x60] sm:$0xf] %vm771_vm2, %v763_v10  ;;  %v748_v20 = vpack.c.bf16 %v716_v11, %v716_v11  ;;  %v574_v23 = vadd.f32 %v498_v17, %v260_v14  ;;  %v582_v26 = vadd.f32 %v518_v19, %v268_v18  ;;  %v270_v12 = vld [vmem:[#allocation2 + $0x68] sm:$0xff] }
  0xb3   : > { %773 = vst.msk [vmem:[%s1220_s6 + $0x4] sm:$0xf] %vm771_vm2, %v740_v15  ;;  %v656_v22 = vld [vmem:[#allocation2 + $0x88] sm:$0xff] }
  0xb4   : > { %781 = vst.msk [vmem:[%s1220_s6 + $0x24] sm:$0xf] %vm771_vm2, %v748_v20  ;;  %v692_v24 = vadd.f32 %v1207_v31, %v656_v22  ;;  %v664_v25 = vld [vmem:[#allocation2 + $0xc8] sm:$0xff] }
  0xb5   : > { %v700_v27 = vadd.f32 %v1207_v31, %v664_v25  ;;  %v641_v28 = vld [vmem:[#allocation2 + $0x10] sm:$0xff]  ;;  %622 = vst.msk [vmem:[#allocation2 + $0x90] sm:$0xff] %vm224_vm1, %v589_v16  ;;  %v278_v20 = vld [vmem:[#allocation2 + $0xa8] sm:$0xff] }
  0xb6   : > { %v724_v29 = vmax.f32 %v692_v24, 0.0  ;;  %v677_v30 = vadd.f32 %v1207_v31, %v641_v28  ;;  %v649_v32 = vld [vmem:[#allocation2 + $0x50] sm:$0xff]  ;;  %630 = vst.msk [vmem:[#allocation2 + $0xd0] sm:$0xff] %vm224_vm1, %v597_v21 }
  0xb7   : > { %v732_v33 = vmax.f32 %v700_v27, 0.0  ;;  %v685_v34 = vadd.f32 %v1207_v31, %v649_v32  ;;  %607 = vst.msk [vmem:[#allocation2 + $0x18] sm:$0xff] %vm224_vm1, %v574_v23  ;;  %v286_v32 = vld [vmem:[#allocation2 + $0xe8] sm:$0xff] }
  0xb8   : > { %v756_v36 = vpack.c.bf16 %v724_v29, %v724_v29  ;;  %v709_v37 = vmax.f32 %v677_v30, 0.0  ;;  %615 = vst.msk [vmem:[#allocation2 + $0x58] sm:$0xff] %vm224_vm1, %v582_v26  ;;  %v538_v38 = vpop.f32.mrf.mxu2  ;;  %v558_v40 = vpop.f32.mrf.mxu3 }
  0xb9   : > { %v764_v41 = vpack.c.bf16 %v732_v33, %v732_v33  ;;  %v717_v42 = vmax.f32 %v685_v34, 0.0  ;;  %v501_v44 = vpop.f32.mrf.mxu0  ;;  %v521_v45 = vpop.f32.mrf.mxu1  ;;  %v590_v47 = vadd.f32 %v538_v38, %v276_v35  ;;  %v598_v50 = vadd.f32 %v558_v40, %v284_v39  ;;  %v271_v40 = vld [vmem:[#allocation2 + $0x70] sm:$0xff] }
  0xba   : > { %789 = vst.msk [vmem:[%s1220_s6 + $0x44] sm:$0xf] %vm771_vm2, %v756_v36  ;;  %v741_v46 = vpack.c.bf16 %v709_v37, %v709_v37  ;;  %v575_v52 = vadd.f32 %v501_v44, %v261_v43  ;;  %v583_v55 = vadd.f32 %v521_v45, %v269_v48  ;;  %v263_v36 = vld [vmem:[#allocation2 + $0x30] sm:$0xff] }
  0xbb   : > { %797 = vst.msk [vmem:[%s1220_s6 + $0x64] sm:$0xf] %vm771_vm2, %v764_v41  ;;  %v749_v49 = vpack.c.bf16 %v717_v42, %v717_v42  ;;  %v287_v48 = vld [vmem:[#allocation2 + $0xf0] sm:$0xff] }
  0xbc   : > { %774 = vst.msk [vmem:[%s1220_s6 + $0x8] sm:$0xf] %vm771_vm2, %v741_v46  ;;  %v657_v51 = vld [vmem:[#allocation2 + $0x90] sm:$0xff] }
  0xbd   : > { %782 = vst.msk [vmem:[%s1220_s6 + $0x28] sm:$0xf] %vm771_vm2, %v749_v49  ;;  %v693_v53 = vadd.f32 %v1207_v31, %v657_v51  ;;  %v665_v54 = vld [vmem:[#allocation2 + $0xd0] sm:$0xff] }
  0xbe   : > { %v701_v56 = vadd.f32 %v1207_v31, %v665_v54  ;;  %v642_v57 = vld [vmem:[#allocation2 + $0x18] sm:$0xff]  ;;  %623 = vst.msk [vmem:[#allocation2 + $0x98] sm:$0xff] %vm224_vm1, %v590_v47  ;;  %v279_v47 = vld [vmem:[#allocation2 + $0xb0] sm:$0xff] }
  0xbf   : > { %v725_v58 = vmax.f32 %v693_v53, 0.0  ;;  %v678_v59 = vadd.f32 %v1207_v31, %v642_v57  ;;  %v650_v60 = vld [vmem:[#allocation2 + $0x58] sm:$0xff]  ;;  %631 = vst.msk [vmem:[#allocation2 + $0xd8] sm:$0xff] %vm224_vm1, %v598_v50 }
  0xc0   : > { %v733_v61 = vmax.f32 %v701_v56, 0.0  ;;  %v686_v62 = vadd.f32 %v1207_v31, %v650_v60  ;;  %608 = vst.msk [vmem:[#allocation2 + $0x20] sm:$0xff] %vm224_vm1, %v575_v52  ;;  %v541_v0 = vpop.f32.mrf.mxu2  ;;  %v561_v1 = vpop.f32.mrf.mxu3 }
  0xc1   : > { %v757_v2 = vpack.c.bf16 %v725_v58, %v725_v58  ;;  %v710_v3 = vmax.f32 %v678_v59, 0.0  ;;  %616 = vst.msk [vmem:[#allocation2 + $0x60] sm:$0xff] %vm224_vm1, %v583_v55  ;;  %v503_v5 = vpop.f32.mrf.mxu0  ;;  %v523_v6 = vpop.f32.mrf.mxu1  ;;  %v591_v11 = vadd.f32 %v541_v0, %v277_v63  ;;  %v599_v14 = vadd.f32 %v561_v1, %v285_v4 }
  0xc2   : > { %v765_v7 = vpack.c.bf16 %v733_v61, %v733_v61  ;;  %v718_v8 = vmax.f32 %v686_v62, 0.0  ;;  %v576_v16 = vadd.f32 %v503_v5, %v262_v9  ;;  %v584_v19 = vadd.f32 %v523_v6, %v270_v12  ;;  %v272_v6 = vld [vmem:[#allocation2 + $0x78] sm:$0xff] }
  0xc3   : > { %790 = vst.msk [vmem:[%s1220_s6 + $0x48] sm:$0xf] %vm771_vm2, %v757_v2  ;;  %v742_v10 = vpack.c.bf16 %v710_v3, %v710_v3  ;;  %v264_v2 = vld [vmem:[#allocation2 + $0x38] sm:$0xff] }
  0xc4   : > { %798 = vst.msk [vmem:[%s1220_s6 + $0x68] sm:$0xf] %vm771_vm2, %v765_v7  ;;  %v750_v13 = vpack.c.bf16 %v718_v8, %v718_v8  ;;  %v280_v12 = vld [vmem:[#allocation2 + $0xb8] sm:$0xff] }
  0xc5   : > { %775 = vst.msk [vmem:[%s1220_s6 + $0xc] sm:$0xf] %vm771_vm2, %v742_v10  ;;  %v658_v15 = vld [vmem:[#allocation2 + $0x98] sm:$0xff] }
  0xc6   : > { %783 = vst.msk [vmem:[%s1220_s6 + $0x2c] sm:$0xf] %vm771_vm2, %v750_v13  ;;  %v694_v17 = vadd.f32 %v1207_v31, %v658_v15  ;;  %v666_v18 = vld [vmem:[#allocation2 + $0xd8] sm:$0xff] }
  0xc7   : > { %v702_v21 = vadd.f32 %v1207_v31, %v666_v18  ;;  %v643_v22 = vld [vmem:[#allocation2 + $0x20] sm:$0xff]  ;;  %624 = vst.msk [vmem:[#allocation2 + $0xa0] sm:$0xff] %vm224_vm1, %v591_v11  ;;  %v288_v13 = vld [vmem:[#allocation2 + $0xf8] sm:$0xff] }
  0xc8   : > { %v726_v23 = vmax.f32 %v694_v17, 0.0  ;;  %v679_v24 = vadd.f32 %v1207_v31, %v643_v22  ;;  %v651_v25 = vld [vmem:[#allocation2 + $0x60] sm:$0xff]  ;;  %632 = vst.msk [vmem:[#allocation2 + $0xe0] sm:$0xff] %vm224_vm1, %v599_v14  ;;  %v543_v26 = vpop.f32.mrf.mxu2  ;;  %v563_v27 = vpop.f32.mrf.mxu3 }
  0xc9   : > { %v734_v28 = vmax.f32 %v702_v21, 0.0  ;;  %v687_v29 = vadd.f32 %v1207_v31, %v651_v25  ;;  %609 = vst.msk [vmem:[#allocation2 + $0x28] sm:$0xff] %vm224_vm1, %v576_v16  ;;  %v592_v30 = vadd.f32 %v543_v26, %v278_v20  ;;  %v506_v33 = vpop.f32.mrf.mxu0  ;;  %v526_v37 = vpop.f32.mrf.mxu1  ;;  %v600_v42 = vadd.f32 %v563_v27, %v286_v32 }
  0xca   : > { %v758_v34 = vpack.c.bf16 %v726_v23, %v726_v23  ;;  %v711_v35 = vmax.f32 %v679_v24, 0.0  ;;  %617 = vst.msk [vmem:[#allocation2 + $0x68] sm:$0xff] %vm224_vm1, %v584_v19  ;;  %v577_v44 = vadd.f32 %v506_v33, %v263_v36  ;;  %v585_v46 = vadd.f32 %v526_v37, %v271_v40 }
  0xcb   : > { %v766_v38 = vpack.c.bf16 %v734_v28, %v734_v28  ;;  %v719_v39 = vmax.f32 %v687_v29, 0.0  ;;  %625 = vst.msk [vmem:[#allocation2 + $0xa8] sm:$0xff] %vm224_vm1, %v592_v30 }
  0xcc   : > { %791 = vst.msk [vmem:[%s1220_s6 + $0x4c] sm:$0xf] %vm771_vm2, %v758_v34  ;;  %v743_v41 = vpack.c.bf16 %v711_v35, %v711_v35 }
  0xcd   : > { %799 = vst.msk [vmem:[%s1220_s6 + $0x6c] sm:$0xf] %vm771_vm2, %v766_v38  ;;  %v751_v43 = vpack.c.bf16 %v719_v39, %v719_v39 }
  0xce   : > { %776 = vst.msk [vmem:[%s1220_s6 + $0x10] sm:$0xf] %vm771_vm2, %v743_v41  ;;  %v659_v45 = vld [vmem:[#allocation2 + $0xa0] sm:$0xff] }
  0xcf   : > { %784 = vst.msk [vmem:[%s1220_s6 + $0x30] sm:$0xf] %vm771_vm2, %v751_v43  ;;  %v695_v49 = vadd.f32 %v1207_v31, %v659_v45  ;;  %v667_v50 = vld [vmem:[#allocation2 + $0xe0] sm:$0xff] }
  0xd0   : > { %v703_v51 = vadd.f32 %v1207_v31, %v667_v50  ;;  %v644_v52 = vld [vmem:[#allocation2 + $0x28] sm:$0xff]  ;;  %633 = vst.msk [vmem:[#allocation2 + $0xe8] sm:$0xff] %vm224_vm1, %v600_v42  ;;  %v546_v53 = vpop.f32.mrf.mxu2  ;;  %v566_v54 = vpop.f32.mrf.mxu3 }
  0xd1   : > { %v727_v55 = vmax.f32 %v695_v49, 0.0  ;;  %v680_v56 = vadd.f32 %v1207_v31, %v644_v52  ;;  %v652_v57 = vld [vmem:[#allocation2 + $0x68] sm:$0xff]  ;;  %610 = vst.msk [vmem:[#allocation2 + $0x30] sm:$0xff] %vm224_vm1, %v577_v44  ;;  %v593_v58 = vadd.f32 %v546_v53, %v279_v47  ;;  %v601_v59 = vadd.f32 %v566_v54, %v287_v48  ;;  %v508_v3 = vpop.f32.mrf.mxu0  ;;  %v528_v7 = vpop.f32.mrf.mxu1 }
  0xd2   : > { %v735_v60 = vmax.f32 %v703_v51, 0.0  ;;  %v688_v61 = vadd.f32 %v1207_v31, %v652_v57  ;;  %v660_v62 = vld [vmem:[#allocation2 + $0xa8] sm:$0xff]  ;;  %618 = vst.msk [vmem:[#allocation2 + $0x70] sm:$0xff] %vm224_vm1, %v585_v46  ;;  %v578_v11 = vadd.f32 %v508_v3, %v264_v2  ;;  %v586_v16 = vadd.f32 %v528_v7, %v272_v6 }
  0xd3   : > { %v759_v63 = vpack.c.bf16 %v727_v55, %v727_v55  ;;  %v712_v0 = vmax.f32 %v680_v56, 0.0  ;;  %v696_v1 = vadd.f32 %v1207_v31, %v660_v62  ;;  %626 = vst.msk [vmem:[#allocation2 + $0xb0] sm:$0xff] %vm224_vm1, %v593_v58 }
  0xd4   : > { %v767_v4 = vpack.c.bf16 %v735_v60, %v735_v60  ;;  %v720_v5 = vmax.f32 %v688_v61, 0.0  ;;  %634 = vst.msk [vmem:[#allocation2 + $0xf0] sm:$0xff] %vm224_vm1, %v601_v59 }
  0xd5   : > { %792 = vst.msk [vmem:[%s1220_s6 + $0x50] sm:$0xf] %vm771_vm2, %v759_v63  ;;  %v744_v8 = vpack.c.bf16 %v712_v0, %v712_v0  ;;  %v728_v9 = vmax.f32 %v696_v1, 0.0 }
  0xd6   : > { %800 = vst.msk [vmem:[%s1220_s6 + $0x70] sm:$0xf] %vm771_vm2, %v767_v4  ;;  %v752_v10 = vpack.c.bf16 %v720_v5, %v720_v5 }
  0xd7   : > { %777 = vst.msk [vmem:[%s1220_s6 + $0x14] sm:$0xf] %vm771_vm2, %v744_v8  ;;  %v760_v14 = vpack.c.bf16 %v728_v9, %v728_v9  ;;  %v668_v15 = vld [vmem:[#allocation2 + $0xe8] sm:$0xff] }
  0xd8   : > { %785 = vst.msk [vmem:[%s1220_s6 + $0x34] sm:$0xf] %vm771_vm2, %v752_v10  ;;  %v704_v17 = vadd.f32 %v1207_v31, %v668_v15  ;;  %v645_v18 = vld [vmem:[#allocation2 + $0x30] sm:$0xff]  ;;  %v548_v19 = vpop.f32.mrf.mxu2  ;;  %v568_v20 = vpop.f32.mrf.mxu3 }
  0xd9   : > { %793 = vst.msk [vmem:[%s1220_s6 + $0x54] sm:$0xf] %vm771_vm2, %v760_v14  ;;  %v681_v21 = vadd.f32 %v1207_v31, %v645_v18  ;;  %v653_v22 = vld [vmem:[#allocation2 + $0x70] sm:$0xff]  ;;  %v594_v23 = vadd.f32 %v548_v19, %v280_v12  ;;  %v602_v24 = vadd.f32 %v568_v20, %v288_v13 }
  0xda   : > { %v736_v25 = vmax.f32 %v704_v17, 0.0  ;;  %v689_v26 = vadd.f32 %v1207_v31, %v653_v22  ;;  %v661_v27 = vld [vmem:[#allocation2 + $0xb0] sm:$0xff]  ;;  %611 = vst.msk [vmem:[#allocation2 + $0x38] sm:$0xff] %vm224_vm1, %v578_v11 }
  0xdb   : > { %v713_v28 = vmax.f32 %v681_v21, 0.0  ;;  %v697_v29 = vadd.f32 %v1207_v31, %v661_v27  ;;  %v669_v30 = vld [vmem:[#allocation2 + $0xf0] sm:$0xff]  ;;  %619 = vst.msk [vmem:[#allocation2 + $0x78] sm:$0xff] %vm224_vm1, %v586_v16 }
  0xdc   : > { %v768_v32 = vpack.c.bf16 %v736_v25, %v736_v25  ;;  %v721_v33 = vmax.f32 %v689_v26, 0.0  ;;  %v705_v34 = vadd.f32 %v1207_v31, %v669_v30  ;;  %627 = vst.msk [vmem:[#allocation2 + $0xb8] sm:$0xff] %vm224_vm1, %v594_v23 }
  0xdd   : > { %v745_v35 = vpack.c.bf16 %v713_v28, %v713_v28  ;;  %v729_v36 = vmax.f32 %v697_v29, 0.0  ;;  %635 = vst.msk [vmem:[#allocation2 + $0xf8] sm:$0xff] %vm224_vm1, %v602_v24 }
  0xde   : > { %801 = vst.msk [vmem:[%s1220_s6 + $0x74] sm:$0xf] %vm771_vm2, %v768_v32  ;;  %v753_v37 = vpack.c.bf16 %v721_v33, %v721_v33  ;;  %v737_v38 = vmax.f32 %v705_v34, 0.0 }
  0xdf   : > { %778 = vst.msk [vmem:[%s1220_s6 + $0x18] sm:$0xf] %vm771_vm2, %v745_v35  ;;  %v761_v39 = vpack.c.bf16 %v729_v36, %v729_v36 }
  0xe0   : > { %786 = vst.msk [vmem:[%s1220_s6 + $0x38] sm:$0xf] %vm771_vm2, %v753_v37  ;;  %v769_v40 = vpack.c.bf16 %v737_v38, %v737_v38 }
  0xe1   : > { %794 = vst.msk [vmem:[%s1220_s6 + $0x58] sm:$0xf] %vm771_vm2, %v761_v39  ;;  %v646_v41 = vld [vmem:[#allocation2 + $0x38] sm:$0xff] }
  0xe2   : > { %802 = vst.msk [vmem:[%s1220_s6 + $0x78] sm:$0xf] %vm771_vm2, %v769_v40  ;;  %v682_v42 = vadd.f32 %v1207_v31, %v646_v41  ;;  %v654_v43 = vld [vmem:[#allocation2 + $0x78] sm:$0xff] }
  0xe3   : > { %v690_v44 = vadd.f32 %v1207_v31, %v654_v43  ;;  %v662_v45 = vld [vmem:[#allocation2 + $0xb8] sm:$0xff] }
  0xe4   : > { %v714_v46 = vmax.f32 %v682_v42, 0.0  ;;  %v698_v47 = vadd.f32 %v1207_v31, %v662_v45  ;;  %v670_v48 = vld [vmem:[#allocation2 + $0xf8] sm:$0xff] }
  0xe5   : > { %v722_v49 = vmax.f32 %v690_v44, 0.0  ;;  %v706_v50 = vadd.f32 %v1207_v31, %v670_v48 }
  0xe6   : > { %v746_v51 = vpack.c.bf16 %v714_v46, %v714_v46  ;;  %v730_v52 = vmax.f32 %v698_v47, 0.0 }
  0xe7   : > { %v754_v53 = vpack.c.bf16 %v722_v49, %v722_v49  ;;  %v738_v54 = vmax.f32 %v706_v50, 0.0 }
  0xe8   : > { %779 = vst.msk [vmem:[%s1220_s6 + $0x1c] sm:$0xf] %vm771_vm2, %v746_v51  ;;  %v762_v55 = vpack.c.bf16 %v730_v52, %v730_v52 }
  0xe9   : > { %787 = vst.msk [vmem:[%s1220_s6 + $0x3c] sm:$0xf] %vm771_vm2, %v754_v53  ;;  %v770_v56 = vpack.c.bf16 %v738_v54, %v738_v54 }
  0xea   : > { %795 = vst.msk [vmem:[%s1220_s6 + $0x5c] sm:$0xf] %vm771_vm2, %v762_v55 }
  0xeb   : > { %803 = vst.msk [vmem:[%s1220_s6 + $0x7c] sm:$0xf] %vm771_vm2, %v770_v56 }
  0xec PF: > { %s13_s14 = sadd.s32 1, %s1075_s14   ;;  %s1355_s12 = smov %s1071_s13 }
  0xed   : > { %p10_p5 = scmp.ge.s32.totalorder %s13_s14, 4   ;;  %s1356_s13 = smov %s1358_s15 }
  0xef   :  { %12 = sbr.rel (!%p10_p5) target bundleno = 2 (0x2), region = 73 }

// kernel: aspp_forward.13
= control target key start
LH: loop header
LB: loop body
LE: loop exit
PB: predicated region body
PF: predicated region fallthrough
CT: control target
= control target key end

     0   :  { %s2891_s0 = inlined_call_operand.vmem [shape: bf16[2,256,32], index: 0, kind: input, shape index: {}]   ;;  %s2892_s1 = inlined_call_operand.vmem [shape: bf16[2,256,32], index: 1, kind: input, shape index: {}]   ;;  %s2893_s2 = inlined_call_operand.vmem [shape: bf16[2,256,32], index: 2, kind: input, shape index: {}]   ;;  %s2894_s3 = inlined_call_operand.vmem [shape: bf16[2,256,32], index: 3, kind: input, shape index: {}]   ;;  %s2895_s4 = inlined_call_operand.vmem [shape: bf16[32,32], index: 4, kind: input, shape index: {}]   ;;  %s2896_s5 = inlined_call_operand.vmem [shape: bf16[32,32], index: 5, kind: input, shape index: {}]   ;;  %s2897_s6 = inlined_call_operand.vmem [shape: bf16[32,32], index: 6, kind: input, shape index: {}]   ;;  %s2898_s7 = inlined_call_operand.vmem [shape: bf16[32,32], index: 7, kind: input, shape index: {}]   ;;  %s2899_s8 = inlined_call_operand.vmem [shape: f32[2,1,32], index: 8, kind: input, shape index: {}]   ;;  %s2900_s9 = inlined_call_operand.hbm [shape: f32[2,256,32], index: 9, kind: output, shape index: {}]  }
   0x1   :  { %2902 = sst [smem:[#allocation6_spill]] %s2895_s4 }
   0x2   :  { %2903 = sst [smem:[#allocation7_spill]] %s2896_s5 }
   0x3   :  { %14 = vsyncpa [#allocation3], 0 }
   0x4   :  { %16 = vsyncpa [#allocation3 + $0x1], 0  ;;  %s2508_s30 = smov 0   ;;  %s2510_s10 = smov 0  }
   0x5   :  { %s2512_s11 = smov 0   ;;  %s2514_s12 = smov 0  }
   0x6   :  { %s2516_s13 = smov 0   ;;  %s2518_s14 = smov 0  }
   0x7 LB: > { %s1870_s15 = sadd.s32 4294967295, %s2454_s14   ;;  %s1871_s16 = sadd.s32 4294967294, %s2454_s14   ;;  %s2454_s14 = sphi %s2518_s14, %s22_s14   ;;  %s2450_s13 = sphi %s2516_s13, %s2914_s13   ;;  %s2446_s12 = sphi %s2514_s12, %s2913_s12   ;;  %s2442_s11 = sphi %s2512_s11, %s2912_s11   ;;  %s2438_s10 = sphi %s2510_s10, %s2911_s10   ;;  %s2434_s30 = sphi %s2508_s30, %s2910_s30  }
   0x8   : > { %s34_s17 = sadd.s32 1, %s2450_s13  ;;  %s265_s18 = sadd.s32 1, %s2442_s11 }
   0x9   : > { %p36_p0 = scmp.ge.s32.totalorder %s34_s17, 2  ;;  %p275_p1 = scmp.ne.s32.totalorder %s2442_s11, %s2438_s10 }
   0xa   : > { %p276_p2 = scmp.eq.s32.totalorder %s1870_s15, 1  ;;  %p281_p3 = scmp.ne.s32.totalorder %s2438_s10, %s2434_s30 }
   0xb   : > { %s2916_s17 = smov (%p36_p0, %s34_s17), 0  ;;  %p282_p5 = scmp.eq.s32.totalorder %s1871_s16, 1 }
   0xc   : > { %2904 = sst [smem:[#allocation5_spill]] %s2916_s17  ;;  %p2548_p4 = por %p276_p2, %p275_p1 }
   0xd   : > { %s260_s20 = ssub.s32 %s2450_s13, %s2916_s17  ;;  %p1874_p6 = scmp.ge.s32.totalorder %s2454_s14, 1 }
   0xe   : > { %p263_p7 = scmp.eq.s32.totalorder %s260_s20, 0  ;;  %p2555_p8 = por %p282_p5, %p281_p3 }
   0xf   : > { %p370_p9 = scmp.lt.s32.totalorder %s2454_s14, 3 }
  0x10   : > { %s2561_s22 = scalar_select %p263_p7, %s2442_s11, %s265_s18  }
  0x11   : > { %p371_p10 = pnand %p1874_p6, %p370_p9 }
  0x12   : > { %s2907_s5 = sld [smem:[#allocation7_spill]] (!%p371_p10)  ;;  %p441_p11 = scmp.lt.s32.totalorder (!%p371_p10), %s2446_s12, 1 }
  0x13   : > { %374 = sbr.rel (%p371_p10) target bundleno = 426 (0x1aa), region = 56  ;;  %s2908_s4 = sld [smem:[#allocation6_spill]] (!%p371_p10) }
  0x14   : > { %s437_s17 = sand.u32 (!%p371_p10), 1, %s2438_s10   ;;  %s2396_s20 = scalar_lea.hbm (!%p371_p10), %s2900_s9, 512 }
  0x15   : > { %s1875_s23 = sshll.u32 (!%p371_p10), %s437_s17, 8 }
  0x16   : > { %s2701_s26 = scalar_lea.vmem (!%p371_p10), [#allocation2], %s1875_s23 }
  0x17   : > { %s1725_s27 = sshll.u32 (!%p371_p10), %s2701_s26, 4  ;;  %s1726_s27 = int_to_ptr.vmem [resolvable:$true] %s1725_s27 }
  0x18   : > { %v2280_v0 = vld [vmem:[%s2907_s5 + $0x8] sm:$0xff]  ;;  %v2279_v4 = vld [vmem:[%s2907_s5] sm:$0xff]  ;;  %s2583_s24 = scalar_select %p441_p11, %s2446_s12, 1  ;;  %vm649_vm0 = vcmask 261120  }
  0x19   : > { %v2262_v1 = vld [vmem:[%s2908_s4 + $0x8] sm:$0xff]  ;;  %704 = vmatpush.bf16.msra.mxu0 %v2280_v0  ;;  %v2261_v5 = vld [vmem:[%s2908_s4] sm:$0xff] }
  0x1a   : > { %v2298_v2 = vld [vmem:[%s2897_s6 + $0x8] sm:$0xff]  ;;  %933 = vmatpush.bf16.msra.mxu1 %v2262_v1  ;;  %v2297_v6 = vld [vmem:[%s2897_s6] sm:$0xff]  ;;  %s2241_s29 = sshll.u32 %s2583_s24, 7  ;;  %s482_s18 = scalar_lea.vmem %s2899_s8, %s2583_s24 }
  0x1b   : > { %v2316_v3 = vld [vmem:[%s2898_s7 + $0x8] sm:$0xff]  ;;  %1198 = vmatpush.bf16.msra.mxu2 %v2298_v2  ;;  %v2315_v7 = vld [vmem:[%s2898_s7] sm:$0xff]  ;;  %s2599_s4 = scalar_lea.vmem %s2892_s1, %s2241_s29  ;;  %s2604_s25 = scalar_lea.vmem %s2891_s0, %s2241_s29 }
  0x1c   : > { %1495 = vmatpush.bf16.msra.mxu3 %v2316_v3  ;;  %v2263_v8 = vld [vmem:[%s2599_s4] sm:$0xff]  ;;  %s2611_s28 = scalar_lea.vmem %s2893_s2, %s2241_s29  ;;  %s2616_s5 = scalar_lea.vmem %s2894_s3, %s2241_s29  ;;  %v2264_v12 = vld [vmem:[%s2599_s4 + $0x8] sm:$0xff]  ;;  %v2265_v16 = vld [vmem:[%s2599_s4 + $0x10] sm:$0xff] }
  0x1d   : > { %705 = vmatpush.bf16.msra.mxu0 %v2279_v4  ;;  %v2245_v9 = vld [vmem:[%s2604_s25] sm:$0xff]  ;;  %v2246_v13 = vld [vmem:[%s2604_s25 + $0x8] sm:$0xff]  ;;  %v2247_v17 = vld [vmem:[%s2604_s25 + $0x10] sm:$0xff] }
  0x1e   : > { %934 = vmatpush.bf16.msra.mxu1 %v2261_v5  ;;  %v2281_v10 = vld [vmem:[%s2611_s28] sm:$0xff]  ;;  %v2282_v14 = vld [vmem:[%s2611_s28 + $0x8] sm:$0xff]  ;;  %v2283_v18 = vld [vmem:[%s2611_s28 + $0x10] sm:$0xff] }
  0x1f   : > { %1199 = vmatpush.bf16.msra.mxu2 %v2297_v6  ;;  %v2299_v11 = vld [vmem:[%s2616_s5] sm:$0xff]  ;;  %v2300_v15 = vld [vmem:[%s2616_s5 + $0x8] sm:$0xff]  ;;  %v2301_v19 = vld [vmem:[%s2616_s5 + $0x10] sm:$0xff] }
  0x20   : > { %1496 = vmatpush.bf16.msra.mxu3 %v2315_v7  ;;  %1956 = vmatmul.msk.bf16.vlgmr.msra.gmra.mxu0 %vm649_vm0, %v2263_v8  ;;  %v2266_v20 = vld [vmem:[%s2599_s4 + $0x18] sm:$0xff]  ;;  %v2267_v24 = vld [vmem:[%s2599_s4 + $0x20] sm:$0xff]  ;;  %v2268_v28 = vld [vmem:[%s2599_s4 + $0x28] sm:$0xff] }
  0x21   : > { %2044 = vmatmul.msk.bf16.vlgmr.msra.gmra.mxu1 %vm649_vm0, %v2245_v9  ;;  %v2248_v21 = vld [vmem:[%s2604_s25 + $0x18] sm:$0xff]  ;;  %v2249_v25 = vld [vmem:[%s2604_s25 + $0x20] sm:$0xff]  ;;  %v2250_v29 = vld [vmem:[%s2604_s25 + $0x28] sm:$0xff] }
  0x22   : > { %2132 = vmatmul.msk.bf16.vlgmr.msra.gmra.mxu2 %vm649_vm0, %v2281_v10  ;;  %v2284_v22 = vld [vmem:[%s2611_s28 + $0x18] sm:$0xff]  ;;  %v2285_v26 = vld [vmem:[%s2611_s28 + $0x20] sm:$0xff]  ;;  %v2286_v30 = vld [vmem:[%s2611_s28 + $0x28] sm:$0xff] }
  0x23   : > { %2220 = vmatmul.msk.bf16.vlgmr.msra.gmra.mxu3 %vm649_vm0, %v2299_v11  ;;  %v2302_v23 = vld [vmem:[%s2616_s5 + $0x18] sm:$0xff]  ;;  %v2303_v27 = vld [vmem:[%s2616_s5 + $0x20] sm:$0xff]  ;;  %v2304_v31 = vld [vmem:[%s2616_s5 + $0x28] sm:$0xff] }
  0x24   : > { %v2269_v32 = vld [vmem:[%s2599_s4 + $0x30] sm:$0xff]  ;;  %v2270_v36 = vld [vmem:[%s2599_s4 + $0x38] sm:$0xff]  ;;  %v2271_v40 = vld [vmem:[%s2599_s4 + $0x40] sm:$0xff] }
  0x25   : > { %v2251_v33 = vld [vmem:[%s2604_s25 + $0x30] sm:$0xff]  ;;  %v2252_v37 = vld [vmem:[%s2604_s25 + $0x38] sm:$0xff]  ;;  %v2253_v41 = vld [vmem:[%s2604_s25 + $0x40] sm:$0xff] }
  0x26   : > { %v2287_v34 = vld [vmem:[%s2611_s28 + $0x30] sm:$0xff]  ;;  %v2288_v38 = vld [vmem:[%s2611_s28 + $0x38] sm:$0xff]  ;;  %v2289_v44 = vld [vmem:[%s2611_s28 + $0x40] sm:$0xff] }
  0x27   : > { %v2305_v35 = vld [vmem:[%s2616_s5 + $0x30] sm:$0xff]  ;;  %v2306_v39 = vld [vmem:[%s2616_s5 + $0x38] sm:$0xff]  ;;  %v2307_v45 = vld [vmem:[%s2616_s5 + $0x40] sm:$0xff] }
  0x28   : > { %v2694_v49 = vld [vmem:[%s482_s18] ss:$0 sm:$0xff]  ;;  %v2272_v59 = vld [vmem:[%s2599_s4 + $0x48] sm:$0xff] }
  0x29   : > { %v2254_v60 = vld [vmem:[%s2604_s25 + $0x48] sm:$0xff] }
  0x2a   : > { %v2290_v0 = vld [vmem:[%s2611_s28 + $0x48] sm:$0xff] }
  0x2b   : > { %v2308_v1 = vld [vmem:[%s2616_s5 + $0x48] sm:$0xff] }
  0x30   : > { %1957 = vmatmul.msk.bf16.gmra.mxu0 %vm649_vm0, %v2264_v12 }
  0x31   : > { %2045 = vmatmul.msk.bf16.gmra.mxu1 %vm649_vm0, %v2246_v13 }
  0x32   : > { %2133 = vmatmul.msk.bf16.gmra.mxu2 %vm649_vm0, %v2282_v14 }
  0x33   : > { %2221 = vmatmul.msk.bf16.gmra.mxu3 %vm649_vm0, %v2300_v15 }
  0x40   : > { %1958 = vmatmul.msk.bf16.gmra.mxu0 %vm649_vm0, %v2265_v16 }
  0x41   : > { %2046 = vmatmul.msk.bf16.gmra.mxu1 %vm649_vm0, %v2247_v17  ;;  %v2273_v17 = vld [vmem:[%s2599_s4 + $0x50] sm:$0xff] }
  0x42   : > { %2134 = vmatmul.msk.bf16.gmra.mxu2 %vm649_vm0, %v2283_v18  ;;  %v2255_v18 = vld [vmem:[%s2604_s25 + $0x50] sm:$0xff] }
  0x43   : > { %2222 = vmatmul.msk.bf16.gmra.mxu3 %vm649_vm0, %v2301_v19 }
  0x50   : > { %1959 = vmatmul.msk.bf16.gmra.mxu0 %vm649_vm0, %v2266_v20 }
  0x51   : > { %2047 = vmatmul.msk.bf16.gmra.mxu1 %vm649_vm0, %v2248_v21 }
  0x52   : > { %2135 = vmatmul.msk.bf16.gmra.mxu2 %vm649_vm0, %v2284_v22  ;;  %v2291_v22 = vld [vmem:[%s2611_s28 + $0x50] sm:$0xff] }
  0x53   : > { %2223 = vmatmul.msk.bf16.gmra.mxu3 %vm649_vm0, %v2302_v23  ;;  %v2309_v23 = vld [vmem:[%s2616_s5 + $0x50] sm:$0xff] }
  0x60   : > { %1960 = vmatmul.msk.bf16.gmra.mxu0 %vm649_vm0, %v2267_v24 }
  0x61   : > { %2048 = vmatmul.msk.bf16.gmra.mxu1 %vm649_vm0, %v2249_v25 }
  0x62   : > { %2136 = vmatmul.msk.bf16.gmra.mxu2 %vm649_vm0, %v2285_v26 }
  0x63   : > { %2224 = vmatmul.msk.bf16.gmra.mxu3 %vm649_vm0, %v2303_v27 }
  0x70   : > { %1961 = vmatmul.msk.bf16.gmra.mxu0 %vm649_vm0, %v2268_v28 }
  0x71   : > { %2049 = vmatmul.msk.bf16.gmra.mxu1 %vm649_vm0, %v2250_v29 }
  0x72   : > { %2137 = vmatmul.msk.bf16.gmra.mxu2 %vm649_vm0, %v2286_v30 }
  0x73   : > { %2225 = vmatmul.msk.bf16.gmra.mxu3 %vm649_vm0, %v2304_v31 }
  0x80   : > { %1962 = vmatmul.msk.bf16.gmra.mxu0 %vm649_vm0, %v2269_v32 }
  0x81   : > { %2050 = vmatmul.msk.bf16.gmra.mxu1 %vm649_vm0, %v2251_v33 }
  0x82   : > { %2138 = vmatmul.msk.bf16.gmra.mxu2 %vm649_vm0, %v2287_v34 }
  0x83   : > { %2226 = vmatmul.msk.bf16.gmra.mxu3 %vm649_vm0, %v2305_v35 }
  0x90   : > { %1963 = vmatmul.msk.bf16.gmra.mxu0 %vm649_vm0, %v2270_v36 }
  0x91   : > { %2051 = vmatmul.msk.bf16.gmra.mxu1 %vm649_vm0, %v2252_v37 }
  0x92   : > { %2139 = vmatmul.msk.bf16.gmra.mxu2 %vm649_vm0, %v2288_v38 }
  0x93   : > { %2227 = vmatmul.msk.bf16.gmra.mxu3 %vm649_vm0, %v2306_v39  ;;  %v2274_v39 = vld [vmem:[%s2599_s4 + $0x58] sm:$0xff] }
  0x9d   : > { %v707_v42 = vpop.f32.mrf.mxu0 }
  0x9e   : > { %v936_v43 = vpop.f32.mrf.mxu1 }
  0x9f   : > { %v937_v46 = vadd.f32 %v936_v43, %v707_v42 }
  0xa0   : > { %1964 = vmatmul.msk.bf16.gmra.mxu0 %vm649_vm0, %v2271_v40  ;;  %v2256_v40 = vld [vmem:[%s2604_s25 + $0x58] sm:$0xff] }
  0xa1   : > { %2052 = vmatmul.msk.bf16.gmra.mxu1 %vm649_vm0, %v2253_v41 }
  0xa2   : > { %2140 = vmatmul.msk.bf16.gmra.mxu2 %vm649_vm0, %v2289_v44  ;;  %v2292_v44 = vld [vmem:[%s2611_s28 + $0x58] sm:$0xff] }
  0xa3   : > { %2228 = vmatmul.msk.bf16.gmra.mxu3 %vm649_vm0, %v2307_v45  ;;  %v2310_v45 = vld [vmem:[%s2616_s5 + $0x58] sm:$0xff] }
  0xa5   : > { %v1201_v47 = vpop.f32.mrf.mxu2  ;;  %v709_v51 = vpop.f32.mrf.mxu0 }
  0xa6   : > { %v1498_v48 = vpop.f32.mrf.mxu3  ;;  %v1281_v50 = vadd.f32 %v1201_v47, %v937_v46  ;;  %v938_v52 = vpop.f32.mrf.mxu1 }
  0xa7   : > { %v939_v56 = vadd.f32 %v938_v52, %v709_v51 }
  0xa8   : > { %v1578_v53 = vadd.f32 %v1498_v48, %v1281_v50 }
  0xaa   : > { %v1614_v54 = vadd.f32 %v2694_v49, %v1578_v53 }
  0xac   : > { %v1646_v55 = vmax.f32 %v1614_v54, 0.0 }
  0xad   : > { %v1203_v57 = vpop.f32.mrf.mxu2  ;;  %v712_v62 = vpop.f32.mrf.mxu0 }
  0xae   : > { %v1500_v58 = vpop.f32.mrf.mxu3  ;;  %1678 = vst.msk [vmem:[%s2701_s26] sm:$0xff] %vm649_vm0, %v1646_v55  ;;  %v1282_v61 = vadd.f32 %v1203_v57, %v939_v56  ;;  %v941_v63 = vpop.f32.mrf.mxu1 }
  0xaf   : > { %v942_v4 = vadd.f32 %v941_v63, %v712_v62  ;;  %v2275_v62 = vld [vmem:[%s2599_s4 + $0x60] sm:$0xff] }
  0xb0   : > { %v1579_v2 = vadd.f32 %v1500_v58, %v1282_v61  ;;  %1965 = vmatmul.msk.bf16.gmra.mxu0 %vm649_vm0, %v2272_v59  ;;  %v2257_v63 = vld [vmem:[%s2604_s25 + $0x60] sm:$0xff] }
  0xb1   : > { %2053 = vmatmul.msk.bf16.gmra.mxu1 %vm649_vm0, %v2254_v60 }
  0xb2   : > { %v1615_v3 = vadd.f32 %v2694_v49, %v1579_v2  ;;  %2141 = vmatmul.msk.bf16.gmra.mxu2 %vm649_vm0, %v2290_v0 }
  0xb3   : > { %2229 = vmatmul.msk.bf16.gmra.mxu3 %vm649_vm0, %v2308_v1 }
  0xb4   : > { %v1647_v5 = vmax.f32 %v1615_v3, 0.0  ;;  %v2293_v3 = vld [vmem:[%s2611_s28 + $0x60] sm:$0xff] }
  0xb5   : > { %v1206_v6 = vpop.f32.mrf.mxu2  ;;  %v714_v9 = vpop.f32.mrf.mxu0 }
  0xb6   : > { %v1503_v7 = vpop.f32.mrf.mxu3  ;;  %1679 = vst.msk [vmem:[%s2701_s26 + $0x8] sm:$0xff] %vm649_vm0, %v1647_v5  ;;  %v1283_v8 = vadd.f32 %v1206_v6, %v942_v4  ;;  %v943_v10 = vpop.f32.mrf.mxu1  ;;  %v2311_v4 = vld [vmem:[%s2616_s5 + $0x60] sm:$0xff] }
  0xb7   : > { %v944_v14 = vadd.f32 %v943_v10, %v714_v9 }
  0xb8   : > { %v1580_v11 = vadd.f32 %v1503_v7, %v1283_v8 }
  0xba   : > { %v1616_v12 = vadd.f32 %v2694_v49, %v1580_v11 }
  0xbc   : > { %v1648_v13 = vmax.f32 %v1616_v12, 0.0 }
  0xbd   : > { %v1208_v15 = vpop.f32.mrf.mxu2  ;;  %v717_v20 = vpop.f32.mrf.mxu0 }
  0xbe   : > { %v1505_v16 = vpop.f32.mrf.mxu3  ;;  %1680 = vst.msk [vmem:[%s2701_s26 + $0x10] sm:$0xff] %vm649_vm0, %v1648_v13  ;;  %v1284_v19 = vadd.f32 %v1208_v15, %v944_v14  ;;  %v946_v21 = vpop.f32.mrf.mxu1 }
  0xbf   : > { %v947_v26 = vadd.f32 %v946_v21, %v717_v20  ;;  %v2276_v20 = vld [vmem:[%s2599_s4 + $0x68] sm:$0xff] }
  0xc0   : > { %v1581_v24 = vadd.f32 %v1505_v16, %v1284_v19  ;;  %1966 = vmatmul.msk.bf16.gmra.mxu0 %vm649_vm0, %v2273_v17  ;;  %v2258_v21 = vld [vmem:[%s2604_s25 + $0x68] sm:$0xff] }
  0xc1   : > { %2054 = vmatmul.msk.bf16.gmra.mxu1 %vm649_vm0, %v2255_v18 }
  0xc2   : > { %v1617_v25 = vadd.f32 %v2694_v49, %v1581_v24  ;;  %2142 = vmatmul.msk.bf16.gmra.mxu2 %vm649_vm0, %v2291_v22 }
  0xc3   : > { %2230 = vmatmul.msk.bf16.gmra.mxu3 %vm649_vm0, %v2309_v23 }
  0xc4   : > { %v1649_v27 = vmax.f32 %v1617_v25, 0.0  ;;  %v2294_v25 = vld [vmem:[%s2611_s28 + $0x68] sm:$0xff] }
  0xc5   : > { %v1211_v28 = vpop.f32.mrf.mxu2  ;;  %v719_v31 = vpop.f32.mrf.mxu0 }
  0xc6   : > { %v1508_v29 = vpop.f32.mrf.mxu3  ;;  %1681 = vst.msk [vmem:[%s2701_s26 + $0x18] sm:$0xff] %vm649_vm0, %v1649_v27  ;;  %v1285_v30 = vadd.f32 %v1211_v28, %v947_v26  ;;  %v948_v32 = vpop.f32.mrf.mxu1  ;;  %v2312_v26 = vld [vmem:[%s2616_s5 + $0x68] sm:$0xff] }
  0xc7   : > { %v949_v36 = vadd.f32 %v948_v32, %v719_v31 }
  0xc8   : > { %v1582_v33 = vadd.f32 %v1508_v29, %v1285_v30 }
  0xca   : > { %v1618_v34 = vadd.f32 %v2694_v49, %v1582_v33 }
  0xcc   : > { %v1650_v35 = vmax.f32 %v1618_v34, 0.0 }
  0xcd   : > { %v1213_v37 = vpop.f32.mrf.mxu2  ;;  %v722_v42 = vpop.f32.mrf.mxu0 }
  0xce   : > { %v1510_v38 = vpop.f32.mrf.mxu3  ;;  %1682 = vst.msk [vmem:[%s2701_s26 + $0x20] sm:$0xff] %vm649_vm0, %v1650_v35  ;;  %v1286_v41 = vadd.f32 %v1213_v37, %v949_v36  ;;  %v951_v43 = vpop.f32.mrf.mxu1 }
  0xcf   : > { %v952_v48 = vadd.f32 %v951_v43, %v722_v42  ;;  %v2277_v42 = vld [vmem:[%s2599_s4 + $0x70] sm:$0xff] }
  0xd0   : > { %v1583_v46 = vadd.f32 %v1510_v38, %v1286_v41  ;;  %1967 = vmatmul.msk.bf16.gmra.mxu0 %vm649_vm0, %v2274_v39  ;;  %v2259_v43 = vld [vmem:[%s2604_s25 + $0x70] sm:$0xff] }
  0xd1   : > { %2055 = vmatmul.msk.bf16.gmra.mxu1 %vm649_vm0, %v2256_v40 }
  0xd2   : > { %v1619_v47 = vadd.f32 %v2694_v49, %v1583_v46  ;;  %2143 = vmatmul.msk.bf16.gmra.mxu2 %vm649_vm0, %v2292_v44 }
  0xd3   : > { %2231 = vmatmul.msk.bf16.gmra.mxu3 %vm649_vm0, %v2310_v45 }
  0xd4   : > { %v1651_v50 = vmax.f32 %v1619_v47, 0.0  ;;  %v2295_v47 = vld [vmem:[%s2611_s28 + $0x70] sm:$0xff] }
  0xd5   : > { %v1216_v51 = vpop.f32.mrf.mxu2  ;;  %v724_v54 = vpop.f32.mrf.mxu0 }
  0xd6   : > { %v1513_v52 = vpop.f32.mrf.mxu3  ;;  %1683 = vst.msk [vmem:[%s2701_s26 + $0x28] sm:$0xff] %vm649_vm0, %v1651_v50  ;;  %v1287_v53 = vadd.f32 %v1216_v51, %v952_v48  ;;  %v953_v55 = vpop.f32.mrf.mxu1  ;;  %v2313_v48 = vld [vmem:[%s2616_s5 + $0x70] sm:$0xff] }
  0xd7   : > { %v954_v59 = vadd.f32 %v953_v55, %v724_v54 }
  0xd8   : > { %v1584_v56 = vadd.f32 %v1513_v52, %v1287_v53 }
  0xda   : > { %v1620_v57 = vadd.f32 %v2694_v49, %v1584_v56 }
  0xdc   : > { %v1652_v58 = vmax.f32 %v1620_v57, 0.0 }
  0xdd   : > { %v1218_v60 = vpop.f32.mrf.mxu2  ;;  %v727_v1 = vpop.f32.mrf.mxu0 }
  0xde   : > { %v1515_v61 = vpop.f32.mrf.mxu3  ;;  %1684 = vst.msk [vmem:[%s2701_s26 + $0x30] sm:$0xff] %vm649_vm0, %v1652_v58  ;;  %v1288_v0 = vadd.f32 %v1218_v60, %v954_v59  ;;  %v956_v2 = vpop.f32.mrf.mxu1 }
  0xdf   : > { %v957_v7 = vadd.f32 %v956_v2, %v727_v1  ;;  %v2278_v1 = vld [vmem:[%s2599_s4 + $0x78] sm:$0xff]  ;;  %s2317_s4 = sshll.u32 %s2446_s12, 8  ;;  %s1711_s12 = scalar_lea.sflag [#allocation3], %s437_s17 }
  0xe0   : > { %v1585_v5 = vadd.f32 %v1515_v61, %v1288_v0  ;;  %1968 = vmatmul.msk.bf16.gmra.mxu0 %vm649_vm0, %v2275_v62  ;;  %v2260_v2 = vld [vmem:[%s2604_s25 + $0x78] sm:$0xff]  ;;  %s1724_s25 = scalar_lea.hbm %s2900_s9, %s2317_s4 }
  0xe1   : > { %2056 = vmatmul.msk.bf16.gmra.mxu1 %vm649_vm0, %v2257_v63 }
  0xe2   : > { %v1621_v6 = vadd.f32 %v2694_v49, %v1585_v5  ;;  %2144 = vmatmul.msk.bf16.gmra.mxu2 %vm649_vm0, %v2293_v3 }
  0xe3   : > { %2232 = vmatmul.msk.bf16.gmra.mxu3 %vm649_vm0, %v2311_v4 }
  0xe4   : > { %v1653_v8 = vmax.f32 %v1621_v6, 0.0  ;;  %v2296_v6 = vld [vmem:[%s2611_s28 + $0x78] sm:$0xff]  ;;  %s1727_s28 = sshll.u32 %s1724_s25, 4  ;;  %s1728_s28 = int_to_ptr.hbm [resolvable:$true] %s1727_s28 }
  0xe5   : > { %v1221_v9 = vpop.f32.mrf.mxu2  ;;  %v729_v12 = vpop.f32.mrf.mxu0  ;;  %s2390_s15 = sshra.s32 %s1728_s28, 4  ;;  %s2391_s15 = int_to_ptr.hbm [resolvable:$true] %s2390_s15 }
  0xe6   : > { %v1518_v10 = vpop.f32.mrf.mxu3  ;;  %1685 = vst.msk [vmem:[%s2701_s26 + $0x38] sm:$0xff] %vm649_vm0, %v1653_v8  ;;  %v1289_v11 = vadd.f32 %v1221_v9, %v957_v7  ;;  %v958_v13 = vpop.f32.mrf.mxu1  ;;  %v2314_v7 = vld [vmem:[%s2616_s5 + $0x78] sm:$0xff]  ;;  %s2392_s16 = scalar_lea.hbm %s2391_s15, 256  ;;  %p2397_p1 = scmp.lt.s32.totalorder %s2391_s15, %s2900_s9 }
  0xe7   : > { %v959_v17 = vadd.f32 %v958_v13, %v729_v12  ;;  %p2393_p12 = scmp.ne.s32.totalorder %s2391_s15, %s2392_s16  ;;  %p2398_p2 = scmp.lt.s32.totalorder %s2396_s20, %s2392_s16 }
  0xe8   : > { %v1586_v14 = vadd.f32 %v1518_v10, %v1289_v11 }
  0xe9   : > { %p2394_p13 = pnand %p2393_p12, %p2548_p4  ;;  %p2399_p3 = por %p2398_p2, %p2397_p1 }
  0xea   : > { %v1622_v15 = vadd.f32 %v2694_v49, %v1586_v14 }
  0xeb   : > { %p2395_p0 = pneg %p2394_p13 }
  0xec   : > { %v1654_v16 = vmax.f32 %v1622_v15, 0.0 }
  0xed   : > { %v1223_v18 = vpop.f32.mrf.mxu2  ;;  %v732_v23 = vpop.f32.mrf.mxu0  ;;  %p2400_p5 = pnand %p2399_p3, %p2395_p0 }
  0xee   : > { %v1520_v19 = vpop.f32.mrf.mxu3  ;;  %1686 = vst.msk [vmem:[%s2701_s26 + $0x40] sm:$0xff] %vm649_vm0, %v1654_v16  ;;  %v1290_v22 = vadd.f32 %v1223_v18, %v959_v17  ;;  %v961_v24 = vpop.f32.mrf.mxu1 }
  0xef   : > { %v962_v29 = vadd.f32 %v961_v24, %v732_v23 }
  0xf0   : > { %v1587_v27 = vadd.f32 %v1520_v19, %v1290_v22  ;;  %1969 = vmatmul.msk.bf16.gmra.mxu0 %vm649_vm0, %v2276_v20 }
  0xf1   : > { %2057 = vmatmul.msk.bf16.gmra.mxu1 %vm649_vm0, %v2258_v21 }
  0xf2   : > { %v1623_v28 = vadd.f32 %v2694_v49, %v1587_v27  ;;  %2145 = vmatmul.msk.bf16.gmra.mxu2 %vm649_vm0, %v2294_v25 }
  0xf3   : > { %2233 = vmatmul.msk.bf16.gmra.mxu3 %vm649_vm0, %v2312_v26 }
  0xf4   : > { %v1655_v30 = vmax.f32 %v1623_v28, 0.0 }
  0xf5   : > { %v1226_v31 = vpop.f32.mrf.mxu2  ;;  %v734_v34 = vpop.f32.mrf.mxu0 }
  0xf6   : > { %v1523_v32 = vpop.f32.mrf.mxu3  ;;  %1687 = vst.msk [vmem:[%s2701_s26 + $0x48] sm:$0xff] %vm649_vm0, %v1655_v30  ;;  %v1291_v33 = vadd.f32 %v1226_v31, %v962_v29  ;;  %v963_v35 = vpop.f32.mrf.mxu1 }
  0xf7   : > { %v964_v39 = vadd.f32 %v963_v35, %v734_v34 }
  0xf8   : > { %v1588_v36 = vadd.f32 %v1523_v32, %v1291_v33 }
  0xfa   : > { %v1624_v37 = vadd.f32 %v2694_v49, %v1588_v36 }
  0xfc   : > { %v1656_v38 = vmax.f32 %v1624_v37, 0.0 }
  0xfd   : > { %v1228_v40 = vpop.f32.mrf.mxu2  ;;  %v737_v45 = vpop.f32.mrf.mxu0 }
  0xfe   : > { %v1525_v41 = vpop.f32.mrf.mxu3  ;;  %1688 = vst.msk [vmem:[%s2701_s26 + $0x50] sm:$0xff] %vm649_vm0, %v1656_v38  ;;  %v1292_v44 = vadd.f32 %v1228_v40, %v964_v39  ;;  %v966_v46 = vpop.f32.mrf.mxu1 }
  0xff   : > { %v967_v52 = vadd.f32 %v966_v46, %v737_v45 }
 0x100   : > { %v1589_v50 = vadd.f32 %v1525_v41, %v1292_v44  ;;  %1970 = vmatmul.msk.bf16.gmra.mxu0 %vm649_vm0, %v2277_v42 }
 0x101   : > { %2058 = vmatmul.msk.bf16.gmra.mxu1 %vm649_vm0, %v2259_v43 }
 0x102   : > { %v1625_v51 = vadd.f32 %v2694_v49, %v1589_v50  ;;  %2146 = vmatmul.msk.bf16.gmra.mxu2 %vm649_vm0, %v2295_v47 }
 0x103   : > { %2234 = vmatmul.msk.bf16.gmra.mxu3 %vm649_vm0, %v2313_v48 }
 0x104   : > { %v1657_v53 = vmax.f32 %v1625_v51, 0.0 }
 0x105   : > { %v1231_v54 = vpop.f32.mrf.mxu2  ;;  %v739_v57 = vpop.f32.mrf.mxu0 }
 0x106   : > { %v1528_v55 = vpop.f32.mrf.mxu3  ;;  %1689 = vst.msk [vmem:[%s2701_s26 + $0x58] sm:$0xff] %vm649_vm0, %v1657_v53  ;;  %v1293_v56 = vadd.f32 %v1231_v54, %v967_v52  ;;  %v968_v58 = vpop.f32.mrf.mxu1 }
 0x107   : > { %v969_v62 = vadd.f32 %v968_v58, %v739_v57 }
 0x108   : > { %v1590_v59 = vadd.f32 %v1528_v55, %v1293_v56 }
 0x10a   : > { %v1626_v60 = vadd.f32 %v2694_v49, %v1590_v59 }
 0x10c   : > { %v1658_v61 = vmax.f32 %v1626_v60, 0.0 }
 0x10d   : > { %v1233_v63 = vpop.f32.mrf.mxu2  ;;  %v742_v4 = vpop.f32.mrf.mxu0 }
 0x10e   : > { %v1530_v0 = vpop.f32.mrf.mxu3  ;;  %1690 = vst.msk [vmem:[%s2701_s26 + $0x60] sm:$0xff] %vm649_vm0, %v1658_v61  ;;  %v1294_v3 = vadd.f32 %v1233_v63, %v969_v62  ;;  %v971_v5 = vpop.f32.mrf.mxu1 }
 0x10f   : > { %v972_v10 = vadd.f32 %v971_v5, %v742_v4 }
 0x110   : > { %v1591_v8 = vadd.f32 %v1530_v0, %v1294_v3  ;;  %1971 = vmatmul.msk.bf16.gmra.mxu0 %vm649_vm0, %v2278_v1 }
 0x111   : > { %2059 = vmatmul.msk.bf16.gmra.mxu1 %vm649_vm0, %v2260_v2 }
 0x112   : > { %v1627_v9 = vadd.f32 %v2694_v49, %v1591_v8  ;;  %2147 = vmatmul.msk.bf16.gmra.mxu2 %vm649_vm0, %v2296_v6 }
 0x113   : > { %2235 = vmatmul.msk.bf16.gmra.mxu3 %vm649_vm0, %v2314_v7 }
 0x114   : > { %v1659_v11 = vmax.f32 %v1627_v9, 0.0 }
 0x115   : > { %v1236_v12 = vpop.f32.mrf.mxu2  ;;  %v744_v15 = vpop.f32.mrf.mxu0 }
 0x116   : > { %v1533_v13 = vpop.f32.mrf.mxu3  ;;  %1691 = vst.msk [vmem:[%s2701_s26 + $0x68] sm:$0xff] %vm649_vm0, %v1659_v11  ;;  %v1295_v14 = vadd.f32 %v1236_v12, %v972_v10  ;;  %v973_v16 = vpop.f32.mrf.mxu1 }
 0x117   : > { %v974_v20 = vadd.f32 %v973_v16, %v744_v15 }
 0x118   : > { %v1592_v17 = vadd.f32 %v1533_v13, %v1295_v14 }
 0x11a   : > { %v1628_v18 = vadd.f32 %v2694_v49, %v1592_v17 }
 0x11c   : > { %v1660_v19 = vmax.f32 %v1628_v18, 0.0 }
 0x11d   : > { %v1238_v21 = vpop.f32.mrf.mxu2  ;;  %v747_v24 = vpop.f32.mrf.mxu0 }
 0x11e   : > { %v1535_v22 = vpop.f32.mrf.mxu3  ;;  %1692 = vst.msk [vmem:[%s2701_s26 + $0x70] sm:$0xff] %vm649_vm0, %v1660_v19  ;;  %v1296_v23 = vadd.f32 %v1238_v21, %v974_v20  ;;  %v976_v25 = vpop.f32.mrf.mxu1 }
 0x11f   : > { %v977_v28 = vadd.f32 %v976_v25, %v747_v24 }
 0x120   : > { %v1593_v26 = vadd.f32 %v1535_v22, %v1296_v23 }
 0x122   : > { %v1629_v27 = vadd.f32 %v2694_v49, %v1593_v26 }
 0x124   : > { %v1661_v29 = vmax.f32 %v1629_v27, 0.0 }
 0x125   : > { %v1241_v30 = vpop.f32.mrf.mxu2  ;;  %v749_v33 = vpop.f32.mrf.mxu0 }
 0x126   : > { %v1538_v31 = vpop.f32.mrf.mxu3  ;;  %1693 = vst.msk [vmem:[%s2701_s26 + $0x78] sm:$0xff] %vm649_vm0, %v1661_v29  ;;  %v1297_v32 = vadd.f32 %v1241_v30, %v977_v28  ;;  %v978_v34 = vpop.f32.mrf.mxu1 }
 0x127   : > { %v979_v38 = vadd.f32 %v978_v34, %v749_v33 }
 0x128   : > { %v1594_v35 = vadd.f32 %v1538_v31, %v1297_v32 }
 0x12a   : > { %v1630_v36 = vadd.f32 %v2694_v49, %v1594_v35 }
 0x12c   : > { %v1662_v37 = vmax.f32 %v1630_v36, 0.0 }
 0x12d   : > { %v1243_v39 = vpop.f32.mrf.mxu2  ;;  %v752_v42 = vpop.f32.mrf.mxu0 }
 0x12e   : > { %v1540_v40 = vpop.f32.mrf.mxu3  ;;  %1694 = vst.msk [vmem:[%s2701_s26 + $0x80] sm:$0xff] %vm649_vm0, %v1662_v37  ;;  %v1298_v41 = vadd.f32 %v1243_v39, %v979_v38  ;;  %v981_v43 = vpop.f32.mrf.mxu1 }
 0x12f   : > { %v982_v46 = vadd.f32 %v981_v43, %v752_v42 }
 0x130   : > { %v1595_v44 = vadd.f32 %v1540_v40, %v1298_v41 }
 0x132   : > { %v1631_v45 = vadd.f32 %v2694_v49, %v1595_v44 }
 0x134   : > { %v1663_v47 = vmax.f32 %v1631_v45, 0.0 }
 0x135   : > { %v1246_v48 = vpop.f32.mrf.mxu2  ;;  %v754_v52 = vpop.f32.mrf.mxu0 }
 0x136   : > { %v1543_v50 = vpop.f32.mrf.mxu3  ;;  %1695 = vst.msk [vmem:[%s2701_s26 + $0x88] sm:$0xff] %vm649_vm0, %v1663_v47  ;;  %v1299_v51 = vadd.f32 %v1246_v48, %v982_v46  ;;  %v983_v53 = vpop.f32.mrf.mxu1 }
 0x137   : > { %v984_v57 = vadd.f32 %v983_v53, %v754_v52 }
 0x138   : > { %v1596_v54 = vadd.f32 %v1543_v50, %v1299_v51 }
 0x13a   : > { %v1632_v55 = vadd.f32 %v2694_v49, %v1596_v54 }
 0x13c   : > { %v1664_v56 = vmax.f32 %v1632_v55, 0.0 }
 0x13d   : > { %v1248_v58 = vpop.f32.mrf.mxu2  ;;  %v757_v61 = vpop.f32.mrf.mxu0 }
 0x13e   : > { %v1545_v59 = vpop.f32.mrf.mxu3  ;;  %1696 = vst.msk [vmem:[%s2701_s26 + $0x90] sm:$0xff] %vm649_vm0, %v1664_v56  ;;  %v1300_v60 = vadd.f32 %v1248_v58, %v984_v57  ;;  %v986_v62 = vpop.f32.mrf.mxu1 }
 0x13f   : > { %v987_v1 = vadd.f32 %v986_v62, %v757_v61 }
 0x140   : > { %v1597_v63 = vadd.f32 %v1545_v59, %v1300_v60 }
 0x142   : > { %v1633_v0 = vadd.f32 %v2694_v49, %v1597_v63 }
 0x144   : > { %v1665_v2 = vmax.f32 %v1633_v0, 0.0 }
 0x145   : > { %v1251_v3 = vpop.f32.mrf.mxu2  ;;  %v759_v6 = vpop.f32.mrf.mxu0 }
 0x146   : > { %v1548_v4 = vpop.f32.mrf.mxu3  ;;  %1697 = vst.msk [vmem:[%s2701_s26 + $0x98] sm:$0xff] %vm649_vm0, %v1665_v2  ;;  %v1301_v5 = vadd.f32 %v1251_v3, %v987_v1  ;;  %v988_v7 = vpop.f32.mrf.mxu1 }
 0x147   : > { %v989_v11 = vadd.f32 %v988_v7, %v759_v6 }
 0x148   : > { %v1598_v8 = vadd.f32 %v1548_v4, %v1301_v5 }
 0x14a   : > { %v1634_v9 = vadd.f32 %v2694_v49, %v1598_v8 }
 0x14c   : > { %v1666_v10 = vmax.f32 %v1634_v9, 0.0 }
 0x14d   : > { %v1253_v12 = vpop.f32.mrf.mxu2  ;;  %v762_v15 = vpop.f32.mrf.mxu0 }
 0x14e   : > { %v1550_v13 = vpop.f32.mrf.mxu3  ;;  %1698 = vst.msk [vmem:[%s2701_s26 + $0xa0] sm:$0xff] %vm649_vm0, %v1666_v10  ;;  %v1302_v14 = vadd.f32 %v1253_v12, %v989_v11  ;;  %v991_v16 = vpop.f32.mrf.mxu1 }
 0x14f   : > { %v992_v19 = vadd.f32 %v991_v16, %v762_v15 }
 0x150   : > { %v1599_v17 = vadd.f32 %v1550_v13, %v1302_v14 }
 0x152   : > { %v1635_v18 = vadd.f32 %v2694_v49, %v1599_v17 }
 0x154   : > { %v1667_v20 = vmax.f32 %v1635_v18, 0.0 }
 0x155   : > { %v1256_v21 = vpop.f32.mrf.mxu2  ;;  %v764_v24 = vpop.f32.mrf.mxu0 }
 0x156   : > { %v1553_v22 = vpop.f32.mrf.mxu3  ;;  %1699 = vst.msk [vmem:[%s2701_s26 + $0xa8] sm:$0xff] %vm649_vm0, %v1667_v20  ;;  %v1303_v23 = vadd.f32 %v1256_v21, %v992_v19  ;;  %v993_v25 = vpop.f32.mrf.mxu1 }
 0x157   : > { %v994_v29 = vadd.f32 %v993_v25, %v764_v24 }
 0x158   : > { %v1600_v26 = vadd.f32 %v1553_v22, %v1303_v23 }
 0x15a   : > { %v1636_v27 = vadd.f32 %v2694_v49, %v1600_v26 }
 0x15c   : > { %v1668_v28 = vmax.f32 %v1636_v27, 0.0 }
 0x15d   : > { %v1258_v30 = vpop.f32.mrf.mxu2  ;;  %v767_v33 = vpop.f32.mrf.mxu0 }
 0x15e   : > { %v1555_v31 = vpop.f32.mrf.mxu3  ;;  %1700 = vst.msk [vmem:[%s2701_s26 + $0xb0] sm:$0xff] %vm649_vm0, %v1668_v28  ;;  %v1304_v32 = vadd.f32 %v1258_v30, %v994_v29  ;;  %v996_v34 = vpop.f32.mrf.mxu1 }
 0x15f   : > { %v997_v37 = vadd.f32 %v996_v34, %v767_v33 }
 0x160   : > { %v1601_v35 = vadd.f32 %v1555_v31, %v1304_v32 }
 0x162   : > { %v1637_v36 = vadd.f32 %v2694_v49, %v1601_v35 }
 0x164   : > { %v1669_v38 = vmax.f32 %v1637_v36, 0.0 }
 0x165   : > { %v1261_v39 = vpop.f32.mrf.mxu2  ;;  %v769_v42 = vpop.f32.mrf.mxu0 }
 0x166   : > { %v1558_v40 = vpop.f32.mrf.mxu3  ;;  %1701 = vst.msk [vmem:[%s2701_s26 + $0xb8] sm:$0xff] %vm649_vm0, %v1669_v38  ;;  %v1305_v41 = vadd.f32 %v1261_v39, %v997_v37  ;;  %v998_v43 = vpop.f32.mrf.mxu1 }
 0x167   : > { %v999_v47 = vadd.f32 %v998_v43, %v769_v42 }
 0x168   : > { %v1602_v44 = vadd.f32 %v1558_v40, %v1305_v41 }
 0x16a   : > { %v1638_v45 = vadd.f32 %v2694_v49, %v1602_v44 }
 0x16c   : > { %v1670_v46 = vmax.f32 %v1638_v45, 0.0 }
 0x16d   : > { %v1263_v48 = vpop.f32.mrf.mxu2  ;;  %v772_v52 = vpop.f32.mrf.mxu0 }
 0x16e   : > { %v1560_v50 = vpop.f32.mrf.mxu3  ;;  %1702 = vst.msk [vmem:[%s2701_s26 + $0xc0] sm:$0xff] %vm649_vm0, %v1670_v46  ;;  %v1306_v51 = vadd.f32 %v1263_v48, %v999_v47  ;;  %v1001_v53 = vpop.f32.mrf.mxu1 }
 0x16f   : > { %v1002_v56 = vadd.f32 %v1001_v53, %v772_v52 }
 0x170   : > { %v1603_v54 = vadd.f32 %v1560_v50, %v1306_v51 }
 0x172   : > { %v1639_v55 = vadd.f32 %v2694_v49, %v1603_v54 }
 0x174   : > { %v1671_v57 = vmax.f32 %v1639_v55, 0.0 }
 0x175   : > { %v1266_v58 = vpop.f32.mrf.mxu2  ;;  %v774_v61 = vpop.f32.mrf.mxu0 }
 0x176   : > { %v1563_v59 = vpop.f32.mrf.mxu3  ;;  %1703 = vst.msk [vmem:[%s2701_s26 + $0xc8] sm:$0xff] %vm649_vm0, %v1671_v57  ;;  %v1307_v60 = vadd.f32 %v1266_v58, %v1002_v56  ;;  %v1003_v62 = vpop.f32.mrf.mxu1 }
 0x177   : > { %v1004_v2 = vadd.f32 %v1003_v62, %v774_v61 }
 0x178   : > { %v1604_v63 = vadd.f32 %v1563_v59, %v1307_v60 }
 0x17a   : > { %v1640_v0 = vadd.f32 %v2694_v49, %v1604_v63 }
 0x17c   : > { %v1672_v1 = vmax.f32 %v1640_v0, 0.0 }
 0x17d   : > { %v1268_v3 = vpop.f32.mrf.mxu2  ;;  %v777_v6 = vpop.f32.mrf.mxu0 }
 0x17e   : > { %v1565_v4 = vpop.f32.mrf.mxu3  ;;  %1704 = vst.msk [vmem:[%s2701_s26 + $0xd0] sm:$0xff] %vm649_vm0, %v1672_v1  ;;  %v1308_v5 = vadd.f32 %v1268_v3, %v1004_v2  ;;  %v1006_v7 = vpop.f32.mrf.mxu1 }
 0x17f   : > { %v1007_v10 = vadd.f32 %v1006_v7, %v777_v6 }
 0x180   : > { %v1605_v8 = vadd.f32 %v1565_v4, %v1308_v5 }
 0x182   : > { %v1641_v9 = vadd.f32 %v2694_v49, %v1605_v8 }
 0x184   : > { %v1673_v11 = vmax.f32 %v1641_v9, 0.0 }
 0x185   : > { %v1271_v12 = vpop.f32.mrf.mxu2  ;;  %v779_v15 = vpop.f32.mrf.mxu0 }
 0x186   : > { %v1568_v13 = vpop.f32.mrf.mxu3  ;;  %1705 = vst.msk [vmem:[%s2701_s26 + $0xd8] sm:$0xff] %vm649_vm0, %v1673_v11  ;;  %v1309_v14 = vadd.f32 %v1271_v12, %v1007_v10  ;;  %v1008_v16 = vpop.f32.mrf.mxu1 }
 0x187   : > { %v1009_v20 = vadd.f32 %v1008_v16, %v779_v15 }
 0x188   : > { %v1606_v17 = vadd.f32 %v1568_v13, %v1309_v14 }
 0x18a   : > { %v1642_v18 = vadd.f32 %v2694_v49, %v1606_v17 }
 0x18c   : > { %v1674_v19 = vmax.f32 %v1642_v18, 0.0 }
 0x18d   : > { %v1273_v21 = vpop.f32.mrf.mxu2  ;;  %v782_v24 = vpop.f32.mrf.mxu0 }
 0x18e   : > { %v1570_v22 = vpop.f32.mrf.mxu3  ;;  %1706 = vst.msk [vmem:[%s2701_s26 + $0xe0] sm:$0xff] %vm649_vm0, %v1674_v19  ;;  %v1310_v23 = vadd.f32 %v1273_v21, %v1009_v20  ;;  %v1011_v25 = vpop.f32.mrf.mxu1 }
 0x18f   : > { %v1012_v28 = vadd.f32 %v1011_v25, %v782_v24 }
 0x190   : > { %v1607_v26 = vadd.f32 %v1570_v22, %v1310_v23 }
 0x192   : > { %v1643_v27 = vadd.f32 %v2694_v49, %v1607_v26 }
 0x194   : > { %v1675_v29 = vmax.f32 %v1643_v27, 0.0 }
 0x195   : > { %v1276_v30 = vpop.f32.mrf.mxu2  ;;  %v784_v34 = vpop.f32.mrf.mxu0 }
 0x196   : > { %v1573_v31 = vpop.f32.mrf.mxu3  ;;  %1707 = vst.msk [vmem:[%s2701_s26 + $0xe8] sm:$0xff] %vm649_vm0, %v1675_v29  ;;  %v1311_v32 = vadd.f32 %v1276_v30, %v1012_v28  ;;  %v1013_v35 = vpop.f32.mrf.mxu1 }
 0x197   : > { %v1014_v38 = vadd.f32 %v1013_v35, %v784_v34 }
 0x198   : > { %v1608_v33 = vadd.f32 %v1573_v31, %v1311_v32 }
 0x19a   : > { %v1644_v36 = vadd.f32 %v2694_v49, %v1608_v33 }
 0x19c   : > { %v1676_v37 = vmax.f32 %v1644_v36, 0.0 }
 0x19d   : > { %v1278_v39 = vpop.f32.mrf.mxu2 }
 0x19e   : > { %1708 = vst.msk [vmem:[%s2701_s26 + $0xf0] sm:$0xff] %vm649_vm0, %v1676_v37  ;;  %v1312_v40 = vadd.f32 %v1278_v39, %v1014_v38  ;;  %v1575_v41 = vpop.f32.mrf.mxu3 }
 0x1a0   : > { %v1609_v42 = vadd.f32 %v1575_v41, %v1312_v40 }
 0x1a2   : > { %v1645_v43 = vadd.f32 %v2694_v49, %v1609_v42 }
 0x1a4   : > { %v1677_v44 = vmax.f32 %v1645_v43, 0.0 }
 0x1a6   : > { %1709 = vst.msk [vmem:[%s2701_s26 + $0xf8] sm:$0xff] %vm649_vm0, %v1677_v44 }
 0x1a7   : > { %2403 = shalt.err (!%p2400_p5)
}
 0x1a8   : > { %s2456_s17 = smov 128   ;;  %s2457_s26 = smov 8  }
 0x1a9   : > { %2318 = dma.vmem_to_hbm [thread:$0]  (%p2548_p4), %s1726_s27, 4096, %s1728_s28, %s1711_s12, %s2456_s17, %s2456_s17, %s2457_s26  }
 0x1aa PF: > { %p2324_p6 = scmp.ge.s32.totalorder %s2454_s14, 2  ;;  %s1742_s24 = sand.u32 1, %s2434_s30  }
 0x1ab   : > { %s1743_s18 = scalar_lea.sflag [#allocation3], %s1742_s24 }
 0x1ac   : > { %p2321_p7 = pnand %p2324_p6, %p2555_p8 }
 0x1ae   : > { %p2322_p9 = pneg %p2321_p7 }
 0x1b0   : > { %2429 = dma.done.wait (%p2322_p9), %s1743_s18, 4096  }
 0x1b1   : > { %2431 = vsyncadd (%p2322_p9), %s1743_s18, 4294963200  ;;  %s22_s14 = sadd.s32 1, %s2454_s14   ;;  %s2909_s19 = sld [smem:[#allocation5_spill]] }
 0x1b2   : > { %p19_p10 = scmp.ge.s32.totalorder %s22_s14, 4   ;;  %s2910_s30 = smov %s2438_s10 }
 0x1b3   : > { %s2911_s10 = smov %s2442_s11  ;;  %s2912_s11 = smov %s2561_s22 }
 0x1b4   : > { %s2913_s12 = smov %s2450_s13  ;;  %21 = sbr.rel (!%p19_p10) target bundleno = 7 (0x7), region = 103 }
 0x1b7   : > { %s2914_s13 = smov %s2909_s19 }
 0x1b9   :  { %1749 = vsyncpa [#allocation3], 1 }
 0x1ba   :  { %1751 = vsyncpa [#allocation3 + $0x1], 1 }

</bundles_post_ra>
